<compile_context>
chip_gen: v7x
topology: tpu7x:2x2x1
jax: 0.10.0
libtpu: 0.0.40
codegen_flags: <defaults>
</compile_context>

<pallas_src>
import functools
import math

import numpy as np
import jax
import jax.numpy as jnp
from jax.experimental import pallas as pl
from jax.experimental.pallas import tpu as pltpu


def _mha_kernel(*refs, num_heads, head_dim, block_n, L, S,
                has_mask, need_weights, approx_recip):
    (q_ref, k_ref, v_ref,
     wqT_ref, wkT_ref, wvT_ref,
     bq_ref, bk_ref, bv_ref,
     woT_ref, bo_ref) = refs[:11]
    pos = 11
    mask_ref = None
    if has_mask:
        mask_ref = refs[pos]
        pos += 1
    out_ref = refs[pos]
    pos += 1
    attn_w_ref = refs[pos] if need_weights else None

    H, hd = num_heads, head_dim
    E = H * hd
    cdt = q_ref.dtype   # MXU operand dtype (bf16 by default), f32 accumulation.

    # --- Full-width in-projections: (rows, E) x (E, E) MXU matmuls.
    # 1/sqrt(head_dim) is already folded into wqT / bq by the wrapper.
    qp = jnp.dot(q_ref[...], wqT_ref[...],
                 preferred_element_type=jnp.float32) + bq_ref[...]
    kp = jnp.dot(k_ref[...], wkT_ref[...],
                 preferred_element_type=jnp.float32) + bk_ref[...]
    vp = jnp.dot(v_ref[...], wvT_ref[...],
                 preferred_element_type=jnp.float32) + bv_ref[...]

    # --- Head split in values: (block_n*T, E) -> (block_n*H, T, hd),
    # batch order (b, h).  head_dim stays the minor/lane dim.
    def split_heads(x, T):
        x3 = x.reshape(block_n, T, E)
        if H == 1:
            return x3
        parts = [x3[:, :, h * hd:(h + 1) * hd] for h in range(H)]
        return jnp.stack(parts, axis=1).reshape(block_n * H, T, hd)

    qh = split_heads(qp, L).astype(cdt)
    kh = split_heads(kp, S).astype(cdt)
    vh = split_heads(vp, S).astype(cdt)

    # --- Scores for every (batch, head) pair in ONE batched MXU push.
    s = jnp.einsum('bld,bsd->bls', qh, kh,
                   preferred_element_type=jnp.float32)     # (block_n*H, L, S)
    if has_mask:
        # (L, S) mask broadcasts; (block_n*H, L, S) mask matches exactly.
        s = s + mask_ref[...]

    s = s - jnp.max(s, axis=-1, keepdims=True)
    e = jnp.exp(s)
    w = e * pl.reciprocal(jnp.sum(e, axis=-1, keepdims=True),
                          approx=approx_recip)

    if need_weights:
        # Single lane-dense store, already in the final (N, H, L, S) layout.
        attn_w_ref[...] = w.reshape(block_n, H, L, S).astype(attn_w_ref.dtype)

    # --- P @ V for every (batch, head) pair in ONE batched MXU push.
    ctx = jnp.einsum('bls,bsd->bld', w.astype(cdt), vh,
                     preferred_element_type=jnp.float32)   # (block_n*H, L, hd)

    # --- Merge heads back to a lane-dense (rows, E) VALUE (no VMEM scratch,
    # no per-head narrow stores).
    ctx4 = ctx.reshape(block_n, H, L, hd)
    if H == 1:
        ctx2 = ctx4.reshape(block_n * L, E)
    else:
        ctx2 = jnp.concatenate([ctx4[:, h] for h in range(H)],
                               axis=-1).reshape(block_n * L, E)

    # --- Single full-width out-projection; output stored once, lane-dense.
    out = jnp.dot(ctx2.astype(cdt), woT_ref[...],
                  preferred_element_type=jnp.float32) + bo_ref[...]
    out_ref[...] = out.astype(out_ref.dtype)


def _pick_block_n(N, L, S, E, H, c_bytes, out_bytes, w_bytes,
                  need_weights, has_mask, mask3d,
                  vmem_budget=32 * 1024 * 1024):
    """Largest batch block whose VMEM footprint fits a conservative budget.

    Estimate covers double-buffered q/k/v/out/attn_w blocks, single-buffered
    weights/biases, the mask block and rough in-kernel f32 temporaries.  The
    32 MiB budget is conservative for v7x (64 MiB physical VMEM).
    NOTE: on v7x an even grid (2 TensorCores) would additionally be preferred;
    on v5e/v6e a single grid step with the largest block is best.
    """
    def est(bn):
        rows_q, rows_kv = bn * L, bn * S
        b = 2 * (rows_q + 2 * rows_kv) * E * c_bytes          # q,k,v blocks
        b += 2 * rows_q * E * out_bytes                       # out block
        if need_weights:
            b += 2 * bn * H * L * S * w_bytes                 # attn_w block
        if has_mask:
            b += 2 * (bn * H if mask3d else 1) * L * S * 4    # mask block
        b += 4 * E * E * c_bytes + 4 * E * 4                  # weights + biases
        b += (rows_q + 2 * rows_kv) * E * (8 + c_bytes)       # proj + head split
        b += 3 * bn * H * L * S * 4                           # s / e / w temps
        b += 3 * rows_q * E * 4 + rows_q * E * c_bytes        # ctx merge + out
        return b

    divisors = [d for d in range(1, N + 1) if N % d == 0]
    ok = [d for d in divisors
          if ((d * L) % 8 == 0 or d == N) and ((d * S) % 8 == 0 or d == N)
          and est(d) <= vmem_budget]
    if ok:
        return max(ok)
    ok = [d for d in divisors if est(d) <= vmem_budget]
    return max(ok) if ok else 1


def mha_forward(query, key, value,
                in_proj_weight, in_proj_bias,
                out_proj_weight, out_proj_bias,
                num_heads, attn_mask=None, need_weights=True,
                compute_dtype=jnp.bfloat16, weights_dtype=jnp.float32):
    """query: (L, N, E), key/value: (S, N, E) — batch_first=False convention.

    Returns (attn_output (L, N, E), attn_output_weights (N, H, L, S) or None).
    """
    L, N, E = query.shape
    S = key.shape[0]
    H = num_heads
    assert E % H == 0
    hd = E // H
    scale = 1.0 / math.sqrt(hd)
    cdt = compute_dtype

    # Mask prep (2-D (L,S) or 3-D (N*H, L, S); bool = "may NOT attend").
    has_mask = attn_mask is not None
    mask3d = False
    m = None
    if has_mask:
        m = attn_mask
        if m.dtype == jnp.bool_:
            m = jnp.where(m, -jnp.inf, 0.0).astype(jnp.float32)
        else:
            m = m.astype(jnp.float32)
        if m.ndim == 3:
            assert m.shape == (N * H, L, S), "3-D mask must be (N*num_heads, L, S)"
            mask3d = True
        else:
            assert m.shape == (L, S), "2-D mask must be (L, S)"

    c_bytes = jnp.dtype(cdt).itemsize
    out_bytes = jnp.dtype(query.dtype).itemsize
    w_bytes = jnp.dtype(weights_dtype).itemsize
    block_n = _pick_block_n(N, L, S, E, H, c_bytes, out_bytes, w_bytes,
                            need_weights, has_mask, mask3d)
    grid_n = N // block_n
    # TODO(synk): pad L / S to multiples of 8 to avoid in-kernel sublane
    # relayouts on the (rows, E) -> (block_n, T, E) reshapes for ragged seqs.

    # Layout glue in plain JAX: batch-major, row-flattened, compute-dtype cast
    # (halves q/k/v HBM DMA bytes when compute_dtype is bf16).
    q2 = jnp.transpose(query, (1, 0, 2)).reshape(N * L, E).astype(cdt)
    k2 = jnp.transpose(key, (1, 0, 2)).reshape(N * S, E).astype(cdt)
    v2 = jnp.transpose(value, (1, 0, 2)).reshape(N * S, E).astype(cdt)

    # Pre-transposed weights; 1/sqrt(head_dim) folded into the Q projection.
    wqT = (in_proj_weight[0:E].T * scale).astype(cdt)
    wkT = in_proj_weight[E:2 * E].T.astype(cdt)
    wvT = in_proj_weight[2 * E:3 * E].T.astype(cdt)
    woT = out_proj_weight.T.astype(cdt)
    bq = (in_proj_bias[0:E] * scale).reshape(1, E).astype(jnp.float32)
    bk = in_proj_bias[E:2 * E].reshape(1, E).astype(jnp.float32)
    bv = in_proj_bias[2 * E:3 * E].reshape(1, E).astype(jnp.float32)
    bo = out_proj_bias.reshape(1, E).astype(jnp.float32)

    args = [q2, k2, v2, wqT, wkT, wvT, bq, bk, bv, woT, bo]
    if has_mask:
        args.append(m)

    kernel = functools.partial(
        _mha_kernel, num_heads=H, head_dim=hd, block_n=block_n, L=L, S=S,
        has_mask=has_mask, need_weights=need_weights,
        approx_recip=(cdt != jnp.float32))

    def run(single_buffer_consts):
        const_mode = ({'pipeline_mode': pl.Buffered(1)}
                      if single_buffer_consts else {})

        def const_spec(shape):
            zero = (lambda b: (0,) * len(shape))
            return pl.BlockSpec(shape, zero, **const_mode)

        in_specs = [
            pl.BlockSpec((block_n * L, E), lambda b: (b, 0)),   # q (flattened)
            pl.BlockSpec((block_n * S, E), lambda b: (b, 0)),   # k
            pl.BlockSpec((block_n * S, E), lambda b: (b, 0)),   # v
            const_spec((E, E)),                                 # WqT (scaled)
            const_spec((E, E)),                                 # WkT
            const_spec((E, E)),                                 # WvT
            const_spec((1, E)),                                 # bq (scaled)
            const_spec((1, E)),                                 # bk
            const_spec((1, E)),                                 # bv
            const_spec((E, E)),                                 # WoT
            const_spec((1, E)),                                 # bo
        ]
        if has_mask:
            if mask3d:
                in_specs.append(
                    pl.BlockSpec((block_n * H, L, S), lambda b: (b, 0, 0)))
            else:
                in_specs.append(const_spec((L, S)))

        out_shape = [jax.ShapeDtypeStruct((N * L, E), query.dtype)]
        out_specs = [pl.BlockSpec((block_n * L, E), lambda b: (b, 0))]
        if need_weights:
            out_shape.append(jax.ShapeDtypeStruct((N, H, L, S), weights_dtype))
            out_specs.append(
                pl.BlockSpec((block_n, H, L, S), lambda b: (b, 0, 0, 0)))

        return pl.pallas_call(
            kernel,
            out_shape=tuple(out_shape),
            grid_spec=pltpu.PrefetchScalarGridSpec(
                num_scalar_prefetch=0,
                grid=(grid_n,),
                in_specs=in_specs,
                out_specs=tuple(out_specs),
            ),
            compiler_params=pltpu.CompilerParams(
                dimension_semantics=("parallel",),
                vmem_limit_bytes=64 * 1024 * 1024),
        )(*args)

    try:
        results = run(True)
    except Exception:
        # Fallback if single-buffered (Buffered(1)) constant specs are not
        # supported by this jax/Mosaic version.
        results = run(False)

    out_flat = results[0]
    attn_output = out_flat.reshape(N, L, E).transpose(1, 0, 2)   # (L, N, E)
    attn_weights = results[1] if need_weights else None
    return attn_output, attn_weights
    # TODO(synk): dropout (p=0.0 here), attn_requests hooks,
    # individual_head_params=True and kdim/vdim != embed_dim are not modeled.


def _reference_mha(query, key, value, in_w, in_b, out_w, out_b, num_heads,
                   attn_mask):
    """Pure-JAX f32 reference (mirrors torch F.multi_head_attention_forward)."""
    L, N, E = query.shape
    S = key.shape[0]
    hd = E // num_heads
    wq, wk, wv = in_w[:E], in_w[E:2 * E], in_w[2 * E:]
    bq, bk, bv = in_b[:E], in_b[E:2 * E], in_b[2 * E:]
    q = query @ wq.T + bq
    k = key @ wk.T + bk
    v = value @ wv.T + bv
    q = q.reshape(L, N, num_heads, hd).transpose(1, 2, 0, 3) / math.sqrt(hd)
    k = k.reshape(S, N, num_heads, hd).transpose(1, 2, 0, 3)
    v = v.reshape(S, N, num_heads, hd).transpose(1, 2, 0, 3)
    scores = jnp.einsum('nhld,nhsd->nhls', q, k)
    if attn_mask is not None:
        if attn_mask.dtype == jnp.bool_:
            am = jnp.where(attn_mask, -jnp.inf, 0.0).astype(jnp.float32)
        else:
            am = attn_mask.astype(jnp.float32)
        if am.ndim == 2:
            scores = scores + am[None, None]
        else:
            scores = scores + am.reshape(N, num_heads, L, S)
    w = jax.nn.softmax(scores, axis=-1)                       # (N, H, L, S)
    ctx = jnp.einsum('nhls,nhsd->nhld', w, v)                 # (N, H, L, hd)
    ctx = ctx.transpose(2, 0, 1, 3).reshape(L, N, E)
    out = ctx @ out_w.T + out_b
    return out, w


if __name__ == "__main__":
    # model_params.dim = 32, model_params.n_heads = 4,
    # individual_head_params = False, batch_first = False, dropout = 0.0
    E, H = 32, 4
    L, S, N = 8, 8, 4

    root = jax.random.PRNGKey(0)
    k_q, k_k, k_v, k_w, k_wo, k_m3 = jax.random.split(root, 6)

    query = jax.random.normal(k_q, (L, N, E), dtype=jnp.float32)
    key_t = jax.random.normal(k_k, (S, N, E), dtype=jnp.float32)
    value = jax.random.normal(k_v, (S, N, E), dtype=jnp.float32)

    # Parameter init mirroring the PyTorch module (_reset_parameters):
    # xavier_uniform_ on in_proj_weight (3E, E), zeros in_proj_bias,
    # uniform(+-1/sqrt(E)) for out_proj.weight, zero out_proj.bias.
    xav = math.sqrt(6.0 / (3 * E + E))
    in_proj_weight = jax.random.uniform(k_w, (3 * E, E), jnp.float32, -xav, xav)
    in_proj_bias = jnp.zeros((3 * E,), jnp.float32)
    ob = 1.0 / math.sqrt(E)
    out_proj_weight = jax.random.uniform(k_wo, (E, E), jnp.float32, -ob, ob)
    out_proj_bias = jnp.zeros((E,), jnp.float32)

    # 2-D additive causal mask (L, S) and a 3-D (N*H, L, S) additive mask.
    causal = jnp.where(jnp.arange(L)[:, None] >= jnp.arange(S)[None, :],
                       0.0, -1e9).astype(jnp.float32)
    mask3d = 0.5 * jax.random.normal(k_m3, (N * H, L, S), dtype=jnp.float32)

    configs = [
        (causal, jnp.bfloat16, True),    # 2-D mask, bf16 MXU, with weights
        (None, jnp.bfloat16, False),     # no mask, bf16 MXU, weights skipped
        (mask3d, jnp.float32, True),     # 3-D mask, f32 path, with weights
    ]
    for mask, cdtype, need_w in configs:
        attn_out, attn_w = mha_forward(
            query, key_t, value, in_proj_weight, in_proj_bias,
            out_proj_weight, out_proj_bias, num_heads=H, attn_mask=mask,
            need_weights=need_w, compute_dtype=cdtype)
        attn_out = jax.block_until_ready(attn_out)

        ref_out, ref_w = _reference_mha(query, key_t, value,
                                        in_proj_weight, in_proj_bias,
                                        out_proj_weight, out_proj_bias,
                                        H, mask)
        np.testing.assert_allclose(np.asarray(attn_out, dtype=np.float32),
                                   np.asarray(ref_out), rtol=2e-2, atol=2e-2)
        assert attn_out.shape == (L, N, E)
        if need_w:
            attn_w = jax.block_until_ready(attn_w)
            np.testing.assert_allclose(np.asarray(attn_w, dtype=np.float32),
                                       np.asarray(ref_w), rtol=2e-2, atol=2e-2)
            assert attn_w.shape == (N, H, L, S)
        else:
            assert attn_w is None

    print("KERNEL_OK")
</pallas_src>

<mosaic_0001>
module attributes {stable_mosaic.version = 11 : i64} {
  func.func @_mha_kernel(%arg0: i32, %arg1: memref<32x32xbf16, #tpu.memory_space<vmem>>, %arg2: memref<32x32xbf16, #tpu.memory_space<vmem>>, %arg3: memref<32x32xbf16, #tpu.memory_space<vmem>>, %arg4: memref<32x32xbf16, #tpu.memory_space<vmem>>, %arg5: memref<32x32xbf16, #tpu.memory_space<vmem>>, %arg6: memref<32x32xbf16, #tpu.memory_space<vmem>>, %arg7: memref<1x32xf32, #tpu.memory_space<vmem>>, %arg8: memref<1x32xf32, #tpu.memory_space<vmem>>, %arg9: memref<1x32xf32, #tpu.memory_space<vmem>>, %arg10: memref<32x32xbf16, #tpu.memory_space<vmem>>, %arg11: memref<1x32xf32, #tpu.memory_space<vmem>>, %arg12: memref<8x8xf32, #tpu.memory_space<vmem>>, %arg13: memref<32x32xf32, #tpu.memory_space<vmem>>, %arg14: memref<4x4x8x8xf32, #tpu.memory_space<vmem>>) attributes {dimension_semantics = [#tpu.dimension_semantics<parallel>], iteration_bounds = array<i64: 1>, scalar_prefetch = 0 : i64, scratch_operands = 0 : i64, tpu.core_type = #tpu.core_type<tc>, window_params = [{transform_indices = @transform_0, window_bounds = array<i64: 32, 32>}, {transform_indices = @transform_1, window_bounds = array<i64: 32, 32>}, {transform_indices = @transform_2, window_bounds = array<i64: 32, 32>}, {pipeline_mode = #tpu.pipeline_mode<synchronous>, transform_indices = @transform_3, window_bounds = array<i64: 32, 32>}, {pipeline_mode = #tpu.pipeline_mode<synchronous>, transform_indices = @transform_4, window_bounds = array<i64: 32, 32>}, {pipeline_mode = #tpu.pipeline_mode<synchronous>, transform_indices = @transform_5, window_bounds = array<i64: 32, 32>}, {pipeline_mode = #tpu.pipeline_mode<synchronous>, transform_indices = @transform_6, window_bounds = array<i64: 1, 32>}, {pipeline_mode = #tpu.pipeline_mode<synchronous>, transform_indices = @transform_7, window_bounds = array<i64: 1, 32>}, {pipeline_mode = #tpu.pipeline_mode<synchronous>, transform_indices = @transform_8, window_bounds = array<i64: 1, 32>}, {pipeline_mode = #tpu.pipeline_mode<synchronous>, transform_indices = @transform_9, window_bounds = array<i64: 32, 32>}, {pipeline_mode = #tpu.pipeline_mode<synchronous>, transform_indices = @transform_10, window_bounds = array<i64: 1, 32>}, {pipeline_mode = #tpu.pipeline_mode<synchronous>, transform_indices = @transform_11, window_bounds = array<i64: 8, 8>}, {transform_indices = @transform_12, window_bounds = array<i64: 32, 32>}, {transform_indices = @transform_13, window_bounds = array<i64: 4, 4, 8, 8>}]} {
    %c0 = arith.constant 0 : index
    %c0_0 = arith.constant 0 : index
    %0 = vector.load %arg1[%c0, %c0_0] : memref<32x32xbf16, #tpu.memory_space<vmem>>, vector<32x32xbf16>
    %c0_1 = arith.constant 0 : index
    %c0_2 = arith.constant 0 : index
    %1 = vector.load %arg4[%c0_1, %c0_2] : memref<32x32xbf16, #tpu.memory_space<vmem>>, vector<32x32xbf16>
    %cst = arith.constant dense<0.000000e+00> : vector<32x32xf32>
    %2 = tpu.matmul %0, %1, %cst {dimension_numbers = #tpu.dot_dimension_numbers<[1], [0], [0], [1], [0, 0, 1, 1], [], []>} : vector<32x32xbf16>, vector<32x32xbf16>, vector<32x32xf32> -> vector<32x32xf32>
    %c0_3 = arith.constant 0 : index
    %c0_4 = arith.constant 0 : index
    %3 = vector.load %arg7[%c0_3, %c0_4] : memref<1x32xf32, #tpu.memory_space<vmem>>, vector<1x32xf32>
    %4 = vector.broadcast %3 : vector<1x32xf32> to vector<32x32xf32>
    %5 = arith.addf %2, %4 : vector<32x32xf32>
    %c0_5 = arith.constant 0 : index
    %c0_6 = arith.constant 0 : index
    %6 = vector.load %arg2[%c0_5, %c0_6] : memref<32x32xbf16, #tpu.memory_space<vmem>>, vector<32x32xbf16>
    %c0_7 = arith.constant 0 : index
    %c0_8 = arith.constant 0 : index
    %7 = vector.load %arg5[%c0_7, %c0_8] : memref<32x32xbf16, #tpu.memory_space<vmem>>, vector<32x32xbf16>
    %cst_9 = arith.constant dense<0.000000e+00> : vector<32x32xf32>
    %8 = tpu.matmul %6, %7, %cst_9 {dimension_numbers = #tpu.dot_dimension_numbers<[1], [0], [0], [1], [0, 0, 1, 1], [], []>} : vector<32x32xbf16>, vector<32x32xbf16>, vector<32x32xf32> -> vector<32x32xf32>
    %c0_10 = arith.constant 0 : index
    %c0_11 = arith.constant 0 : index
    %9 = vector.load %arg8[%c0_10, %c0_11] : memref<1x32xf32, #tpu.memory_space<vmem>>, vector<1x32xf32>
    %10 = vector.broadcast %9 : vector<1x32xf32> to vector<32x32xf32>
    %11 = arith.addf %8, %10 : vector<32x32xf32>
    %c0_12 = arith.constant 0 : index
    %c0_13 = arith.constant 0 : index
    %12 = vector.load %arg3[%c0_12, %c0_13] : memref<32x32xbf16, #tpu.memory_space<vmem>>, vector<32x32xbf16>
    %c0_14 = arith.constant 0 : index
    %c0_15 = arith.constant 0 : index
    %13 = vector.load %arg6[%c0_14, %c0_15] : memref<32x32xbf16, #tpu.memory_space<vmem>>, vector<32x32xbf16>
    %cst_16 = arith.constant dense<0.000000e+00> : vector<32x32xf32>
    %14 = tpu.matmul %12, %13, %cst_16 {dimension_numbers = #tpu.dot_dimension_numbers<[1], [0], [0], [1], [0, 0, 1, 1], [], []>} : vector<32x32xbf16>, vector<32x32xbf16>, vector<32x32xf32> -> vector<32x32xf32>
    %c0_17 = arith.constant 0 : index
    %c0_18 = arith.constant 0 : index
    %15 = vector.load %arg9[%c0_17, %c0_18] : memref<1x32xf32, #tpu.memory_space<vmem>>, vector<1x32xf32>
    %16 = vector.broadcast %15 : vector<1x32xf32> to vector<32x32xf32>
    %17 = arith.addf %14, %16 : vector<32x32xf32>
    %18 = vector.shape_cast %5 : vector<32x32xf32> to vector<4x8x32xf32>
    %19 = vector.extract_strided_slice %18 {offsets = [0, 0, 0], sizes = [4, 8, 8], strides = [1, 1, 1]} : vector<4x8x32xf32> to vector<4x8x8xf32>
    %20 = vector.extract_strided_slice %18 {offsets = [0, 0, 8], sizes = [4, 8, 8], strides = [1, 1, 1]} : vector<4x8x32xf32> to vector<4x8x8xf32>
    %21 = vector.extract_strided_slice %18 {offsets = [0, 0, 16], sizes = [4, 8, 8], strides = [1, 1, 1]} : vector<4x8x32xf32> to vector<4x8x8xf32>
    %22 = vector.extract_strided_slice %18 {offsets = [0, 0, 24], sizes = [4, 8, 8], strides = [1, 1, 1]} : vector<4x8x32xf32> to vector<4x8x8xf32>
    %23 = vector.shape_cast %19 : vector<4x8x8xf32> to vector<4x1x8x8xf32>
    %24 = vector.shape_cast %20 : vector<4x8x8xf32> to vector<4x1x8x8xf32>
    %25 = vector.shape_cast %21 : vector<4x8x8xf32> to vector<4x1x8x8xf32>
    %26 = vector.shape_cast %22 : vector<4x8x8xf32> to vector<4x1x8x8xf32>
    %27 = tpu.concatenate %23, %24, %25, %26 in 1 : vector<4x1x8x8xf32>, vector<4x1x8x8xf32>, vector<4x1x8x8xf32>, vector<4x1x8x8xf32> -> vector<4x4x8x8xf32>
    %28 = vector.shape_cast %27 : vector<4x4x8x8xf32> to vector<16x8x8xf32>
    %29 = arith.truncf %28 : vector<16x8x8xf32> to vector<16x8x8xbf16>
    %30 = vector.shape_cast %11 : vector<32x32xf32> to vector<4x8x32xf32>
    %31 = vector.extract_strided_slice %30 {offsets = [0, 0, 0], sizes = [4, 8, 8], strides = [1, 1, 1]} : vector<4x8x32xf32> to vector<4x8x8xf32>
    %32 = vector.extract_strided_slice %30 {offsets = [0, 0, 8], sizes = [4, 8, 8], strides = [1, 1, 1]} : vector<4x8x32xf32> to vector<4x8x8xf32>
    %33 = vector.extract_strided_slice %30 {offsets = [0, 0, 16], sizes = [4, 8, 8], strides = [1, 1, 1]} : vector<4x8x32xf32> to vector<4x8x8xf32>
    %34 = vector.extract_strided_slice %30 {offsets = [0, 0, 24], sizes = [4, 8, 8], strides = [1, 1, 1]} : vector<4x8x32xf32> to vector<4x8x8xf32>
    %35 = vector.shape_cast %31 : vector<4x8x8xf32> to vector<4x1x8x8xf32>
    %36 = vector.shape_cast %32 : vector<4x8x8xf32> to vector<4x1x8x8xf32>
    %37 = vector.shape_cast %33 : vector<4x8x8xf32> to vector<4x1x8x8xf32>
    %38 = vector.shape_cast %34 : vector<4x8x8xf32> to vector<4x1x8x8xf32>
    %39 = tpu.concatenate %35, %36, %37, %38 in 1 : vector<4x1x8x8xf32>, vector<4x1x8x8xf32>, vector<4x1x8x8xf32>, vector<4x1x8x8xf32> -> vector<4x4x8x8xf32>
    %40 = vector.shape_cast %39 : vector<4x4x8x8xf32> to vector<16x8x8xf32>
    %41 = arith.truncf %40 : vector<16x8x8xf32> to vector<16x8x8xbf16>
    %42 = vector.shape_cast %17 : vector<32x32xf32> to vector<4x8x32xf32>
    %43 = vector.extract_strided_slice %42 {offsets = [0, 0, 0], sizes = [4, 8, 8], strides = [1, 1, 1]} : vector<4x8x32xf32> to vector<4x8x8xf32>
    %44 = vector.extract_strided_slice %42 {offsets = [0, 0, 8], sizes = [4, 8, 8], strides = [1, 1, 1]} : vector<4x8x32xf32> to vector<4x8x8xf32>
    %45 = vector.extract_strided_slice %42 {offsets = [0, 0, 16], sizes = [4, 8, 8], strides = [1, 1, 1]} : vector<4x8x32xf32> to vector<4x8x8xf32>
    %46 = vector.extract_strided_slice %42 {offsets = [0, 0, 24], sizes = [4, 8, 8], strides = [1, 1, 1]} : vector<4x8x32xf32> to vector<4x8x8xf32>
    %47 = vector.shape_cast %43 : vector<4x8x8xf32> to vector<4x1x8x8xf32>
    %48 = vector.shape_cast %44 : vector<4x8x8xf32> to vector<4x1x8x8xf32>
    %49 = vector.shape_cast %45 : vector<4x8x8xf32> to vector<4x1x8x8xf32>
    %50 = vector.shape_cast %46 : vector<4x8x8xf32> to vector<4x1x8x8xf32>
    %51 = tpu.concatenate %47, %48, %49, %50 in 1 : vector<4x1x8x8xf32>, vector<4x1x8x8xf32>, vector<4x1x8x8xf32>, vector<4x1x8x8xf32> -> vector<4x4x8x8xf32>
    %52 = vector.shape_cast %51 : vector<4x4x8x8xf32> to vector<16x8x8xf32>
    %53 = arith.truncf %52 : vector<16x8x8xf32> to vector<16x8x8xbf16>
    "tpu.trace_start"() <{level = 10 : i32, message = "bld,bsd->bls"}> : () -> ()
    %cst_19 = arith.constant dense<0.000000e+00> : vector<16x8x8xf32>
    %54 = tpu.matmul %29, %41, %cst_19 {dimension_numbers = #tpu.dot_dimension_numbers<[2], [2], [1], [1], [0, 0, 0, 1, 1, 1], [0], [0]>} : vector<16x8x8xbf16>, vector<16x8x8xbf16>, vector<16x8x8xf32> -> vector<16x8x8xf32>
    "tpu.trace_stop"() : () -> ()
    %c0_20 = arith.constant 0 : index
    %c0_21 = arith.constant 0 : index
    %55 = vector.load %arg12[%c0_20, %c0_21] : memref<8x8xf32, #tpu.memory_space<vmem>>, vector<8x8xf32>
    %56 = vector.shape_cast %55 : vector<8x8xf32> to vector<1x8x8xf32>
    %57 = vector.broadcast %56 : vector<1x8x8xf32> to vector<16x8x8xf32>
    %58 = arith.addf %54, %57 : vector<16x8x8xf32>
    %cst_22 = arith.constant dense<0xFF800000> : vector<16x8xf32>
    %59 = vector.multi_reduction <maximumf>, %58, %cst_22 [2] : vector<16x8x8xf32> to vector<16x8xf32>
    %60 = vector.shape_cast %59 : vector<16x8xf32> to vector<16x8x1xf32>
    %61 = vector.broadcast %60 : vector<16x8x1xf32> to vector<16x8x8xf32>
    %62 = arith.subf %58, %61 : vector<16x8x8xf32>
    %63 = math.exp %62 : vector<16x8x8xf32>
    %cst_23 = arith.constant dense<0.000000e+00> : vector<16x8xf32>
    %64 = vector.multi_reduction <add>, %63, %cst_23 [2] : vector<16x8x8xf32> to vector<16x8xf32>
    %65 = vector.shape_cast %64 : vector<16x8xf32> to vector<16x8x1xf32>
    %66 = tpu.reciprocal %65 {approx = true} : vector<16x8x1xf32> -> vector<16x8x1xf32>
    %67 = vector.broadcast %66 : vector<16x8x1xf32> to vector<16x8x8xf32>
    %68 = arith.mulf %63, %67 : vector<16x8x8xf32>
    %69 = vector.shape_cast %68 : vector<16x8x8xf32> to vector<4x4x8x8xf32>
    %c0_24 = arith.constant 0 : index
    %c0_25 = arith.constant 0 : index
    %c0_26 = arith.constant 0 : index
    %c0_27 = arith.constant 0 : index
    %70 = vector.load %arg14[%c0_24, %c0_25, %c0_26, %c0_27] : memref<4x4x8x8xf32, #tpu.memory_space<vmem>>, vector<4x4x8x8xf32>
    tpu.vector_store %arg14[%c0_24, %c0_25, %c0_26, %c0_27], %69 {strides = array<i32>} : memref<4x4x8x8xf32, #tpu.memory_space<vmem>>, vector<4x4x8x8xf32>,
    %71 = arith.truncf %68 : vector<16x8x8xf32> to vector<16x8x8xbf16>
    "tpu.trace_start"() <{level = 10 : i32, message = "bls,bsd->bld"}> : () -> ()
    %cst_28 = arith.constant dense<0.000000e+00> : vector<16x8x8xf32>
    %72 = tpu.matmul %71, %53, %cst_28 {dimension_numbers = #tpu.dot_dimension_numbers<[2], [1], [1], [2], [0, 0, 0, 1, 1, 2], [0], [0]>} : vector<16x8x8xbf16>, vector<16x8x8xbf16>, vector<16x8x8xf32> -> vector<16x8x8xf32>
    "tpu.trace_stop"() : () -> ()
    %73 = vector.shape_cast %72 : vector<16x8x8xf32> to vector<4x4x8x8xf32>
    %74 = vector.extract_strided_slice %73 {offsets = [0, 0, 0, 0], sizes = [4, 1, 8, 8], strides = [1, 1, 1, 1]} : vector<4x4x8x8xf32> to vector<4x1x8x8xf32>
    %75 = vector.shape_cast %74 : vector<4x1x8x8xf32> to vector<4x8x8xf32>
    %76 = vector.extract_strided_slice %73 {offsets = [0, 1, 0, 0], sizes = [4, 1, 8, 8], strides = [1, 1, 1, 1]} : vector<4x4x8x8xf32> to vector<4x1x8x8xf32>
    %77 = vector.shape_cast %76 : vector<4x1x8x8xf32> to vector<4x8x8xf32>
    %78 = vector.extract_strided_slice %73 {offsets = [0, 2, 0, 0], sizes = [4, 1, 8, 8], strides = [1, 1, 1, 1]} : vector<4x4x8x8xf32> to vector<4x1x8x8xf32>
    %79 = vector.shape_cast %78 : vector<4x1x8x8xf32> to vector<4x8x8xf32>
    %80 = vector.extract_strided_slice %73 {offsets = [0, 3, 0, 0], sizes = [4, 1, 8, 8], strides = [1, 1, 1, 1]} : vector<4x4x8x8xf32> to vector<4x1x8x8xf32>
    %81 = vector.shape_cast %80 : vector<4x1x8x8xf32> to vector<4x8x8xf32>
    %82 = tpu.concatenate %75, %77, %79, %81 in 2 : vector<4x8x8xf32>, vector<4x8x8xf32>, vector<4x8x8xf32>, vector<4x8x8xf32> -> vector<4x8x32xf32>
    %83 = vector.shape_cast %82 : vector<4x8x32xf32> to vector<32x32xf32>
    %84 = arith.truncf %83 : vector<32x32xf32> to vector<32x32xbf16>
    %c0_29 = arith.constant 0 : index
    %c0_30 = arith.constant 0 : index
    %85 = vector.load %arg10[%c0_29, %c0_30] : memref<32x32xbf16, #tpu.memory_space<vmem>>, vector<32x32xbf16>
    %cst_31 = arith.constant dense<0.000000e+00> : vector<32x32xf32>
    %86 = tpu.matmul %84, %85, %cst_31 {dimension_numbers = #tpu.dot_dimension_numbers<[1], [0], [0], [1], [0, 0, 1, 1], [], []>} : vector<32x32xbf16>, vector<32x32xbf16>, vector<32x32xf32> -> vector<32x32xf32>
    %c0_32 = arith.constant 0 : index
    %c0_33 = arith.constant 0 : index
    %87 = vector.load %arg11[%c0_32, %c0_33] : memref<1x32xf32, #tpu.memory_space<vmem>>, vector<1x32xf32>
    %88 = vector.broadcast %87 : vector<1x32xf32> to vector<32x32xf32>
    %89 = arith.addf %86, %88 : vector<32x32xf32>
    %c0_34 = arith.constant 0 : index
    %c0_35 = arith.constant 0 : index
    %90 = vector.load %arg13[%c0_34, %c0_35] : memref<32x32xf32, #tpu.memory_space<vmem>>, vector<32x32xf32>
    tpu.vector_store %arg13[%c0_34, %c0_35], %89 {strides = array<i32>} : memref<32x32xf32, #tpu.memory_space<vmem>>, vector<32x32xf32>,
    return
  }
  func.func @transform_0(%arg0: i32) -> (i32, i32) {
    %c0_i32 = arith.constant 0 : i32
    %c0_i32_0 = arith.constant 0 : i32
    return %arg0, %c0_i32 : i32, i32
  }
  func.func @transform_1(%arg0: i32) -> (i32, i32) {
    %c0_i32 = arith.constant 0 : i32
    %c0_i32_0 = arith.constant 0 : i32
    return %arg0, %c0_i32 : i32, i32
  }
  func.func @transform_2(%arg0: i32) -> (i32, i32) {
    %c0_i32 = arith.constant 0 : i32
    %c0_i32_0 = arith.constant 0 : i32
    return %arg0, %c0_i32 : i32, i32
  }
  func.func @transform_3(%arg0: i32) -> (i32, i32) {
    %c0_i32 = arith.constant 0 : i32
    %c0_i32_0 = arith.constant 0 : i32
    %c0_i32_1 = arith.constant 0 : i32
    return %c0_i32, %c0_i32_0 : i32, i32
  }
  func.func @transform_4(%arg0: i32) -> (i32, i32) {
    %c0_i32 = arith.constant 0 : i32
    %c0_i32_0 = arith.constant 0 : i32
    %c0_i32_1 = arith.constant 0 : i32
    return %c0_i32, %c0_i32_0 : i32, i32
  }
  func.func @transform_5(%arg0: i32) -> (i32, i32) {
    %c0_i32 = arith.constant 0 : i32
    %c0_i32_0 = arith.constant 0 : i32
    %c0_i32_1 = arith.constant 0 : i32
    return %c0_i32, %c0_i32_0 : i32, i32
  }
  func.func @transform_6(%arg0: i32) -> (i32, i32) {
    %c0_i32 = arith.constant 0 : i32
    %c0_i32_0 = arith.constant 0 : i32
    %c0_i32_1 = arith.constant 0 : i32
    return %c0_i32, %c0_i32_0 : i32, i32
  }
  func.func @transform_7(%arg0: i32) -> (i32, i32) {
    %c0_i32 = arith.constant 0 : i32
    %c0_i32_0 = arith.constant 0 : i32
    %c0_i32_1 = arith.constant 0 : i32
    return %c0_i32, %c0_i32_0 : i32, i32
  }
  func.func @transform_8(%arg0: i32) -> (i32, i32) {
    %c0_i32 = arith.constant 0 : i32
    %c0_i32_0 = arith.constant 0 : i32
    %c0_i32_1 = arith.constant 0 : i32
    return %c0_i32, %c0_i32_0 : i32, i32
  }
  func.func @transform_9(%arg0: i32) -> (i32, i32) {
    %c0_i32 = arith.constant 0 : i32
    %c0_i32_0 = arith.constant 0 : i32
    %c0_i32_1 = arith.constant 0 : i32
    return %c0_i32, %c0_i32_0 : i32, i32
  }
  func.func @transform_10(%arg0: i32) -> (i32, i32) {
    %c0_i32 = arith.constant 0 : i32
    %c0_i32_0 = arith.constant 0 : i32
    %c0_i32_1 = arith.constant 0 : i32
    return %c0_i32, %c0_i32_0 : i32, i32
  }
  func.func @transform_11(%arg0: i32) -> (i32, i32) {
    %c0_i32 = arith.constant 0 : i32
    %c0_i32_0 = arith.constant 0 : i32
    %c0_i32_1 = arith.constant 0 : i32
    return %c0_i32, %c0_i32_0 : i32, i32
  }
  func.func @transform_12(%arg0: i32) -> (i32, i32) {
    %c0_i32 = arith.constant 0 : i32
    %c0_i32_0 = arith.constant 0 : i32
    return %arg0, %c0_i32 : i32, i32
  }
  func.func @transform_13(%arg0: i32) -> (i32, i32, i32, i32) {
    %c0_i32 = arith.constant 0 : i32
    %c0_i32_0 = arith.constant 0 : i32
    %c0_i32_1 = arith.constant 0 : i32
    %c0_i32_2 = arith.constant 0 : i32
    return %arg0, %c0_i32, %c0_i32_0, %c0_i32_1 : i32, i32, i32, i32
  }
}

module attributes {stable_mosaic.version = 11 : i64} {
  func.func @_mha_kernel(%arg0: i32, %arg1: memref<32x32xbf16, #tpu.memory_space<vmem>>, %arg2: memref<32x32xbf16, #tpu.memory_space<vmem>>, %arg3: memref<32x32xbf16, #tpu.memory_space<vmem>>, %arg4: memref<32x32xbf16, #tpu.memory_space<vmem>>, %arg5: memref<32x32xbf16, #tpu.memory_space<vmem>>, %arg6: memref<32x32xbf16, #tpu.memory_space<vmem>>, %arg7: memref<1x32xf32, #tpu.memory_space<vmem>>, %arg8: memref<1x32xf32, #tpu.memory_space<vmem>>, %arg9: memref<1x32xf32, #tpu.memory_space<vmem>>, %arg10: memref<32x32xbf16, #tpu.memory_space<vmem>>, %arg11: memref<1x32xf32, #tpu.memory_space<vmem>>, %arg12: memref<8x8xf32, #tpu.memory_space<vmem>>, %arg13: memref<32x32xf32, #tpu.memory_space<vmem>>, %arg14: memref<4x4x8x8xf32, #tpu.memory_space<vmem>>) attributes {dimension_semantics = [#tpu.dimension_semantics<parallel>], iteration_bounds = array<i64: 1>, scalar_prefetch = 0 : i64, scratch_operands = 0 : i64, tpu.core_type = #tpu.core_type<tc>, window_params = [{transform_indices = @transform_0, window_bounds = array<i64: 32, 32>}, {transform_indices = @transform_1, window_bounds = array<i64: 32, 32>}, {transform_indices = @transform_2, window_bounds = array<i64: 32, 32>}, {pipeline_mode = #tpu.pipeline_mode<synchronous>, transform_indices = @transform_3, window_bounds = array<i64: 32, 32>}, {pipeline_mode = #tpu.pipeline_mode<synchronous>, transform_indices = @transform_4, window_bounds = array<i64: 32, 32>}, {pipeline_mode = #tpu.pipeline_mode<synchronous>, transform_indices = @transform_5, window_bounds = array<i64: 32, 32>}, {pipeline_mode = #tpu.pipeline_mode<synchronous>, transform_indices = @transform_6, window_bounds = array<i64: 1, 32>}, {pipeline_mode = #tpu.pipeline_mode<synchronous>, transform_indices = @transform_7, window_bounds = array<i64: 1, 32>}, {pipeline_mode = #tpu.pipeline_mode<synchronous>, transform_indices = @transform_8, window_bounds = array<i64: 1, 32>}, {pipeline_mode = #tpu.pipeline_mode<synchronous>, transform_indices = @transform_9, window_bounds = array<i64: 32, 32>}, {pipeline_mode = #tpu.pipeline_mode<synchronous>, transform_indices = @transform_10, window_bounds = array<i64: 1, 32>}, {pipeline_mode = #tpu.pipeline_mode<synchronous>, transform_indices = @transform_11, window_bounds = array<i64: 8, 8>}, {transform_indices = @transform_12, window_bounds = array<i64: 32, 32>}, {transform_indices = @transform_13, window_bounds = array<i64: 4, 4, 8, 8>}]} {
    %c0 = arith.constant 0 : index
    %c0_0 = arith.constant 0 : index
    %0 = vector.load %arg1[%c0, %c0_0] : memref<32x32xbf16, #tpu.memory_space<vmem>>, vector<32x32xbf16>
    %c0_1 = arith.constant 0 : index
    %c0_2 = arith.constant 0 : index
    %1 = vector.load %arg4[%c0_1, %c0_2] : memref<32x32xbf16, #tpu.memory_space<vmem>>, vector<32x32xbf16>
    %cst = arith.constant dense<0.000000e+00> : vector<32x32xf32>
    %2 = tpu.matmul %0, %1, %cst {dimension_numbers = #tpu.dot_dimension_numbers<[1], [0], [0], [1], [0, 0, 1, 1], [], []>} : vector<32x32xbf16>, vector<32x32xbf16>, vector<32x32xf32> -> vector<32x32xf32>
    %c0_3 = arith.constant 0 : index
    %c0_4 = arith.constant 0 : index
    %3 = vector.load %arg7[%c0_3, %c0_4] : memref<1x32xf32, #tpu.memory_space<vmem>>, vector<1x32xf32>
    %4 = vector.broadcast %3 : vector<1x32xf32> to vector<32x32xf32>
    %5 = arith.addf %2, %4 : vector<32x32xf32>
    %c0_5 = arith.constant 0 : index
    %c0_6 = arith.constant 0 : index
    %6 = vector.load %arg2[%c0_5, %c0_6] : memref<32x32xbf16, #tpu.memory_space<vmem>>, vector<32x32xbf16>
    %c0_7 = arith.constant 0 : index
    %c0_8 = arith.constant 0 : index
    %7 = vector.load %arg5[%c0_7, %c0_8] : memref<32x32xbf16, #tpu.memory_space<vmem>>, vector<32x32xbf16>
    %cst_9 = arith.constant dense<0.000000e+00> : vector<32x32xf32>
    %8 = tpu.matmul %6, %7, %cst_9 {dimension_numbers = #tpu.dot_dimension_numbers<[1], [0], [0], [1], [0, 0, 1, 1], [], []>} : vector<32x32xbf16>, vector<32x32xbf16>, vector<32x32xf32> -> vector<32x32xf32>
    %c0_10 = arith.constant 0 : index
    %c0_11 = arith.constant 0 : index
    %9 = vector.load %arg8[%c0_10, %c0_11] : memref<1x32xf32, #tpu.memory_space<vmem>>, vector<1x32xf32>
    %10 = vector.broadcast %9 : vector<1x32xf32> to vector<32x32xf32>
    %11 = arith.addf %8, %10 : vector<32x32xf32>
    %c0_12 = arith.constant 0 : index
    %c0_13 = arith.constant 0 : index
    %12 = vector.load %arg3[%c0_12, %c0_13] : memref<32x32xbf16, #tpu.memory_space<vmem>>, vector<32x32xbf16>
    %c0_14 = arith.constant 0 : index
    %c0_15 = arith.constant 0 : index
    %13 = vector.load %arg6[%c0_14, %c0_15] : memref<32x32xbf16, #tpu.memory_space<vmem>>, vector<32x32xbf16>
    %cst_16 = arith.constant dense<0.000000e+00> : vector<32x32xf32>
    %14 = tpu.matmul %12, %13, %cst_16 {dimension_numbers = #tpu.dot_dimension_numbers<[1], [0], [0], [1], [0, 0, 1, 1], [], []>} : vector<32x32xbf16>, vector<32x32xbf16>, vector<32x32xf32> -> vector<32x32xf32>
    %c0_17 = arith.constant 0 : index
    %c0_18 = arith.constant 0 : index
    %15 = vector.load %arg9[%c0_17, %c0_18] : memref<1x32xf32, #tpu.memory_space<vmem>>, vector<1x32xf32>
    %16 = vector.broadcast %15 : vector<1x32xf32> to vector<32x32xf32>
    %17 = arith.addf %14, %16 : vector<32x32xf32>
    %18 = vector.shape_cast %5 : vector<32x32xf32> to vector<4x8x32xf32>
    %19 = vector.extract_strided_slice %18 {offsets = [0, 0, 0], sizes = [4, 8, 8], strides = [1, 1, 1]} : vector<4x8x32xf32> to vector<4x8x8xf32>
    %20 = vector.extract_strided_slice %18 {offsets = [0, 0, 8], sizes = [4, 8, 8], strides = [1, 1, 1]} : vector<4x8x32xf32> to vector<4x8x8xf32>
    %21 = vector.extract_strided_slice %18 {offsets = [0, 0, 16], sizes = [4, 8, 8], strides = [1, 1, 1]} : vector<4x8x32xf32> to vector<4x8x8xf32>
    %22 = vector.extract_strided_slice %18 {offsets = [0, 0, 24], sizes = [4, 8, 8], strides = [1, 1, 1]} : vector<4x8x32xf32> to vector<4x8x8xf32>
    %23 = vector.shape_cast %19 : vector<4x8x8xf32> to vector<4x1x8x8xf32>
    %24 = vector.shape_cast %20 : vector<4x8x8xf32> to vector<4x1x8x8xf32>
    %25 = vector.shape_cast %21 : vector<4x8x8xf32> to vector<4x1x8x8xf32>
    %26 = vector.shape_cast %22 : vector<4x8x8xf32> to vector<4x1x8x8xf32>
    %27 = tpu.concatenate %23, %24, %25, %26 in 1 : vector<4x1x8x8xf32>, vector<4x1x8x8xf32>, vector<4x1x8x8xf32>, vector<4x1x8x8xf32> -> vector<4x4x8x8xf32>
    %28 = vector.shape_cast %27 : vector<4x4x8x8xf32> to vector<16x8x8xf32>
    %29 = arith.truncf %28 : vector<16x8x8xf32> to vector<16x8x8xbf16>
    %30 = vector.shape_cast %11 : vector<32x32xf32> to vector<4x8x32xf32>
    %31 = vector.extract_strided_slice %30 {offsets = [0, 0, 0], sizes = [4, 8, 8], strides = [1, 1, 1]} : vector<4x8x32xf32> to vector<4x8x8xf32>
    %32 = vector.extract_strided_slice %30 {offsets = [0, 0, 8], sizes = [4, 8, 8], strides = [1, 1, 1]} : vector<4x8x32xf32> to vector<4x8x8xf32>
    %33 = vector.extract_strided_slice %30 {offsets = [0, 0, 16], sizes = [4, 8, 8], strides = [1, 1, 1]} : vector<4x8x32xf32> to vector<4x8x8xf32>
    %34 = vector.extract_strided_slice %30 {offsets = [0, 0, 24], sizes = [4, 8, 8], strides = [1, 1, 1]} : vector<4x8x32xf32> to vector<4x8x8xf32>
    %35 = vector.shape_cast %31 : vector<4x8x8xf32> to vector<4x1x8x8xf32>
    %36 = vector.shape_cast %32 : vector<4x8x8xf32> to vector<4x1x8x8xf32>
    %37 = vector.shape_cast %33 : vector<4x8x8xf32> to vector<4x1x8x8xf32>
    %38 = vector.shape_cast %34 : vector<4x8x8xf32> to vector<4x1x8x8xf32>
    %39 = tpu.concatenate %35, %36, %37, %38 in 1 : vector<4x1x8x8xf32>, vector<4x1x8x8xf32>, vector<4x1x8x8xf32>, vector<4x1x8x8xf32> -> vector<4x4x8x8xf32>
    %40 = vector.shape_cast %39 : vector<4x4x8x8xf32> to vector<16x8x8xf32>
    %41 = arith.truncf %40 : vector<16x8x8xf32> to vector<16x8x8xbf16>
    %42 = vector.shape_cast %17 : vector<32x32xf32> to vector<4x8x32xf32>
    %43 = vector.extract_strided_slice %42 {offsets = [0, 0, 0], sizes = [4, 8, 8], strides = [1, 1, 1]} : vector<4x8x32xf32> to vector<4x8x8xf32>
    %44 = vector.extract_strided_slice %42 {offsets = [0, 0, 8], sizes = [4, 8, 8], strides = [1, 1, 1]} : vector<4x8x32xf32> to vector<4x8x8xf32>
    %45 = vector.extract_strided_slice %42 {offsets = [0, 0, 16], sizes = [4, 8, 8], strides = [1, 1, 1]} : vector<4x8x32xf32> to vector<4x8x8xf32>
    %46 = vector.extract_strided_slice %42 {offsets = [0, 0, 24], sizes = [4, 8, 8], strides = [1, 1, 1]} : vector<4x8x32xf32> to vector<4x8x8xf32>
    %47 = vector.shape_cast %43 : vector<4x8x8xf32> to vector<4x1x8x8xf32>
    %48 = vector.shape_cast %44 : vector<4x8x8xf32> to vector<4x1x8x8xf32>
    %49 = vector.shape_cast %45 : vector<4x8x8xf32> to vector<4x1x8x8xf32>
    %50 = vector.shape_cast %46 : vector<4x8x8xf32> to vector<4x1x8x8xf32>
    %51 = tpu.concatenate %47, %48, %49, %50 in 1 : vector<4x1x8x8xf32>, vector<4x1x8x8xf32>, vector<4x1x8x8xf32>, vector<4x1x8x8xf32> -> vector<4x4x8x8xf32>
    %52 = vector.shape_cast %51 : vector<4x4x8x8xf32> to vector<16x8x8xf32>
    %53 = arith.truncf %52 : vector<16x8x8xf32> to vector<16x8x8xbf16>
    "tpu.trace_start"() <{level = 10 : i32, message = "bld,bsd->bls"}> : () -> ()
    %cst_19 = arith.constant dense<0.000000e+00> : vector<16x8x8xf32>
    %54 = tpu.matmul %29, %41, %cst_19 {dimension_numbers = #tpu.dot_dimension_numbers<[2], [2], [1], [1], [0, 0, 0, 1, 1, 1], [0], [0]>} : vector<16x8x8xbf16>, vector<16x8x8xbf16>, vector<16x8x8xf32> -> vector<16x8x8xf32>
    "tpu.trace_stop"() : () -> ()
    %c0_20 = arith.constant 0 : index
    %c0_21 = arith.constant 0 : index
    %55 = vector.load %arg12[%c0_20, %c0_21] : memref<8x8xf32, #tpu.memory_space<vmem>>, vector<8x8xf32>
    %56 = vector.shape_cast %55 : vector<8x8xf32> to vector<1x8x8xf32>
    %57 = vector.broadcast %56 : vector<1x8x8xf32> to vector<16x8x8xf32>
    %58 = arith.addf %54, %57 : vector<16x8x8xf32>
    %cst_22 = arith.constant dense<0xFF800000> : vector<16x8xf32>
    %59 = vector.multi_reduction <maximumf>, %58, %cst_22 [2] : vector<16x8x8xf32> to vector<16x8xf32>
    %60 = vector.shape_cast %59 : vector<16x8xf32> to vector<16x8x1xf32>
    %61 = vector.broadcast %60 : vector<16x8x1xf32> to vector<16x8x8xf32>
    %62 = arith.subf %58, %61 : vector<16x8x8xf32>
    %63 = math.exp %62 : vector<16x8x8xf32>
    %cst_23 = arith.constant dense<0.000000e+00> : vector<16x8xf32>
    %64 = vector.multi_reduction <add>, %63, %cst_23 [2] : vector<16x8x8xf32> to vector<16x8xf32>
    %65 = vector.shape_cast %64 : vector<16x8xf32> to vector<16x8x1xf32>
    %66 = tpu.reciprocal %65 {approx = true} : vector<16x8x1xf32> -> vector<16x8x1xf32>
    %67 = vector.broadcast %66 : vector<16x8x1xf32> to vector<16x8x8xf32>
    %68 = arith.mulf %63, %67 : vector<16x8x8xf32>
    %69 = vector.shape_cast %68 : vector<16x8x8xf32> to vector<4x4x8x8xf32>
    %c0_24 = arith.constant 0 : index
    %c0_25 = arith.constant 0 : index
    %c0_26 = arith.constant 0 : index
    %c0_27 = arith.constant 0 : index
    %70 = vector.load %arg14[%c0_24, %c0_25, %c0_26, %c0_27] : memref<4x4x8x8xf32, #tpu.memory_space<vmem>>, vector<4x4x8x8xf32>
    tpu.vector_store %arg14[%c0_24, %c0_25, %c0_26, %c0_27], %69 {strides = array<i32>} : memref<4x4x8x8xf32, #tpu.memory_space<vmem>>, vector<4x4x8x8xf32>,
    %71 = arith.truncf %68 : vector<16x8x8xf32> to vector<16x8x8xbf16>
    "tpu.trace_start"() <{level = 10 : i32, message = "bls,bsd->bld"}> : () -> ()
    %cst_28 = arith.constant dense<0.000000e+00> : vector<16x8x8xf32>
    %72 = tpu.matmul %71, %53, %cst_28 {dimension_numbers = #tpu.dot_dimension_numbers<[2], [1], [1], [2], [0, 0, 0, 1, 1, 2], [0], [0]>} : vector<16x8x8xbf16>, vector<16x8x8xbf16>, vector<16x8x8xf32> -> vector<16x8x8xf32>
    "tpu.trace_stop"() : () -> ()
    %73 = vector.shape_cast %72 : vector<16x8x8xf32> to vector<4x4x8x8xf32>
    %74 = vector.extract_strided_slice %73 {offsets = [0, 0, 0, 0], sizes = [4, 1, 8, 8], strides = [1, 1, 1, 1]} : vector<4x4x8x8xf32> to vector<4x1x8x8xf32>
    %75 = vector.shape_cast %74 : vector<4x1x8x8xf32> to vector<4x8x8xf32>
    %76 = vector.extract_strided_slice %73 {offsets = [0, 1, 0, 0], sizes = [4, 1, 8, 8], strides = [1, 1, 1, 1]} : vector<4x4x8x8xf32> to vector<4x1x8x8xf32>
    %77 = vector.shape_cast %76 : vector<4x1x8x8xf32> to vector<4x8x8xf32>
    %78 = vector.extract_strided_slice %73 {offsets = [0, 2, 0, 0], sizes = [4, 1, 8, 8], strides = [1, 1, 1, 1]} : vector<4x4x8x8xf32> to vector<4x1x8x8xf32>
    %79 = vector.shape_cast %78 : vector<4x1x8x8xf32> to vector<4x8x8xf32>
    %80 = vector.extract_strided_slice %73 {offsets = [0, 3, 0, 0], sizes = [4, 1, 8, 8], strides = [1, 1, 1, 1]} : vector<4x4x8x8xf32> to vector<4x1x8x8xf32>
    %81 = vector.shape_cast %80 : vector<4x1x8x8xf32> to vector<4x8x8xf32>
    %82 = tpu.concatenate %75, %77, %79, %81 in 2 : vector<4x8x8xf32>, vector<4x8x8xf32>, vector<4x8x8xf32>, vector<4x8x8xf32> -> vector<4x8x32xf32>
    %83 = vector.shape_cast %82 : vector<4x8x32xf32> to vector<32x32xf32>
    %84 = arith.truncf %83 : vector<32x32xf32> to vector<32x32xbf16>
    %c0_29 = arith.constant 0 : index
    %c0_30 = arith.constant 0 : index
    %85 = vector.load %arg10[%c0_29, %c0_30] : memref<32x32xbf16, #tpu.memory_space<vmem>>, vector<32x32xbf16>
    %cst_31 = arith.constant dense<0.000000e+00> : vector<32x32xf32>
    %86 = tpu.matmul %84, %85, %cst_31 {dimension_numbers = #tpu.dot_dimension_numbers<[1], [0], [0], [1], [0, 0, 1, 1], [], []>} : vector<32x32xbf16>, vector<32x32xbf16>, vector<32x32xf32> -> vector<32x32xf32>
    %c0_32 = arith.constant 0 : index
    %c0_33 = arith.constant 0 : index
    %87 = vector.load %arg11[%c0_32, %c0_33] : memref<1x32xf32, #tpu.memory_space<vmem>>, vector<1x32xf32>
    %88 = vector.broadcast %87 : vector<1x32xf32> to vector<32x32xf32>
    %89 = arith.addf %86, %88 : vector<32x32xf32>
    %c0_34 = arith.constant 0 : index
    %c0_35 = arith.constant 0 : index
    %90 = vector.load %arg13[%c0_34, %c0_35] : memref<32x32xf32, #tpu.memory_space<vmem>>, vector<32x32xf32>
    tpu.vector_store %arg13[%c0_34, %c0_35], %89 {strides = array<i32>} : memref<32x32xf32, #tpu.memory_space<vmem>>, vector<32x32xf32>,
    return
  }
  func.func @transform_0(%arg0: i32) -> (i32, i32) {
    %c0_i32 = arith.constant 0 : i32
    %c0_i32_0 = arith.constant 0 : i32
    return %arg0, %c0_i32 : i32, i32
  }
  func.func @transform_1(%arg0: i32) -> (i32, i32) {
    %c0_i32 = arith.constant 0 : i32
    %c0_i32_0 = arith.constant 0 : i32
    return %arg0, %c0_i32 : i32, i32
  }
  func.func @transform_2(%arg0: i32) -> (i32, i32) {
    %c0_i32 = arith.constant 0 : i32
    %c0_i32_0 = arith.constant 0 : i32
    return %arg0, %c0_i32 : i32, i32
  }
  func.func @transform_3(%arg0: i32) -> (i32, i32) {
    %c0_i32 = arith.constant 0 : i32
    %c0_i32_0 = arith.constant 0 : i32
    %c0_i32_1 = arith.constant 0 : i32
    return %c0_i32, %c0_i32_0 : i32, i32
  }
  func.func @transform_4(%arg0: i32) -> (i32, i32) {
    %c0_i32 = arith.constant 0 : i32
    %c0_i32_0 = arith.constant 0 : i32
    %c0_i32_1 = arith.constant 0 : i32
    return %c0_i32, %c0_i32_0 : i32, i32
  }
  func.func @transform_5(%arg0: i32) -> (i32, i32) {
    %c0_i32 = arith.constant 0 : i32
    %c0_i32_0 = arith.constant 0 : i32
    %c0_i32_1 = arith.constant 0 : i32
    return %c0_i32, %c0_i32_0 : i32, i32
  }
  func.func @transform_6(%arg0: i32) -> (i32, i32) {
    %c0_i32 = arith.constant 0 : i32
    %c0_i32_0 = arith.constant 0 : i32
    %c0_i32_1 = arith.constant 0 : i32
    return %c0_i32, %c0_i32_0 : i32, i32
  }
  func.func @transform_7(%arg0: i32) -> (i32, i32) {
    %c0_i32 = arith.constant 0 : i32
    %c0_i32_0 = arith.constant 0 : i32
    %c0_i32_1 = arith.constant 0 : i32
    return %c0_i32, %c0_i32_0 : i32, i32
  }
  func.func @transform_8(%arg0: i32) -> (i32, i32) {
    %c0_i32 = arith.constant 0 : i32
    %c0_i32_0 = arith.constant 0 : i32
    %c0_i32_1 = arith.constant 0 : i32
    return %c0_i32, %c0_i32_0 : i32, i32
  }
  func.func @transform_9(%arg0: i32) -> (i32, i32) {
    %c0_i32 = arith.constant 0 : i32
    %c0_i32_0 = arith.constant 0 : i32
    %c0_i32_1 = arith.constant 0 : i32
    return %c0_i32, %c0_i32_0 : i32, i32
  }
  func.func @transform_10(%arg0: i32) -> (i32, i32) {
    %c0_i32 = arith.constant 0 : i32
    %c0_i32_0 = arith.constant 0 : i32
    %c0_i32_1 = arith.constant 0 : i32
    return %c0_i32, %c0_i32_0 : i32, i32
  }
  func.func @transform_11(%arg0: i32) -> (i32, i32) {
    %c0_i32 = arith.constant 0 : i32
    %c0_i32_0 = arith.constant 0 : i32
    %c0_i32_1 = arith.constant 0 : i32
    return %c0_i32, %c0_i32_0 : i32, i32
  }
  func.func @transform_12(%arg0: i32) -> (i32, i32) {
    %c0_i32 = arith.constant 0 : i32
    %c0_i32_0 = arith.constant 0 : i32
    return %arg0, %c0_i32 : i32, i32
  }
  func.func @transform_13(%arg0: i32) -> (i32, i32, i32, i32) {
    %c0_i32 = arith.constant 0 : i32
    %c0_i32_0 = arith.constant 0 : i32
    %c0_i32_1 = arith.constant 0 : i32
    %c0_i32_2 = arith.constant 0 : i32
    return %arg0, %c0_i32, %c0_i32_0, %c0_i32_1 : i32, i32, i32, i32
  }
}

</mosaic_0001>

<bundles_post_ra>
// kernel: tpu_custom_call.1
= control target key start
LH: loop header
LB: loop body
LE: loop exit
PB: predicated region body
PF: predicated region fallthrough
CT: control target
= control target key end

     0   :  { %19 = vsyncpa [#allocation3], 0  ;;  %s4172_s0 = inlined_call_operand.hbm [shape: bf16[32,32], index: 0, kind: input, shape index: {}]   ;;  %s4173_s1 = inlined_call_operand.hbm [shape: bf16[32,32], index: 1, kind: input, shape index: {}]   ;;  %s4174_s2 = inlined_call_operand.hbm [shape: bf16[32,32], index: 2, kind: input, shape index: {}]   ;;  %s4175_s3 = inlined_call_operand.hbm [shape: bf16[32,32], index: 3, kind: input, shape index: {}]   ;;  %s4176_s4 = inlined_call_operand.hbm [shape: bf16[32,32], index: 4, kind: input, shape index: {}]   ;;  %s4177_s5 = inlined_call_operand.hbm [shape: bf16[32,32], index: 5, kind: input, shape index: {}]   ;;  %s4178_s6 = inlined_call_operand.hbm [shape: f32[1,32], index: 6, kind: input, shape index: {}]   ;;  %s4179_s7 = inlined_call_operand.hbm [shape: f32[1,32], index: 7, kind: input, shape index: {}]   ;;  %s4180_s8 = inlined_call_operand.hbm [shape: f32[1,32], index: 8, kind: input, shape index: {}]   ;;  %s4181_s9 = inlined_call_operand.hbm [shape: bf16[32,32], index: 9, kind: input, shape index: {}]   ;;  %s4182_s10 = inlined_call_operand.hbm [shape: f32[1,32], index: 10, kind: input, shape index: {}]   ;;  %s4183_s11 = inlined_call_operand.hbm [shape: f32[8,8], index: 11, kind: input, shape index: {}]   ;;  %s4184_s12 = inlined_call_operand.hbm [shape: f32[32,32], index: 12, kind: output, shape index: {0}]   ;;  %s4185_s13 = inlined_call_operand.hbm [shape: f32[4,4,8,8], index: 13, kind: output, shape index: {1}]  }
   0x1   :  { %20 = vsyncpa [#allocation6], 0 }
   0x2   :  { %21 = vsyncpa [#allocation9], 0 }
   0x3   :  { %22 = vsyncpa [#allocation12], 0 }
   0x4   :  { %23 = vsyncpa [#allocation15], 0 }
   0x5   :  { %24 = vsyncpa [#allocation18], 0 }
   0x6   :  { %25 = vsyncpa [#allocation21], 0 }
   0x7   :  { %26 = vsyncpa [#allocation4], 0 }
   0x8   :  { %27 = vsyncpa [#allocation24], 0  ;;  %s3348_s25 = smov [#allocation5]   ;;  %s3349_s27 = smov [#allocation8]  }
   0x9   :  { %s45_s26 = sshll.u32 %s3348_s25, 4  ;;  %s69_s28 = sshll.u32 %s3349_s27, 4  ;;  %s46_s26 = int_to_ptr.vmem [resolvable:$true] %s45_s26  ;;  %s3443_s28 = int_to_ptr.vmem [resolvable:$true] %s69_s28 }
   0xa   :  { %s3022_s14 = scalar_lea.hbm %s4173_s1, 256 }
   0xb   :  { %p3023_p0 = scmp.ne.s32.totalorder %s4173_s1, %s3022_s14  ;;  %p3026_p1 = scmp.lt.u32.totalorder %s3022_s14, %s4173_s1 }
   0xd   :  { %p3028_p2 = pnand %p3026_p1, %p3023_p0 }
   0xf   :  { %3031 = shalt.err (!%p3028_p2)
}
  0x10   :  { %s3032_s19 = scalar_lea.vmem %s46_s26, 256  ;;  %p3037_p4 = scmp.lt.s32.totalorder %s46_s26, %s46_s26 }
  0x11   :  { %p3033_p3 = scmp.ne.s32.totalorder %s46_s26, %s3032_s19  ;;  %p3038_p5 = scmp.lt.s32.totalorder %s3032_s19, %s3032_s19 }
  0x13   :  { %p3039_p6 = por %p3038_p5, %p3037_p4 }
  0x15   :  { %p3040_p7 = pnand %p3039_p6, %p3033_p3 }
  0x17   :  { %3043 = shalt.err (!%p3040_p7)
}
  0x18   :  { %s3350_s20 = smov 64   ;;  %s3351_s21 = smov 4  }
  0x19   :  { %51 = dma.hbm_to_vmem [thread:$0]  %s4173_s1, 256, %s46_s26, [#allocation6], %s3350_s20, %s3350_s20, %s3351_s21  }
  0x1a   :  { %s3044_s27 = scalar_lea.hbm %s4175_s3, 256 }
  0x1b   :  { %p3045_p8 = scmp.ne.s32.totalorder %s4175_s3, %s3044_s27  ;;  %p3048_p9 = scmp.lt.u32.totalorder %s3044_s27, %s4175_s3 }
  0x1d   :  { %p3050_p10 = pnand %p3048_p9, %p3045_p8 }
  0x1f   :  { %3053 = shalt.err (!%p3050_p10)
}
  0x20   :  { %s3054_s16 = scalar_lea.vmem %s3443_s28, 256  ;;  %p3059_p12 = scmp.lt.s32.totalorder %s3443_s28, %s3443_s28 }
  0x21   :  { %p3055_p11 = scmp.ne.s32.totalorder %s3443_s28, %s3054_s16  ;;  %p3060_p13 = scmp.lt.s32.totalorder %s3054_s16, %s3054_s16 }
  0x23   :  { %p3061_p0 = por %p3060_p13, %p3059_p12 }
  0x25   :  { %p3062_p1 = pnand %p3061_p0, %p3055_p11 }
  0x27   :  { %3065 = shalt.err (!%p3062_p1)
}
  0x28   :  { %75 = dma.hbm_to_vmem [thread:$0]  %s4175_s3, 256, %s3443_s28, [#allocation9], %s3350_s20, %s3350_s20, %s3351_s21  }
  0x29   :  { %s3352_s17 = smov [#allocation11]   ;;  %s3353_s19 = smov [#allocation14]  }
  0x2a   :  { %s93_s18 = sshll.u32 %s3352_s17, 4  ;;  %s116_s22 = sshll.u32 %s3353_s19, 4  ;;  %s94_s18 = int_to_ptr.vmem [resolvable:$true] %s93_s18  ;;  %s117_s22 = int_to_ptr.vmem [resolvable:$true] %s116_s22 }
  0x2b   :  { %s3066_s25 = scalar_lea.hbm %s4177_s5, 256 }
  0x2c   :  { %p3067_p2 = scmp.ne.s32.totalorder %s4177_s5, %s3066_s25  ;;  %p3070_p3 = scmp.lt.u32.totalorder %s3066_s25, %s4177_s5 }
  0x2e   :  { %p3072_p4 = pnand %p3070_p3, %p3067_p2 }
  0x30   :  { %3075 = shalt.err (!%p3072_p4)
}
  0x31   :  { %s3076_s3 = scalar_lea.vmem %s94_s18, 256  ;;  %p3081_p6 = scmp.lt.s32.totalorder %s94_s18, %s94_s18 }
  0x32   :  { %p3077_p5 = scmp.ne.s32.totalorder %s94_s18, %s3076_s3  ;;  %p3082_p7 = scmp.lt.s32.totalorder %s3076_s3, %s3076_s3 }
  0x34   :  { %p3083_p8 = por %p3082_p7, %p3081_p6 }
  0x36   :  { %p3084_p9 = pnand %p3083_p8, %p3077_p5 }
  0x38   :  { %3087 = shalt.err (!%p3084_p9)
}
  0x39   :  { %99 = dma.hbm_to_vmem [thread:$0]  %s4177_s5, 256, %s94_s18, [#allocation12], %s3350_s20, %s3350_s20, %s3351_s21  }
  0x3a   :  { %s3088_s26 = scalar_lea.hbm %s4179_s7, 16 }
  0x3b   :  { %p3089_p10 = scmp.ne.s32.totalorder %s4179_s7, %s3088_s26  ;;  %p3092_p11 = scmp.lt.u32.totalorder %s3088_s26, %s4179_s7 }
  0x3d   :  { %p3094_p12 = pnand %p3092_p11, %p3089_p10 }
  0x3f   :  { %3097 = shalt.err (!%p3094_p12)
}
  0x40   :  { %s3098_s25 = scalar_lea.vmem %s117_s22, 16  ;;  %s3102_s27 = scalar_lea.vmem %s117_s22, 32 }
  0x41   :  { %p3099_p13 = scmp.ne.s32.totalorder %s117_s22, %s3098_s25  ;;  %p3103_p0 = scmp.lt.s32.totalorder %s117_s22, %s117_s22 }
  0x42   :  { %p3104_p1 = scmp.lt.s32.totalorder %s3102_s27, %s3098_s25 }
  0x44   :  { %p3105_p2 = por %p3104_p1, %p3103_p0 }
  0x46   :  { %p3106_p3 = pnand %p3105_p2, %p3099_p13 }
  0x48   :  { %3109 = shalt.err (!%p3106_p3)
}
  0x49   :  { %119 = dma.hbm_to_vmem [thread:$0]  %s4179_s7, 16, %s117_s22, [#allocation15]  }
  0x4a   :  { %s3354_s29 = smov [#allocation17]   ;;  %s3355_s14 = smov [#allocation2]  }
  0x4b   :  { %s135_s30 = sshll.u32 %s3354_s29, 4  ;;  %s33_s3 = sshll.u32 %s3355_s14, 4  ;;  %s136_s30 = int_to_ptr.vmem [resolvable:$true] %s135_s30  ;;  %s3507_s3 = int_to_ptr.vmem [resolvable:$true] %s33_s3 }
  0x4c   :  { %s3110_s16 = scalar_lea.hbm %s4181_s9, 256 }
  0x4d   :  { %p3111_p4 = scmp.ne.s32.totalorder %s4181_s9, %s3110_s16  ;;  %p3114_p5 = scmp.lt.u32.totalorder %s3110_s16, %s4181_s9 }
  0x4f   :  { %p3116_p6 = pnand %p3114_p5, %p3111_p4 }
  0x51   :  { %3119 = shalt.err (!%p3116_p6)
}
  0x52   :  { %s3120_s7 = scalar_lea.vmem %s136_s30, 256  ;;  %p3125_p8 = scmp.lt.s32.totalorder %s136_s30, %s136_s30 }
  0x53   :  { %p3121_p7 = scmp.ne.s32.totalorder %s136_s30, %s3120_s7  ;;  %p3126_p9 = scmp.lt.s32.totalorder %s3120_s7, %s3120_s7 }
  0x55   :  { %p3127_p10 = por %p3126_p9, %p3125_p8 }
  0x57   :  { %p3128_p11 = pnand %p3127_p10, %p3121_p7 }
  0x59   :  { %3131 = shalt.err (!%p3128_p11)
}
  0x5a   :  { %141 = dma.hbm_to_vmem [thread:$0]  %s4181_s9, 256, %s136_s30, [#allocation18], %s3350_s20, %s3350_s20, %s3351_s21  }
  0x5b   :  { %s3132_s27 = scalar_lea.hbm %s4172_s0, 256 }
  0x5c   :  { %p3133_p12 = scmp.ne.s32.totalorder %s4172_s0, %s3132_s27  ;;  %p3136_p13 = scmp.lt.u32.totalorder %s3132_s27, %s4172_s0 }
  0x5e   :  { %p3138_p0 = pnand %p3136_p13, %p3133_p12 }
  0x60   :  { %3141 = shalt.err (!%p3138_p0)
}
  0x61   :  { %s3142_s28 = scalar_lea.vmem %s3507_s3, 256  ;;  %p3147_p2 = scmp.lt.s32.totalorder %s3507_s3, %s3507_s3 }
  0x62   :  { %p3143_p1 = scmp.ne.s32.totalorder %s3507_s3, %s3142_s28  ;;  %p3148_p3 = scmp.lt.s32.totalorder %s3142_s28, %s3142_s28 }
  0x64   :  { %p3149_p4 = por %p3148_p3, %p3147_p2 }
  0x66   :  { %p3150_p5 = pnand %p3149_p4, %p3143_p1 }
  0x68   :  { %3153 = shalt.err (!%p3150_p5)
}
  0x69   :  { %39 = dma.hbm_to_vmem [thread:$0]  %s4172_s0, 256, %s3507_s3, [#allocation3], %s3350_s20, %s3350_s20, %s3351_s21  }
  0x6a   :  { %s3356_s15 = smov [#allocation7]   ;;  %s3357_s1 = smov [#allocation10]  }
  0x6b   :  { %s57_s16 = sshll.u32 %s3356_s15, 4  ;;  %s81_s26 = sshll.u32 %s3357_s1, 4  ;;  %s58_s16 = int_to_ptr.vmem [resolvable:$true] %s57_s16  ;;  %s3544_s26 = int_to_ptr.vmem [resolvable:$true] %s81_s26 }
  0x6c   :  { %s3154_s7 = scalar_lea.hbm %s4174_s2, 256 }
  0x6d   :  { %p3155_p6 = scmp.ne.s32.totalorder %s4174_s2, %s3154_s7  ;;  %p3158_p7 = scmp.lt.u32.totalorder %s3154_s7, %s4174_s2 }
  0x6f   :  { %p3160_p8 = pnand %p3158_p7, %p3155_p6 }
  0x71   :  { %3163 = shalt.err (!%p3160_p8)
}
  0x72   :  { %s3164_s0 = scalar_lea.vmem %s58_s16, 256  ;;  %p3169_p10 = scmp.lt.s32.totalorder %s58_s16, %s58_s16 }
  0x73   :  { %p3165_p9 = scmp.ne.s32.totalorder %s58_s16, %s3164_s0  ;;  %p3170_p11 = scmp.lt.s32.totalorder %s3164_s0, %s3164_s0 }
  0x75   :  { %p3171_p12 = por %p3170_p11, %p3169_p10 }
  0x77   :  { %p3172_p13 = pnand %p3171_p12, %p3165_p9 }
  0x79   :  { %3175 = shalt.err (!%p3172_p13)
}
  0x7a   :  { %63 = dma.hbm_to_vmem [thread:$0]  %s4174_s2, 256, %s58_s16, [#allocation6], %s3350_s20, %s3350_s20, %s3351_s21  }
  0x7b   :  { %s3176_s29 = scalar_lea.hbm %s4176_s4, 256 }
  0x7c   :  { %p3177_p0 = scmp.ne.s32.totalorder %s4176_s4, %s3176_s29  ;;  %p3180_p1 = scmp.lt.u32.totalorder %s3176_s29, %s4176_s4 }
  0x7e   :  { %p3182_p2 = pnand %p3180_p1, %p3177_p0 }
  0x80   :  { %3185 = shalt.err (!%p3182_p2)
}
  0x81   :  { %s3186_s15 = scalar_lea.vmem %s3544_s26, 256  ;;  %p3191_p4 = scmp.lt.s32.totalorder %s3544_s26, %s3544_s26 }
  0x82   :  { %p3187_p3 = scmp.ne.s32.totalorder %s3544_s26, %s3186_s15  ;;  %p3192_p5 = scmp.lt.s32.totalorder %s3186_s15, %s3186_s15 }
  0x84   :  { %p3193_p6 = por %p3192_p5, %p3191_p4 }
  0x86   :  { %p3194_p7 = pnand %p3193_p6, %p3187_p3 }
  0x88   :  { %3197 = shalt.err (!%p3194_p7)
}
  0x89   :  { %87 = dma.hbm_to_vmem [thread:$0]  %s4176_s4, 256, %s3544_s26, [#allocation9], %s3350_s20, %s3350_s20, %s3351_s21  }
  0x8a   :  { %s3358_s1 = smov [#allocation13]   ;;  %s3359_s19 = smov [#allocation16]  }
  0x8b   :  { %s106_s17 = sshll.u32 %s3358_s1, 4  ;;  %s126_s7 = sshll.u32 %s3359_s19, 4  ;;  %s107_s17 = int_to_ptr.vmem [resolvable:$true] %s106_s17  ;;  %s127_s7 = int_to_ptr.vmem [resolvable:$true] %s126_s7 }
  0x8c   :  { %s3198_s24 = scalar_lea.hbm %s4178_s6, 16 }
  0x8d   :  { %p3199_p8 = scmp.ne.s32.totalorder %s4178_s6, %s3198_s24  ;;  %p3202_p9 = scmp.lt.u32.totalorder %s3198_s24, %s4178_s6 }
  0x8f   :  { %p3204_p10 = pnand %p3202_p9, %p3199_p8 }
  0x91   :  { %3207 = shalt.err (!%p3204_p10)
}
  0x92   :  { %s3208_s4 = scalar_lea.vmem %s107_s17, 16  ;;  %s3212_s20 = scalar_lea.vmem %s107_s17, 32 }
  0x93   :  { %p3209_p11 = scmp.ne.s32.totalorder %s107_s17, %s3208_s4  ;;  %p3213_p12 = scmp.lt.s32.totalorder %s107_s17, %s107_s17 }
  0x94   :  { %p3214_p13 = scmp.lt.s32.totalorder %s3212_s20, %s3208_s4 }
  0x96   :  { %p3215_p0 = por %p3214_p13, %p3213_p12 }
  0x98   :  { %p3216_p1 = pnand %p3215_p0, %p3209_p11 }
  0x9a   :  { %3219 = shalt.err (!%p3216_p1)
}
  0x9b   :  { %109 = dma.hbm_to_vmem [thread:$0]  %s4178_s6, 16, %s107_s17, [#allocation12]  }
  0x9c   :  { %s3220_s29 = scalar_lea.hbm %s4180_s8, 16 }
  0x9d   :  { %p3221_p2 = scmp.ne.s32.totalorder %s4180_s8, %s3220_s29  ;;  %p3224_p3 = scmp.lt.u32.totalorder %s3220_s29, %s4180_s8 }
  0x9f   :  { %p3226_p4 = pnand %p3224_p3, %p3221_p2 }
  0xa1   :  { %3229 = shalt.err (!%p3226_p4)
}
  0xa2   :  { %s3230_s15 = scalar_lea.vmem %s127_s7, 16  ;;  %s3234_s2 = scalar_lea.vmem %s127_s7, 32 }
  0xa3   :  { %p3231_p5 = scmp.ne.s32.totalorder %s127_s7, %s3230_s15  ;;  %p3235_p6 = scmp.lt.s32.totalorder %s127_s7, %s127_s7 }
  0xa4   :  { %p3236_p7 = scmp.lt.s32.totalorder %s3234_s2, %s3230_s15 }
  0xa6   :  { %p3237_p8 = por %p3236_p7, %p3235_p6 }
  0xa8   :  { %p3238_p9 = pnand %p3237_p8, %p3231_p5 }
  0xaa   :  { %3241 = shalt.err (!%p3238_p9)
}
  0xab   :  { %129 = dma.hbm_to_vmem [thread:$0]  %s4180_s8, 16, %s127_s7, [#allocation15]  }
  0xac   :  { %s3360_s1 = smov [#allocation19]   ;;  %s3361_s19 = smov [#allocation20]  }
  0xad   :  { %s148_s17 = sshll.u32 %s3360_s1, 4  ;;  %s158_s22 = sshll.u32 %s3361_s19, 4  ;;  %s149_s17 = int_to_ptr.vmem [resolvable:$true] %s148_s17  ;;  %s159_s22 = int_to_ptr.vmem [resolvable:$true] %s158_s22 }
  0xae   :  { %s3242_s25 = scalar_lea.hbm %s4182_s10, 16 }
  0xaf   :  { %p3243_p10 = scmp.ne.s32.totalorder %s4182_s10, %s3242_s25  ;;  %p3246_p11 = scmp.lt.u32.totalorder %s3242_s25, %s4182_s10 }
  0xb1   :  { %p3248_p12 = pnand %p3246_p11, %p3243_p10 }
  0xb3   :  { %3251 = shalt.err (!%p3248_p12)
}
  0xb4   :  { %s3252_s8 = scalar_lea.vmem %s149_s17, 16  ;;  %s3256_s7 = scalar_lea.vmem %s149_s17, 32 }
  0xb5   :  { %p3253_p13 = scmp.ne.s32.totalorder %s149_s17, %s3252_s8  ;;  %p3257_p0 = scmp.lt.s32.totalorder %s149_s17, %s149_s17 }
  0xb6   :  { %p3258_p1 = scmp.lt.s32.totalorder %s3256_s7, %s3252_s8 }
  0xb8   :  { %p3259_p2 = por %p3258_p1, %p3257_p0 }
  0xba   :  { %p3260_p3 = pnand %p3259_p2, %p3253_p13 }
  0xbc   :  { %3263 = shalt.err (!%p3260_p3)
}
  0xbd   :  { %151 = dma.hbm_to_vmem [thread:$0]  %s4182_s10, 16, %s149_s17, [#allocation18]  }
  0xbe   :  { %s3264_s18 = scalar_lea.hbm %s4183_s11, 128 }
  0xbf   :  { %p3265_p4 = scmp.ne.s32.totalorder %s4183_s11, %s3264_s18  ;;  %p3268_p5 = scmp.lt.u32.totalorder %s3264_s18, %s4183_s11 }
  0xc1   :  { %p3270_p6 = pnand %p3268_p5, %p3265_p4 }
  0xc3   :  { %3273 = shalt.err (!%p3270_p6)
}
  0xc4   :  { %s3274_s30 = scalar_lea.vmem %s159_s22, 128  ;;  %p3279_p8 = scmp.lt.s32.totalorder %s159_s22, %s159_s22 }
  0xc5   :  { %p3275_p7 = scmp.ne.s32.totalorder %s159_s22, %s3274_s30  ;;  %p3280_p9 = scmp.lt.s32.totalorder %s3274_s30, %s3274_s30 }
  0xc7   :  { %p3281_p10 = por %p3280_p9, %p3279_p8 }
  0xc9   :  { %p3282_p11 = pnand %p3281_p10, %p3275_p7 }
  0xcb   :  { %3285 = shalt.err (!%p3282_p11)
}
  0xcc   :  { %161 = dma.hbm_to_vmem [thread:$0]  %s4183_s11, 128, %s159_s22, [#allocation21]  }
  0xcd   :  { %3330 = dma.done.wait [#allocation3], 256  }
  0xce   :  { %3331 = vsyncadd [#allocation3], 4294967040 }
  0xcf   :  { %3332 = dma.done.wait [#allocation6], 512  }
  0xd0   :  { %3333 = vsyncadd [#allocation6], 4294966784 }
  0xd1   :  { %3334 = dma.done.wait [#allocation9], 512  }
  0xd2   :  { %3335 = vsyncadd [#allocation9], 4294966784 }
  0xd3   :  { %3336 = dma.done.wait [#allocation12], 272  }
  0xd4   :  { %3337 = vsyncadd [#allocation12], 4294967024 }
  0xd5   :  { %3338 = dma.done.wait [#allocation15], 32  }
  0xd6   :  { %3339 = vsyncadd [#allocation15], 4294967264 }
  0xd7   :  { %3340 = dma.done.wait [#allocation18], 272  }
  0xd8   :  { %3341 = vsyncadd [#allocation18], 4294967024 }
  0xd9   :  { %3342 = dma.done.wait [#allocation21], 128  }
  0xda   :  { %3343 = vsyncadd [#allocation21], 4294967168  ;;  %v2944_v0 = vld [vmem:[#allocation8] sm:$0xff]   ;;  %v2945_v1 = vld [vmem:[#allocation10] sm:$0xff]   ;;  %vm236_vm0 = vcmask 261120   ;;  %v3362_v12 = vmov 0.0  }
  0xdb   :  { %2650 = vmatprep.subr.bf16.mxu0 %v2944_v0  ;;  %v2946_v2 = vld [vmem:[#allocation8 + $0x8] sm:$0xff]   ;;  %2658 = vmatprep.subr.bf16.mxu1 %v2945_v1  ;;  %v2947_v3 = vld [vmem:[#allocation10 + $0x8] sm:$0xff]   ;;  %v2948_v4 = vld [vmem:[#allocation2] sm:$0xff]   ;;  %vm3363_vm1 = vmmov 0   ;;  %s3364_s11 = smov 120   ;;  %vm645_vm2 = vcmask 64512  }
  0xdc   :  { %2651 = vmatpush3.bf16.msra.mxu0 %v2944_v0  ;;  %2659 = vmatpush3.bf16.msra.mxu1 %v2945_v1  ;;  %v2949_v5 = vld [vmem:[#allocation5] sm:$0xff]   ;;  %v2950_v6 = vld [vmem:[#allocation2 + $0x8] sm:$0xff]   ;;  %v2951_v7 = vld [vmem:[#allocation5 + $0x8] sm:$0xff]   ;;  %s3365_s2 = smov 104   ;;  %s3366_s6 = smov 112   ;;  %vm1593_vm3 = vcmask 1043456  }
  0xdd   :  { %2652 = vmatprep.subr.bf16.mxu0 %v2946_v2  ;;  %2660 = vmatprep.subr.bf16.mxu1 %v2947_v3  ;;  %v2952_v8 = vld [vmem:[#allocation11] sm:$0xff]   ;;  %v2953_v9 = vld [vmem:[#allocation11 + $0x8] sm:$0xff]   ;;  %v2954_v10 = vld [vmem:[#allocation7] sm:$0xff]   ;;  %s3367_s16 = smov 8   ;;  %s3368_s1 = smov 16   ;;  %vm2379_vm4 = vcmask 130048  }
  0xde   :  { %2654 = vmatprep.mubr.msk.bf16.mxu0 %vm236_vm0, %v2948_v4  ;;  %2662 = vmatprep.mubr.msk.bf16.mxu1 %vm236_vm0, %v2949_v5  ;;  %v2955_v11 = vld [vmem:[#allocation7 + $0x8] sm:$0xff]   ;;  %v2512_v13 = vld [vmem:[#allocation13] ss:$0 sm:$0xff]  ;;  %v2519_v15 = vld [vmem:[#allocation14] ss:$0 sm:$0xff]  ;;  %s3369_s17 = smov 24  }
  0xdf   :  { %v2526_v35 = vld [vmem:[#allocation16] ss:$0 sm:$0xff]  ;;  %vm2384_vm5 = vcmask 195584   ;;  %s3370_s19 = smov [#allocation23]  }
  0xe0   :  { %2653 = vmatpush3.bf16.msra.mxu0 %v2946_v2  ;;  %2661 = vmatpush3.bf16.msra.mxu1 %v2947_v3  ;;  %s2490_s22 = sshll.u32 %s3370_s19, 4  ;;  %s2491_s22 = int_to_ptr.vmem [resolvable:$true] %s2490_s22 }
  0xe1   :  { %2666 = vmatprep.subr.bf16.mxu0 %v2952_v8  ;;  %2674 = vmatprep.subr.bf16.mxu1 %v3362_v12  ;;  %s3286_s23 = scalar_lea.vmem %s2491_s22, 2048  ;;  %p3291_p13 = scmp.lt.s32.totalorder %s2491_s22, %s2491_s22 }
  0xe2   :  { %p3287_p12 = scmp.ne.s32.totalorder %s2491_s22, %s3286_s23  ;;  %p3292_p0 = scmp.lt.s32.totalorder %s3286_s23, %s3286_s23 }
  0xe3   :  { %2655 = vmatmul.mubr.msk.bf16.vlgmr.msra.gmra.mrb[0].mxu0 %vm236_vm0, %v2950_v6  ;;  %2663 = vmatmul.mubr.msk.bf16.vlgmr.msra.gmra.mrb[0].mxu1 %vm236_vm0, %v2951_v7 }
  0xe4   :  { %2667 = vmatpush3.bf16.msra.mxu0 %v2952_v8  ;;  %2670 = vmatprep.mubr.msk.bf16.mxu0 %vm236_vm0, %v2954_v10  ;;  %p3293_p1 = por %p3292_p0, %p3291_p13 }
  0xe5   :  { %2668 = vmatprep.subr.bf16.mxu0 %v2953_v9  ;;  %2676 = vmatprep.mubr.msk.bf16.mxu1 %vm3363_vm1, %v3362_v12 }
  0xe6   :  { %p3294_p2 = pnand %p3293_p1, %p3287_p12 }
  0xe8   :  { %2669 = vmatpush3.bf16.msra.mxu0 %v2953_v9 }
  0xe9   :  { %2680 = vmatprep.subr.bf16.mxu0 %v3362_v12 }
  0xeb   :  { %2671 = vmatmul.mubr.msk.bf16.vlgmr.msra.gmra.mrb[4].mxu0 %vm236_vm0, %v2955_v11 }
  0xec   :  { %2682 = vmatprep.mubr.msk.bf16.mxu0 %vm3363_vm1, %v3362_v12 }
 0x1b6   :  { %v2656_v14 = vpop.f32.mrb[0].mxu0  ;;  %v2664_v16 = vpop.f32.mrb[0].mxu1 }
 0x1b7   :  { %v277_v17 = vpop.f32.mrb[1].mxu0  ;;  %v369_v19 = vpop.f32.mrb[1].mxu1  ;;  %v3668_v30 = vadd.f32 %v2664_v16, %v2519_v15  ;;  %v3674_v31 = vadd.f32 %v2656_v14, %v2512_v13 }
 0x1b8   :  { %v278_v18 = vadd.f32 %v2512_v13, %v277_v17  ;;  %v2657_v20 = vpop.f32.mrb[2].mxu0  ;;  %v370_v21 = vadd.f32 %v2519_v15, %v369_v19  ;;  %v2665_v22 = vpop.f32.mrb[2].mxu1 }
 0x1b9   :  { %v280_v23 = vpop.f32.mrb[3].mxu0  ;;  %v372_v24 = vpop.f32.mrb[3].mxu1  ;;  %v3684_v32 = vadd.f32 %v2665_v22, %v2519_v15  ;;  %v3690_v33 = vadd.f32 %v2657_v20, %v2512_v13 }
 0x1ba   :  { %480 = vrot.lane.b32.xlu1 %v278_v18, %s3364_s11  ;;  %536 = vrot.lane.b32.xlu0 %v370_v21, %s3364_s11  ;;  %v572_v25 = vpack.c.bf16 %v370_v21, %v370_v21  ;;  %v516_v27 = vpack.c.bf16 %v278_v18, %v278_v18  ;;  %v3649_v28 = vadd.f32 %v2519_v15, %v372_v24 }
 0x1bb   :  { %v3658_v29 = vadd.f32 %v2512_v13, %v280_v23  ;;  %v580_v13 = vpack.c.bf16 %v3668_v30, %v3668_v30  ;;  %v524_v23 = vpack.c.bf16 %v3674_v31, %v3674_v31 }
 0x1bc   :  { %v650_v26 = vsel %vm645_vm2, %v572_v25, 0  ;;  %v576_v58 = vpack.c.bf16 %v3649_v28, %v3649_v28 }
 0x1bd   :  { %2675 = vmatpush3.bf16.xpose.msra.mxu1 %v650_v26  ;;  %v520_v5 = vpack.c.bf16 %v3658_v29, %v3658_v29  ;;  %v1018_v17 = vsel %vm645_vm2, %v580_v13, 0 }
 0x1be   :  { %560 = vrot.lane.b32.xlu1 %v370_v21, %s3365_s2  ;;  %548 = vrot.lane.b32.xlu0 %v370_v21, %s3366_s6  ;;  %v2672_v34 = vpop.f32.mrb[4].mxu0  ;;  %v834_v62 = vsel %vm645_vm2, %v576_v58, 0 }
 0x1bf   :  { %2686 = vmatprep.subr.bf16.mxu1 %v3362_v12  ;;  %v3700_v36 = vadd.f32 %v2672_v34, %v2526_v35  ;;  %v461_v37 = vpop.f32.mrb[5].mxu0 }
 0x1c0   :  { %v3702_v38 = vadd.f32 %v2526_v35, %v461_v37  ;;  %v2673_v39 = vpop.f32.mrb[6].mxu0 }
 0x1c1   :  { %v3704_v40 = vadd.f32 %v2673_v39, %v2526_v35  ;;  %v464_v41 = vpop.f32.mrb[7].mxu0 }
 0x1c2   :  { %504 = vrot.lane.b32.xlu1 %v278_v18, %s3365_s2  ;;  %492 = vrot.lane.b32.xlu0 %v278_v18, %s3366_s6  ;;  %v3706_v42 = vadd.f32 %v2526_v35, %v464_v41 }
 0x1c4   :  { %2677 = vmatmul.mubr.msk.bf16.vlgmr.msra.gmra.mrb[4].mxu1 %vm645_vm2, %v516_v27  ;;  %v3710_v43 = vpack.i.bf16 %v3706_v42, %v3702_v38 }
 0x1c5   :  { %2688 = vmatprep.mubr.msk.bf16.mxu1 %vm3363_vm1, %v3362_v12 }
 0x1c6   :  { %550 = vrot.lane.b32.xlu1 %v3649_v28, %s3366_s6  ;;  %538 = vrot.lane.b32.xlu0 %v3649_v28, %s3364_s11 }
 0x1ca   :  { %562 = vrot.lane.b32.xlu1 %v3649_v28, %s3365_s2  ;;  %482 = vrot.lane.b32.xlu0 %v3658_v29, %s3364_s11 }
 0x1ce   :  { %506 = vrot.lane.b32.xlu1 %v3658_v29, %s3365_s2  ;;  %494 = vrot.lane.b32.xlu0 %v3658_v29, %s3366_s6 }
 0x1d2   :  { %552 = vrot.lane.b32.xlu1 %v3668_v30, %s3366_s6  ;;  %540 = vrot.lane.b32.xlu0 %v3668_v30, %s3364_s11 }
 0x1d6   :  { %564 = vrot.lane.b32.xlu1 %v3668_v30, %s3365_s2  ;;  %484 = vrot.lane.b32.xlu0 %v3674_v31, %s3364_s11  ;;  %v584_v30 = vpack.c.bf16 %v3684_v32, %v3684_v32 }
 0x1d8   :  { %v1202_v39 = vsel %vm645_vm2, %v584_v30, 0 }
 0x1da   :  { %508 = vrot.lane.b32.xlu1 %v3674_v31, %s3365_s2  ;;  %496 = vrot.lane.b32.xlu0 %v3674_v31, %s3366_s6 }
 0x1de   :  { %554 = vrot.lane.b32.xlu1 %v3684_v32, %s3366_s6  ;;  %542 = vrot.lane.b32.xlu0 %v3684_v32, %s3364_s11 }
 0x1e2   :  { %566 = vrot.lane.b32.xlu1 %v3684_v32, %s3365_s2  ;;  %486 = vrot.lane.b32.xlu0 %v3690_v33, %s3364_s11 }
 0x1e6   :  { %510 = vrot.lane.b32.xlu1 %v3690_v33, %s3365_s2  ;;  %498 = vrot.lane.b32.xlu0 %v3690_v33, %s3366_s6 }
 0x1ea   :  { %2905 = vrot.lane.b32.xlu0 %v3710_v43, %s3366_s6  ;;  %2900 = vrot.lane.b32.xlu1 %v3710_v43, %s3364_s11 }
 0x22c   :  { %v481_v44 = vpop.permute.xlu1 %480  ;;  %v537_v45 = vpop.permute.xlu0 %536 }
 0x22d   :  { %v573_v46 = vpack.c.bf16 %v537_v45, %v537_v45  ;;  %v517_v55 = vpack.c.bf16 %v481_v44, %v481_v44 }
 0x22f   :  { %v696_v47 = vsel %vm645_vm2, %v573_v46, 0 }
 0x230   :  { %v561_v48 = vpop.permute.xlu1 %560  ;;  %v549_v49 = vpop.permute.xlu0 %548  ;;  %2681 = vmatpush3.bf16.xpose.msra.mxu0 %v696_v47  ;;  %v528_v47 = vpack.c.bf16 %v3690_v33, %v3690_v33 }
 0x231   :  { %v574_v50 = vpack.c.bf16 %v549_v49, %v549_v49  ;;  %2692 = vmatprep.subr.bf16.mxu0 %v3362_v12  ;;  %v575_v52 = vpack.c.bf16 %v561_v48, %v561_v48 }
 0x233   :  { %v742_v51 = vsel %vm645_vm2, %v574_v50, 0  ;;  %v788_v56 = vsel %vm645_vm2, %v575_v52, 0 }
 0x234   :  { %v505_v53 = vpop.permute.xlu1 %504  ;;  %v493_v54 = vpop.permute.xlu0 %492  ;;  %2687 = vmatpush3.bf16.xpose.msra.mxu1 %v742_v51  ;;  %v628_v51 = vpack.c.bf16 %v3702_v38, %v3702_v38 }
 0x235   :  { %2698 = vmatprep.subr.bf16.mxu1 %v3362_v12  ;;  %v518_v60 = vpack.c.bf16 %v493_v54, %v493_v54  ;;  %v519_v1 = vpack.c.bf16 %v505_v53, %v505_v53 }
 0x236   :  { %v1595_v54 = vsel %vm1593_vm3, %v628_v51, 0 }
 0x237   :  { %2683 = vmatmul.mubr.msk.bf16.vlgmr.msra.gmra.mrb[8].mxu0 %vm645_vm2, %v517_v55 }
 0x238   :  { %v551_v57 = vpop.permute.xlu1 %550  ;;  %v539_v59 = vpop.permute.xlu0 %538  ;;  %2693 = vmatpush3.bf16.xpose.msra.mxu0 %v788_v56  ;;  %2694 = vmatprep.mubr.msk.bf16.mxu0 %vm3363_vm1, %v3362_v12  ;;  %v3807_v56 = vld [vmem:[#allocation20] sm:$0xff] }
 0x239   :  { %2704 = vmatprep.subr.bf16.mxu0 %v3362_v12  ;;  %v577_v61 = vpack.c.bf16 %v539_v59, %v539_v59  ;;  %v578_v3 = vpack.c.bf16 %v551_v57, %v551_v57 }
 0x23b   :  { %2689 = vmatmul.mubr.msk.bf16.vlgmr.msra.gmra.mrb[8].mxu1 %vm645_vm2, %v518_v60  ;;  %v880_v2 = vsel %vm645_vm2, %v577_v61, 0  ;;  %v926_v7 = vsel %vm645_vm2, %v578_v3, 0 }
 0x23c   :  { %v483_v63 = vpop.permute.xlu0 %482  ;;  %v563_v0 = vpop.permute.xlu1 %562  ;;  %2699 = vmatpush3.bf16.xpose.msra.mxu1 %v834_v62  ;;  %2700 = vmatprep.mubr.msk.bf16.mxu1 %vm3363_vm1, %v3362_v12 }
 0x23d   :  { %2710 = vmatprep.subr.bf16.mxu1 %v3362_v12  ;;  %v579_v8 = vpack.c.bf16 %v563_v0, %v563_v0  ;;  %v521_v9 = vpack.c.bf16 %v483_v63, %v483_v63 }
 0x23f   :  { %2695 = vmatmul.mubr.msk.bf16.vlgmr.msra.gmra.mrb[12].mxu0 %vm645_vm2, %v519_v1  ;;  %v972_v11 = vsel %vm645_vm2, %v579_v8, 0 }
 0x240   :  { %v495_v4 = vpop.permute.xlu0 %494  ;;  %2705 = vmatpush3.bf16.xpose.msra.mxu0 %v880_v2  ;;  %2706 = vmatprep.mubr.msk.bf16.mxu0 %vm3363_vm1, %v3362_v12  ;;  %v507_v6 = vpop.permute.xlu1 %506 }
 0x241   :  { %2716 = vmatprep.subr.bf16.mxu0 %v3362_v12  ;;  %v522_v15 = vpack.c.bf16 %v495_v4, %v495_v4  ;;  %v523_v19 = vpack.c.bf16 %v507_v6, %v507_v6 }
 0x243   :  { %2701 = vmatmul.mubr.msk.bf16.vlgmr.msra.gmra.mrb[12].mxu1 %vm645_vm2, %v520_v5 }
 0x244   :  { %2711 = vmatpush3.bf16.xpose.msra.mxu1 %v926_v7  ;;  %2712 = vmatprep.mubr.msk.bf16.mxu1 %vm3363_vm1, %v3362_v12  ;;  %v541_v10 = vpop.permute.xlu0 %540  ;;  %v553_v14 = vpop.permute.xlu1 %552 }
 0x245   :  { %2722 = vmatprep.subr.bf16.mxu1 %v3362_v12  ;;  %v581_v16 = vpack.c.bf16 %v541_v10, %v541_v10  ;;  %v582_v22 = vpack.c.bf16 %v553_v14, %v553_v14 }
 0x247   :  { %2707 = vmatmul.mubr.msk.bf16.vlgmr.msra.gmra.mrb[16].mxu0 %vm645_vm2, %v521_v9  ;;  %v1064_v21 = vsel %vm645_vm2, %v581_v16, 0  ;;  %v1110_v25 = vsel %vm645_vm2, %v582_v22, 0 }
 0x248   :  { %2717 = vmatpush3.bf16.xpose.msra.mxu0 %v972_v11  ;;  %2718 = vmatprep.mubr.msk.bf16.mxu0 %vm3363_vm1, %v3362_v12  ;;  %v485_v18 = vpop.permute.xlu0 %484  ;;  %v565_v20 = vpop.permute.xlu1 %564 }
 0x249   :  { %2728 = vmatprep.subr.bf16.mxu0 %v3362_v12  ;;  %v583_v26 = vpack.c.bf16 %v565_v20, %v565_v20  ;;  %v525_v28 = vpack.c.bf16 %v485_v18, %v485_v18 }
 0x24b   :  { %2713 = vmatmul.mubr.msk.bf16.vlgmr.msra.gmra.mrb[16].mxu1 %vm645_vm2, %v522_v15  ;;  %v1156_v29 = vsel %vm645_vm2, %v583_v26, 0 }
 0x24c   :  { %2723 = vmatpush3.bf16.xpose.msra.mxu1 %v1018_v17  ;;  %2724 = vmatprep.mubr.msk.bf16.mxu1 %vm3363_vm1, %v3362_v12  ;;  %v497_v24 = vpop.permute.xlu0 %496  ;;  %v509_v27 = vpop.permute.xlu1 %508 }
 0x24d   :  { %2734 = vmatprep.subr.bf16.mxu1 %v3362_v12  ;;  %v526_v34 = vpack.c.bf16 %v497_v24, %v497_v24  ;;  %v527_v41 = vpack.c.bf16 %v509_v27, %v509_v27 }
 0x24f   :  { %2719 = vmatmul.mubr.msk.bf16.vlgmr.msra.gmra.mrb[20].mxu0 %vm645_vm2, %v523_v19 }
 0x250   :  { %2729 = vmatpush3.bf16.xpose.msra.mxu0 %v1064_v21  ;;  %2730 = vmatprep.mubr.msk.bf16.mxu0 %vm3363_vm1, %v3362_v12  ;;  %v543_v31 = vpop.permute.xlu0 %542  ;;  %v555_v35 = vpop.permute.xlu1 %554 }
 0x251   :  { %2740 = vmatprep.subr.bf16.mxu0 %v3362_v12  ;;  %v585_v37 = vpack.c.bf16 %v543_v31, %v543_v31  ;;  %v586_v44 = vpack.c.bf16 %v555_v35, %v555_v35 }
 0x253   :  { %2725 = vmatmul.mubr.msk.bf16.vlgmr.msra.gmra.mrb[20].mxu1 %vm645_vm2, %v524_v23  ;;  %v1248_v32 = vsel %vm645_vm2, %v585_v37, 0  ;;  %v1294_v48 = vsel %vm645_vm2, %v586_v44, 0 }
 0x254   :  { %2735 = vmatpush3.bf16.xpose.msra.mxu1 %v1110_v25  ;;  %2736 = vmatprep.mubr.msk.bf16.mxu1 %vm3363_vm1, %v3362_v12  ;;  %v487_v45 = vpop.permute.xlu0 %486  ;;  %v567_v46 = vpop.permute.xlu1 %566 }
 0x255   :  { %2746 = vmatprep.subr.bf16.mxu1 %v3362_v12  ;;  %v587_v49 = vpack.c.bf16 %v567_v46, %v567_v46  ;;  %v529_v50 = vpack.c.bf16 %v487_v45, %v487_v45 }
 0x257   :  { %2731 = vmatmul.mubr.msk.bf16.vlgmr.msra.gmra.mrb[24].mxu0 %vm645_vm2, %v525_v28  ;;  %v1340_v33 = vsel %vm645_vm2, %v587_v49, 0 }
 0x258   :  { %2741 = vmatpush3.bf16.xpose.msra.mxu0 %v1156_v29  ;;  %2742 = vmatprep.mubr.msk.bf16.mxu0 %vm3363_vm1, %v3362_v12  ;;  %v499_v52 = vpop.permute.xlu0 %498  ;;  %v511_v55 = vpop.permute.xlu1 %510 }
 0x259   :  { %2752 = vmatprep.subr.bf16.mxu0 %v3362_v12  ;;  %v530_v53 = vpack.c.bf16 %v499_v52, %v499_v52  ;;  %v531_v38 = vpack.c.bf16 %v511_v55, %v511_v55 }
 0x25b   :  { %2737 = vmatmul.mubr.msk.bf16.vlgmr.msra.gmra.mrb[24].mxu1 %vm645_vm2, %v526_v34 }
 0x25c   :  { %2747 = vmatpush3.bf16.xpose.msra.mxu1 %v1202_v39  ;;  %2748 = vmatprep.mubr.msk.bf16.mxu1 %vm3363_vm1, %v3362_v12  ;;  %v3814_v63 = vpop.permute.xlu1 %2900 }
 0x25d   :  { %2758 = vmatprep.subr.bf16.mxu1 %v3362_v12  ;;  %v2902_v0 = vunpack.i.l.bf16 %v3814_v63 }
 0x25f   :  { %2743 = vmatmul.mubr.msk.bf16.vlgmr.msra.gmra.mrb[28].mxu0 %vm645_vm2, %v527_v41  ;;  %v629_v1 = vpack.c.bf16 %v2902_v0, %v2902_v0 }
 0x260   :  { %2753 = vmatpush3.bf16.xpose.msra.mxu0 %v1248_v32  ;;  %2754 = vmatprep.mubr.msk.bf16.mxu0 %vm3363_vm1, %v3362_v12 }
 0x261   :  { %2764 = vmatprep.subr.bf16.mxu0 %v3362_v12  ;;  %v1641_v2 = vsel %vm1593_vm3, %v629_v1, 0 }
 0x263   :  { %2749 = vmatmul.mubr.msk.bf16.vlgmr.msra.gmra.mrb[28].mxu1 %vm645_vm2, %v528_v47 }
 0x264   :  { %2759 = vmatpush3.bf16.xpose.msra.mxu1 %v1294_v48  ;;  %2760 = vmatprep.mubr.msk.bf16.mxu1 %vm3363_vm1, %v3362_v12 }
 0x265   :  { %2770 = vmatprep.subr.bf16.mxu1 %v3362_v12 }
 0x267   :  { %2755 = vmatmul.mubr.msk.bf16.vlgmr.msra.gmra.mrb[32].mxu0 %vm645_vm2, %v529_v50 }
 0x268   :  { %2765 = vmatpush3.bf16.xpose.msra.mxu0 %v1340_v33  ;;  %2766 = vmatprep.mubr.msk.bf16.mxu0 %vm3363_vm1, %v3362_v12 }
 0x269   :  { %2776 = vmatprep.subr.bf16.mxu0 %v3362_v12 }
 0x26b   :  { %2761 = vmatmul.mubr.msk.bf16.vlgmr.msra.gmra.mrb[32].mxu1 %vm645_vm2, %v530_v53 }
 0x26c   :  { %2771 = vmatpush3.bf16.msra.mxu1 %v1595_v54  ;;  %2772 = vmatprep.mubr.msk.bf16.mxu1 %vm3363_vm1, %v3362_v12 }
 0x26d   :  { %2782 = vmatprep.subr.bf16.mxu1 %v3362_v12 }
 0x26f   :  { %2767 = vmatmul.mubr.msk.bf16.vlgmr.msra.gmra.mrb[36].mxu0 %vm645_vm2, %v531_v38 }
 0x270   :  { %2778 = vmatprep.mubr.msk.bf16.mxu0 %vm3363_vm1, %v3362_v12  ;;  %2777 = vmatpush3.bf16.msra.mxu0 %v1641_v2 }
 0x271   :  { %2788 = vmatprep.subr.bf16.mxu0 %v3362_v12 }
 0x297   :  { %v686_v57 = vpop.f32.mrb[4].mxu1 }
 0x298   :  { %v3810_v58 = vadd.f32 %v686_v57, %v3807_v56  ;;  %v2678_v59 = vpop.f32.mrb[5].mxu1 }
 0x299   :  { %v689_v60 = vpop.f32.mrb[6].mxu1 }
 0x29a   :  { %v2679_v61 = vpop.f32.mrb[7].mxu1  ;;  %v1382_v62 = vsel %vm645_vm2, %v3810_v58, -inf }
 0x29b   :  { %1383 = vmax.xlane.f32.xlu0 %v1382_v62 }
 0x30a   :  { %v732_v3 = vpop.f32.mrb[8].mxu0 }
 0x30b   :  { %v3820_v4 = vadd.f32 %v732_v3, %v3807_v56  ;;  %v2684_v5 = vpop.f32.mrb[9].mxu0 }
 0x30c   :  { %v735_v6 = vpop.f32.mrb[10].mxu0 }
 0x30d   :  { %v2685_v7 = vpop.f32.mrb[11].mxu0  ;;  %v1385_v8 = vsel %vm645_vm2, %v3820_v4, -inf }
 0x30e   :  { %1386 = vmax.xlane.f32.xlu1 %v1385_v8  ;;  %v778_v9 = vpop.f32.mrb[8].mxu1 }
 0x30f   :  { %v3825_v10 = vadd.f32 %v778_v9, %v3807_v56  ;;  %v2690_v11 = vpop.f32.mrb[9].mxu1 }
 0x310   :  { %v781_v13 = vpop.f32.mrb[10].mxu1 }
 0x311   :  { %v2691_v14 = vpop.f32.mrb[11].mxu1  ;;  %v1388_v15 = vsel %vm645_vm2, %v3825_v10, -inf }
 0x312   :  { %v824_v16 = vpop.f32.mrb[12].mxu0  ;;  %1389 = vmax.xlane.f32.xlu0 %v1388_v15 }
 0x313   :  { %v3830_v17 = vadd.f32 %v824_v16, %v3807_v56  ;;  %v2696_v18 = vpop.f32.mrb[13].mxu0 }
 0x314   :  { %v827_v19 = vpop.f32.mrb[14].mxu0 }
 0x315   :  { %v2697_v20 = vpop.f32.mrb[15].mxu0  ;;  %v1391_v21 = vsel %vm645_vm2, %v3830_v17, -inf }
 0x316   :  { %1392 = vmax.xlane.f32.xlu0 %v1391_v21  ;;  %v870_v22 = vpop.f32.mrb[12].mxu1 }
 0x317   :  { %v3835_v23 = vadd.f32 %v870_v22, %v3807_v56  ;;  %v2702_v24 = vpop.f32.mrb[13].mxu1 }
 0x318   :  { %v873_v25 = vpop.f32.mrb[14].mxu1 }
 0x319   :  { %v2703_v26 = vpop.f32.mrb[15].mxu1  ;;  %v1394_v27 = vsel %vm645_vm2, %v3835_v23, -inf }
 0x31a   :  { %v916_v28 = vpop.f32.mrb[16].mxu0  ;;  %1395 = vmax.xlane.f32.xlu1 %v1394_v27 }
 0x31b   :  { %v3840_v29 = vadd.f32 %v916_v28, %v3807_v56  ;;  %v2708_v30 = vpop.f32.mrb[17].mxu0 }
 0x31c   :  { %v919_v31 = vpop.f32.mrb[18].mxu0 }
 0x31d   :  { %v2709_v34 = vpop.f32.mrb[19].mxu0  ;;  %v1397_v35 = vsel %vm645_vm2, %v3840_v29, -inf }
 0x31e   :  { %1398 = vmax.xlane.f32.xlu0 %v1397_v35  ;;  %v962_v37 = vpop.f32.mrb[16].mxu1  ;;  %v3871_v35 = vpop.permute.xlu0 %2905 }
 0x31f   :  { %v3845_v39 = vadd.f32 %v962_v37, %v3807_v56  ;;  %v2714_v41 = vpop.f32.mrb[17].mxu1 }
 0x320   :  { %v965_v32 = vpop.f32.mrb[18].mxu1 }
 0x321   :  { %v2715_v44 = vpop.f32.mrb[19].mxu1  ;;  %v1400_v45 = vsel %vm645_vm2, %v3845_v39, -inf }
 0x322   :  { %v1008_v46 = vpop.f32.mrb[20].mxu0  ;;  %1401 = vmax.xlane.f32.xlu1 %v1400_v45 }
 0x323   :  { %v3850_v47 = vadd.f32 %v1008_v46, %v3807_v56  ;;  %v2720_v48 = vpop.f32.mrb[21].mxu0 }
 0x324   :  { %v1011_v49 = vpop.f32.mrb[22].mxu0 }
 0x325   :  { %v2721_v50 = vpop.f32.mrb[23].mxu0  ;;  %v1403_v51 = vsel %vm645_vm2, %v3850_v47, -inf }
 0x326   :  { %1404 = vmax.xlane.f32.xlu0 %v1403_v51  ;;  %v1054_v52 = vpop.f32.mrb[20].mxu1 }
 0x327   :  { %v3855_v33 = vadd.f32 %v1054_v52, %v3807_v56  ;;  %v2726_v53 = vpop.f32.mrb[21].mxu1 }
 0x328   :  { %v1057_v54 = vpop.f32.mrb[22].mxu1  ;;  %v1384_v37 = vpop.xlane.xlu0 %1383 }
 0x329   :  { %v2727_v55 = vpop.f32.mrb[23].mxu1  ;;  %v1406_v38 = vsel %vm645_vm2, %v3855_v33, -inf  ;;  %v1430_v41 = vsub.f32 %v3810_v58, %v1384_v37 }
 0x32a   :  { %v1100_v57 = vpop.f32.mrb[24].mxu0  ;;  %1407 = vmax.xlane.f32.xlu1 %v1406_v38 }
 0x32b   :  { %v3860_v59 = vadd.f32 %v1100_v57, %v3807_v56  ;;  %v2732_v60 = vpop.f32.mrb[25].mxu0  ;;  %v1446_v32 = vmul.f32 1.442695, %v1430_v41 }
 0x32c   :  { %v1103_v61 = vpop.f32.mrb[26].mxu0 }
 0x32d   :  { %v2733_v62 = vpop.f32.mrb[27].mxu0  ;;  %v1409_v0 = vsel %vm645_vm2, %v3860_v59, -inf  ;;  %2958 = vpow2.f32 %v1446_v32 }
 0x32e   :  { %1410 = vmax.xlane.f32.xlu0 %v1409_v0  ;;  %v1146_v1 = vpop.f32.mrb[24].mxu1 }
 0x32f   :  { %v2738_v2 = vpop.f32.mrb[25].mxu1 }
 0x330   :  { %v1149_v3 = vpop.f32.mrb[26].mxu1 }
 0x331   :  { %v2739_v5 = vpop.f32.mrb[27].mxu1 }
 0x332   :  { %v1192_v6 = vpop.f32.mrb[28].mxu0 }
 0x333   :  { %v3865_v7 = vadd.f32 %v1192_v6, %v3807_v56  ;;  %v2744_v8 = vpop.f32.mrb[29].mxu0 }
 0x334   :  { %v1195_v9 = vpop.f32.mrb[30].mxu0 }
 0x335   :  { %v2745_v11 = vpop.f32.mrb[31].mxu0  ;;  %v1415_v13 = vsel %vm645_vm2, %v3865_v7, -inf }
 0x336   :  { %1416 = vmax.xlane.f32.xlu0 %v1415_v13  ;;  %v1238_v14 = vpop.f32.mrb[28].mxu1 }
 0x337   :  { %v2750_v15 = vpop.f32.mrb[29].mxu1  ;;  %v3880_v44 = vadd.f32 %v1238_v14, %v3807_v56  ;;  %v3886_v48 = vpop.eup %2958 }
 0x338   :  { %v1241_v16 = vpop.f32.mrb[30].mxu1  ;;  %v1478_v50 = vsel %vm645_vm2, %v3886_v48, 0.0 }
 0x339   :  { %v2751_v18 = vpop.f32.mrb[31].mxu1  ;;  %v1418_v46 = vsel %vm645_vm2, %v3880_v44, -inf }
 0x33a   :  { %v1284_v19 = vpop.f32.mrb[32].mxu0 }
 0x33b   :  { %v2756_v20 = vpop.f32.mrb[33].mxu0  ;;  %2910 = vrot.lane.b32.xlu1 %v3710_v43, %s3365_s2  ;;  %v3877_v43 = vadd.f32 %v1146_v1, %v3807_v56  ;;  %v3889_v58 = vadd.f32 %v1284_v19, %v3807_v56 }
 0x33c   :  { %v1287_v21 = vpop.f32.mrb[34].mxu0 }
 0x33d   :  { %v2757_v22 = vpop.f32.mrb[35].mxu0  ;;  %v1412_v45 = vsel %vm645_vm2, %v3877_v43, -inf  ;;  %v1421_v52 = vsel %vm645_vm2, %v3889_v58, -inf }
 0x33e   :  { %v1330_v24 = vpop.f32.mrb[32].mxu1 }
 0x33f   :  { %v2762_v25 = vpop.f32.mrb[33].mxu1  ;;  %v3892_v49 = vadd.f32 %v1330_v24, %v3807_v56 }
 0x340   :  { %v1333_v26 = vpop.f32.mrb[34].mxu1 }
 0x341   :  { %v2763_v27 = vpop.f32.mrb[35].mxu1  ;;  %v1424_v53 = vsel %vm645_vm2, %v3892_v49, -inf }
 0x342   :  { %v1376_v28 = vpop.f32.mrb[36].mxu0 }
 0x343   :  { %v2768_v30 = vpop.f32.mrb[37].mxu0  ;;  %v3897_v51 = vadd.f32 %v1376_v28, %v3807_v56 }
 0x344   :  { %v1379_v31 = vpop.f32.mrb[38].mxu0 }
 0x345   :  { %v2769_v34 = vpop.f32.mrb[39].mxu0  ;;  %v1427_v54 = vsel %vm645_vm2, %v3897_v51, -inf }
 0x34c   :  { %596 = vrot.lane.b32.xlu0 %v3700_v36, %s3364_s11 }
 0x35f   :  { %1413 = vmax.xlane.f32.xlu1 %v1412_v45 }
 0x363   :  { %1419 = vmax.xlane.f32.xlu1 %v1418_v46 }
 0x367   :  { %1479 = vadd.xlane.f32.xlu1 %v1478_v50 }
 0x36b   :  { %1422 = vmax.xlane.f32.xlu0 %v1421_v52  ;;  %1425 = vmax.xlane.f32.xlu1 %v1424_v53 }
 0x36f   :  { %1428 = vmax.xlane.f32.xlu0 %v1427_v54 }
 0x39b   :  { %v1387_v55 = vpop.xlane.xlu1 %1386 }
 0x39c   :  { %v1431_v38 = vsub.f32 %v3820_v4, %v1387_v55 }
 0x39e   :  { %v1448_v57 = vmul.f32 1.442695, %v1431_v38 }
 0x39f   :  { %v1390_v60 = vpop.xlane.xlu0 %1389 }
 0x3a0   :  { %2960 = vpow2.f32 %v1448_v57  ;;  %v1432_v56 = vsub.f32 %v3825_v10, %v1390_v60 }
 0x3a2   :  { %v1450_v61 = vmul.f32 1.442695, %v1432_v56 }
 0x3a3   :  { %v1393_v62 = vpop.xlane.xlu0 %1392 }
 0x3a4   :  { %2962 = vpow2.f32 %v1450_v61  ;;  %v1433_v0 = vsub.f32 %v3830_v17, %v1393_v62 }
 0x3a6   :  { %v1452_v1 = vmul.f32 1.442695, %v1433_v0 }
 0x3a7   :  { %v1396_v2 = vpop.xlane.xlu1 %1395 }
 0x3a8   :  { %2964 = vpow2.f32 %v1452_v1  ;;  %v1434_v3 = vsub.f32 %v3835_v23, %v1396_v2 }
 0x3aa   :  { %v3909_v5 = vpop.eup %2960  ;;  %v1454_v6 = vmul.f32 1.442695, %v1434_v3 }
 0x3ab   :  { %v1399_v8 = vpop.xlane.xlu0 %1398  ;;  %v1481_v4 = vsel %vm645_vm2, %v3909_v5, 0.0 }
 0x3ac   :  { %2966 = vpow2.f32 %v1454_v6  ;;  %v1435_v10 = vsub.f32 %v3840_v29, %v1399_v8  ;;  %1482 = vadd.xlane.f32.xlu0 %v1481_v4  ;;  %v2907_v4 = vunpack.i.l.bf16 %v3871_v35 }
 0x3ae   :  { %v3914_v9 = vpop.eup %2962  ;;  %v1456_v11 = vmul.f32 1.442695, %v1435_v10 }
 0x3af   :  { %v1402_v17 = vpop.xlane.xlu1 %1401  ;;  %v1484_v13 = vsel %vm645_vm2, %v3914_v9, 0.0 }
 0x3b0   :  { %2968 = vpow2.f32 %v1456_v11  ;;  %v1436_v23 = vsub.f32 %v3845_v39, %v1402_v17  ;;  %1485 = vadd.xlane.f32.xlu1 %v1484_v13 }
 0x3b2   :  { %v3919_v14 = vpop.eup %2964  ;;  %v1458_v15 = vmul.f32 1.442695, %v1436_v23  ;;  %v630_v23 = vpack.c.bf16 %v2907_v4, %v2907_v4 }
 0x3b3   :  { %v1405_v16 = vpop.xlane.xlu0 %1404  ;;  %v1487_v18 = vsel %vm645_vm2, %v3919_v14, 0.0 }
 0x3b4   :  { %2970 = vpow2.f32 %v1458_v15  ;;  %v1437_v29 = vsub.f32 %v3850_v47, %v1405_v16  ;;  %1488 = vadd.xlane.f32.xlu0 %v1487_v18  ;;  %v1687_v16 = vsel %vm1593_vm3, %v630_v23, 0 }
 0x3b6   :  { %v3924_v19 = vpop.eup %2966  ;;  %v1460_v20 = vmul.f32 1.442695, %v1437_v29 }
 0x3b7   :  { %v1490_v21 = vsel %vm645_vm2, %v3924_v19, 0.0  ;;  %v1408_v34 = vpop.xlane.xlu1 %1407 }
 0x3b8   :  { %2972 = vpow2.f32 %v1460_v20  ;;  %1491 = vadd.xlane.f32.xlu1 %v1490_v21  ;;  %v1438_v37 = vsub.f32 %v3855_v33, %v1408_v34 }
 0x3ba   :  { %v3928_v39 = vpop.eup %2968  ;;  %v1462_v41 = vmul.f32 1.442695, %v1438_v37 }
 0x3bb   :  { %v1411_v22 = vpop.xlane.xlu0 %1410  ;;  %v1493_v24 = vsel %vm645_vm2, %v3928_v39, 0.0  ;;  %v3950_v32 = vpop.permute.xlu1 %2910 }
 0x3bc   :  { %v1439_v25 = vsub.f32 %v3860_v59, %v1411_v22  ;;  %1494 = vadd.xlane.f32.xlu0 %v1493_v24 }
 0x3be   :  { %v3933_v26 = vpop.eup %2970  ;;  %v1464_v47 = vmul.f32 1.442695, %v1439_v25 }
 0x3bf   :  { %v1496_v27 = vsel %vm645_vm2, %v3933_v26, 0.0 }
 0x3c0   :  { %2974 = vpow2.f32 %v1464_v47  ;;  %1497 = vadd.xlane.f32.xlu0 %v1496_v27  ;;  %v2912_v47 = vunpack.i.l.bf16 %v3950_v32 }
 0x3c1   :  { %2976 = vpow2.f32 %v1462_v41 }
 0x3c2   :  { %v3937_v28 = vpop.eup %2972 }
 0x3c3   :  { %v1499_v30 = vsel %vm645_vm2, %v3937_v28, 0.0  ;;  %v1417_v45 = vpop.xlane.xlu0 %1416 }
 0x3c4   :  { %1500 = vadd.xlane.f32.xlu0 %v1499_v30  ;;  %v1441_v50 = vsub.f32 %v3865_v7, %v1417_v45 }
 0x3c6   :  { %v1468_v33 = vmul.f32 1.442695, %v1441_v50  ;;  %v2903_v50 = vunpack.i.h.bf16 %v3814_v63 }
 0x3c7   :  { %v3959_v56 = vpop.permute.xlu0 %596 }
 0x3c9   :  { %608 = vrot.lane.b32.xlu1 %v3700_v36, %s3366_s6 }
 0x3ca   :  { %v3943_v31 = vpop.eup %2974 }
 0x3cb   :  { %v1505_v59 = vsel %vm645_vm2, %v3943_v31, 0.0  ;;  %v3952_v46 = vpop.eup %2976 }
 0x3cc   :  { %1506 = vadd.xlane.f32.xlu0 %v1505_v59  ;;  %v1502_v53 = vsel %vm645_vm2, %v3952_v46, 0.0  ;;  %v631_v59 = vpack.c.bf16 %v2912_v47, %v2912_v47 }
 0x3e2   :  { %620 = vrot.lane.b32.xlu0 %v3700_v36, %s3365_s2 }
 0x3ec   :  { %v1414_v52 = vpop.xlane.xlu1 %1413 }
 0x3ed   :  { %v1440_v54 = vsub.f32 %v3877_v43, %v1414_v52  ;;  %1503 = vadd.xlane.f32.xlu1 %v1502_v53 }
 0x3ef   :  { %v1466_v55 = vmul.f32 1.442695, %v1440_v54  ;;  %v1733_v54 = vsel %vm1593_vm3, %v631_v59, 0 }
 0x3f0   :  { %v1420_v38 = vpop.xlane.xlu1 %1419 }
 0x3f1   :  { %2978 = vpow2.f32 %v1466_v55  ;;  %v1442_v57 = vsub.f32 %v3880_v44, %v1420_v38  ;;  %v633_v55 = vpack.c.bf16 %v2903_v50, %v2903_v50  ;;  %v640_v50 = vpack.c.bf16 %v3704_v40, %v3704_v40 }
 0x3f2   :  { %2980 = vpow2.f32 %v1468_v33  ;;  %v632_v33 = vpack.c.bf16 %v3706_v42, %v3706_v42 }
 0x3f3   :  { %v1470_v60 = vmul.f32 1.442695, %v1442_v57 }
 0x3f4   :  { %v1480_v61 = vpop.xlane.xlu1 %1479  ;;  %v1779_v42 = vsel %vm1593_vm3, %v632_v33, 0 }
 0x3f5   :  { %2982 = vpow2.f32 %v1470_v60 }
 0x3f6   :  { %2984 = vrcp.f32 %v1480_v61 }
 0x3f8   :  { %v1423_v7 = vpop.xlane.xlu0 %1422  ;;  %v1426_v62 = vpop.xlane.xlu1 %1425 }
 0x3f9   :  { %v1443_v0 = vsub.f32 %v3889_v58, %v1423_v7  ;;  %v1444_v43 = vsub.f32 %v3892_v49, %v1426_v62  ;;  %v2913_v7 = vunpack.i.h.bf16 %v3950_v32 }
 0x3fb   :  { %v3963_v1 = vpop.eup %2978  ;;  %v1472_v2 = vmul.f32 1.442695, %v1443_v0  ;;  %v1474_v3 = vmul.f32 1.442695, %v1444_v43  ;;  %v1825_v0 = vsel %vm1593_vm3, %v633_v55, 0 }
 0x3fc   :  { %v1429_v6 = vpop.xlane.xlu0 %1428  ;;  %v1508_v44 = vsel %vm645_vm2, %v3963_v1, 0.0  ;;  %v3967_v8 = vpop.eup %2980 }
 0x3fd   :  { %2986 = vpow2.f32 %v1472_v2  ;;  %v1445_v10 = vsub.f32 %v3897_v51, %v1429_v6  ;;  %1509 = vadd.xlane.f32.xlu1 %v1508_v44  ;;  %v1511_v13 = vsel %vm645_vm2, %v3967_v8, 0.0 }
 0x3fe   :  { %2988 = vpow2.f32 %v1474_v3  ;;  %v635_v3 = vpack.c.bf16 %v2913_v7, %v2913_v7 }
 0x3ff   :  { %v3971_v11 = vpop.eup %2982  ;;  %v1476_v58 = vmul.f32 1.442695, %v1445_v10 }
 0x400   :  { %v2985_v49 = vpop.eup %2984  ;;  %v1514_v17 = vsel %vm645_vm2, %v3971_v11, 0.0 }
 0x401   :  { %v1542_v15 = vmul.f32 %v2985_v49, %v3886_v48  ;;  %1515 = vadd.xlane.f32.xlu0 %v1514_v17  ;;  %1512 = vadd.xlane.f32.xlu1 %v1511_v13  ;;  %2990 = vpow2.f32 %v1476_v58  ;;  %v636_v58 = vpack.c.bf16 %v3700_v36, %v3700_v36 }
 0x403   :  { %1558 = vst.msk [vmem:[#allocation23] sm:$0xff] %vm645_vm2, %v1542_v15  ;;  %v1574_v51 = vpack.c.bf16 %v1542_v15, %v1542_v15  ;;  %v1963_v36 = vsel %vm1593_vm3, %v636_v58, 0 }
 0x405   :  { %2773 = vmatmul.mubr.msk.bf16.vlgmr.msra.gmra.mrb[36].mxu1 %vm645_vm2, %v1574_v51 }
 0x406   :  { %2783 = vmatpush3.bf16.msra.mxu1 %v1687_v16  ;;  %2784 = vmatprep.mubr.msk.bf16.mxu1 %vm3363_vm1, %v3362_v12 }
 0x407   :  { %v3983_v18 = vpop.eup %2986  ;;  %2794 = vmatprep.subr.bf16.mxu1 %v3362_v12 }
 0x408   :  { %v1517_v48 = vsel %vm645_vm2, %v3983_v18, 0.0  ;;  %v3988_v29 = vpop.eup %2988 }
 0x409   :  { %1518 = vadd.xlane.f32.xlu1 %v1517_v48  ;;  %v1520_v20 = vsel %vm645_vm2, %v3988_v29, 0.0 }
 0x40b   :  { %v3992_v21 = vpop.eup %2990 }
 0x40c   :  { %v1523_v22 = vsel %vm645_vm2, %v3992_v21, 0.0 }
 0x40d   :  { %1521 = vadd.xlane.f32.xlu1 %v1520_v20 }
 0x411   :  { %1524 = vadd.xlane.f32.xlu1 %v1523_v22 }
 0x417   :  { %598 = vrot.lane.b32.xlu0 %v3704_v40, %s3364_s11 }
 0x41b   :  { %622 = vrot.lane.b32.xlu0 %v3704_v40, %s3365_s2 }
 0x422   :  { %610 = vrot.lane.b32.xlu1 %v3704_v40, %s3366_s6 }
 0x439   :  { %v1483_v24 = vpop.xlane.xlu0 %1482 }
 0x43a   :  { %2992 = vrcp.f32 %v1483_v24 }
 0x43d   :  { %v1486_v25 = vpop.xlane.xlu1 %1485 }
 0x43e   :  { %2994 = vrcp.f32 %v1486_v25 }
 0x441   :  { %v1489_v27 = vpop.xlane.xlu0 %1488 }
 0x442   :  { %2996 = vrcp.f32 %v1489_v27 }
 0x444   :  { %v2993_v30 = vpop.eup %2992 }
 0x445   :  { %v1543_v34 = vmul.f32 %v2993_v30, %v3909_v5  ;;  %v1492_v37 = vpop.xlane.xlu1 %1491 }
 0x446   :  { %2998 = vrcp.f32 %v1492_v37 }
 0x447   :  { %1559 = vst.msk [vmem:[#allocation23 + $0x8] sm:$0xff] %vm645_vm2, %v1543_v34  ;;  %v1575_v41 = vpack.c.bf16 %v1543_v34, %v1543_v34 }
 0x448   :  { %v2995_v45 = vpop.eup %2994 }
 0x449   :  { %v1544_v52 = vmul.f32 %v2995_v45, %v3914_v9  ;;  %2779 = vmatmul.mubr.msk.bf16.vlgmr.msra.gmra.mrb[40].mxu0 %vm645_vm2, %v1575_v41  ;;  %v1495_v53 = vpop.xlane.xlu0 %1494  ;;  %v2908_v9 = vunpack.i.h.bf16 %v3871_v35  ;;  %v609_v22 = vpop.permute.xlu1 %608 }
 0x44a   :  { %3000 = vrcp.f32 %v1495_v53  ;;  %2789 = vmatpush3.bf16.msra.mxu0 %v1733_v54  ;;  %2790 = vmatprep.mubr.msk.bf16.mxu0 %vm3363_vm1, %v3362_v12  ;;  %v638_v47 = vpack.c.bf16 %v609_v22, %v609_v22 }
 0x44b   :  { %1560 = vst.msk [vmem:[#allocation23 + $0x10] sm:$0xff] %vm645_vm2, %v1544_v52  ;;  %v1576_v5 = vpack.c.bf16 %v1544_v52, %v1544_v52  ;;  %2800 = vmatprep.subr.bf16.mxu0 %v3362_v12  ;;  %v634_v35 = vpack.c.bf16 %v2908_v9, %v2908_v9 }
 0x44c   :  { %v2997_v63 = vpop.eup %2996  ;;  %v2055_v30 = vsel %vm1593_vm3, %v638_v47, 0 }
 0x44d   :  { %v1545_v38 = vmul.f32 %v2997_v63, %v3919_v14  ;;  %v1498_v57 = vpop.xlane.xlu0 %1497  ;;  %2785 = vmatmul.mubr.msk.bf16.vlgmr.msra.gmra.mrb[40].mxu1 %vm645_vm2, %v1576_v5  ;;  %v2147_v63 = vsel %vm1593_vm3, %v640_v50, 0 }
 0x44e   :  { %3002 = vrcp.f32 %v1498_v57  ;;  %2795 = vmatpush3.bf16.msra.mxu1 %v1779_v42  ;;  %2796 = vmatprep.mubr.msk.bf16.mxu1 %vm3363_vm1, %v3362_v12 }
 0x44f   :  { %1561 = vst.msk [vmem:[#allocation23 + $0x18] sm:$0xff] %vm645_vm2, %v1545_v38  ;;  %v1577_v60 = vpack.c.bf16 %v1545_v38, %v1545_v38  ;;  %2806 = vmatprep.subr.bf16.mxu1 %v3362_v12 }
 0x450   :  { %v2999_v61 = vpop.eup %2998 }
 0x451   :  { %v1546_v14 = vmul.f32 %v2999_v61, %v3924_v19  ;;  %v1501_v62 = vpop.xlane.xlu0 %1500  ;;  %2791 = vmatmul.mubr.msk.bf16.vlgmr.msra.gmra.mrb[44].mxu0 %vm645_vm2, %v1577_v60  ;;  %v1871_v19 = vsel %vm1593_vm3, %v634_v35, 0 }
 0x452   :  { %3004 = vrcp.f32 %v1501_v62  ;;  %2801 = vmatpush3.bf16.msra.mxu0 %v1825_v0  ;;  %2802 = vmatprep.mubr.msk.bf16.mxu0 %vm3363_vm1, %v3362_v12 }
 0x453   :  { %1562 = vst.msk [vmem:[#allocation23 + $0x20] sm:$0xff] %vm645_vm2, %v1546_v14  ;;  %v1578_v43 = vpack.c.bf16 %v1546_v14, %v1546_v14  ;;  %2812 = vmatprep.subr.bf16.mxu0 %v3362_v12 }
 0x454   :  { %v3001_v2 = vpop.eup %3000 }
 0x455   :  { %v1547_v32 = vmul.f32 %v3001_v2, %v3928_v39  ;;  %2797 = vmatmul.mubr.msk.bf16.vlgmr.msra.gmra.mrb[44].mxu1 %vm645_vm2, %v1578_v43  ;;  %v1917_v39 = vsel %vm1593_vm3, %v635_v3, 0 }
 0x456   :  { %2807 = vmatpush3.bf16.msra.mxu1 %v1871_v19  ;;  %2808 = vmatprep.mubr.msk.bf16.mxu1 %vm3363_vm1, %v3362_v12 }
 0x457   :  { %1563 = vst.msk [vmem:[#allocation23 + $0x28] sm:$0xff] %vm645_vm2, %v1547_v32  ;;  %v1579_v6 = vpack.c.bf16 %v1547_v32, %v1547_v32  ;;  %2818 = vmatprep.subr.bf16.mxu1 %v3362_v12 }
 0x458   :  { %v3003_v44 = vpop.eup %3002 }
 0x459   :  { %v1548_v4 = vmul.f32 %v3003_v44, %v3933_v26  ;;  %v1507_v10 = vpop.xlane.xlu0 %1506  ;;  %2803 = vmatmul.mubr.msk.bf16.vlgmr.msra.gmra.mrb[48].mxu0 %vm645_vm2, %v1579_v6  ;;  %v637_v26 = vpack.c.bf16 %v3959_v56, %v3959_v56 }
 0x45a   :  { %3006 = vrcp.f32 %v1507_v10  ;;  %2813 = vmatpush3.bf16.msra.mxu0 %v1917_v39  ;;  %2814 = vmatprep.mubr.msk.bf16.mxu0 %vm3363_vm1, %v3362_v12 }
 0x45b   :  { %1564 = vst.msk [vmem:[#allocation23 + $0x30] sm:$0xff] %vm645_vm2, %v1548_v4  ;;  %v1580_v49 = vpack.c.bf16 %v1548_v4, %v1548_v4  ;;  %2824 = vmatprep.subr.bf16.mxu0 %v3362_v12  ;;  %v2009_v15 = vsel %vm1593_vm3, %v637_v26, 0 }
 0x45c   :  { %v3005_v17 = vpop.eup %3004 }
 0x45d   :  { %v1549_v13 = vmul.f32 %v3005_v17, %v3937_v28  ;;  %2809 = vmatmul.mubr.msk.bf16.vlgmr.msra.gmra.mrb[48].mxu1 %vm645_vm2, %v1580_v49  ;;  %v621_v56 = vpop.permute.xlu0 %620 }
 0x45e   :  { %2819 = vmatpush3.bf16.msra.mxu1 %v1963_v36  ;;  %2820 = vmatprep.mubr.msk.bf16.mxu1 %vm3363_vm1, %v3362_v12  ;;  %v639_v16 = vpack.c.bf16 %v621_v56, %v621_v56 }
 0x45f   :  { %1565 = vst.msk [vmem:[#allocation23 + $0x38] sm:$0xff] %vm645_vm2, %v1549_v13  ;;  %v1581_v23 = vpack.c.bf16 %v1549_v13, %v1549_v13  ;;  %2830 = vmatprep.subr.bf16.mxu1 %v3362_v12 }
 0x460   :  { %v2101_v20 = vsel %vm1593_vm3, %v639_v16, 0 }
 0x461   :  { %2815 = vmatmul.mubr.msk.bf16.vlgmr.msra.gmra.mrb[52].mxu0 %vm645_vm2, %v1581_v23 }
 0x462   :  { %2825 = vmatpush3.bf16.msra.mxu0 %v2009_v15  ;;  %2826 = vmatprep.mubr.msk.bf16.mxu0 %vm3363_vm1, %v3362_v12 }
 0x463   :  { %2836 = vmatprep.subr.bf16.mxu0 %v3362_v12 }
 0x464   :  { %v3007_v28 = vpop.eup %3006 }
 0x465   :  { %v1551_v51 = vmul.f32 %v3007_v28, %v3943_v31 }
 0x467   :  { %1567 = vst.msk [vmem:[#allocation23 + $0x48] sm:$0xff] %vm645_vm2, %v1551_v51  ;;  %v1583_v48 = vpack.c.bf16 %v1551_v51, %v1551_v51 }
 0x469   :  { %2827 = vmatmul.mubr.msk.bf16.vlgmr.msra.gmra.mrb[56].mxu0 %vm645_vm2, %v1583_v48 }
 0x46a   :  { %2837 = vmatpush3.bf16.msra.mxu0 %v2101_v20  ;;  %2838 = vmatprep.mubr.msk.bf16.mxu0 %vm3363_vm1, %v3362_v12 }
 0x46b   :  { %2848 = vmatprep.subr.bf16.mxu0 %v3362_v12 }
 0x47a   :  { %v1504_v24 = vpop.xlane.xlu1 %1503 }
 0x47b   :  { %3008 = vrcp.f32 %v1504_v24 }
 0x485   :  { %v3009_v25 = vpop.eup %3008 }
 0x486   :  { %v1550_v31 = vmul.f32 %v3009_v25, %v3952_v46 }
 0x488   :  { %1566 = vst.msk [vmem:[#allocation23 + $0x40] sm:$0xff] %vm645_vm2, %v1550_v31  ;;  %v1582_v27 = vpack.c.bf16 %v1550_v31, %v1550_v31 }
 0x48a   :  { %2821 = vmatmul.mubr.msk.bf16.vlgmr.msra.gmra.mrb[52].mxu1 %vm645_vm2, %v1582_v27  ;;  %v1510_v59 = vpop.xlane.xlu1 %1509 }
 0x48b   :  { %2831 = vmatpush3.bf16.msra.mxu1 %v2055_v30  ;;  %3010 = vrcp.f32 %v1510_v59  ;;  %2832 = vmatprep.mubr.msk.bf16.mxu1 %vm3363_vm1, %v3362_v12 }
 0x48c   :  { %2842 = vmatprep.subr.bf16.mxu1 %v3362_v12 }
 0x48e   :  { %v1516_v34 = vpop.xlane.xlu0 %1515  ;;  %v1513_v37 = vpop.xlane.xlu1 %1512 }
 0x48f   :  { %3012 = vrcp.f32 %v1516_v34 }
 0x490   :  { %3014 = vrcp.f32 %v1513_v37 }
 0x492   :  { %v599_v52 = vpop.permute.xlu0 %598 }
 0x493   :  { %v641_v55 = vpack.c.bf16 %v599_v52, %v599_v52 }
 0x495   :  { %v3011_v46 = vpop.eup %3010  ;;  %v2193_v38 = vsel %vm1593_vm3, %v641_v55, 0 }
 0x496   :  { %v1552_v41 = vmul.f32 %v3011_v46, %v3963_v1  ;;  %v1519_v45 = vpop.xlane.xlu1 %1518 }
 0x497   :  { %3016 = vrcp.f32 %v1519_v45 }
 0x498   :  { %1568 = vst.msk [vmem:[#allocation23 + $0x50] sm:$0xff] %vm645_vm2, %v1552_v41  ;;  %v1584_v53 = vpack.c.bf16 %v1552_v41, %v1552_v41 }
 0x499   :  { %v3013_v54 = vpop.eup %3012 }
 0x49a   :  { %v3015_v33 = vpop.eup %3014  ;;  %v1554_v5 = vmul.f32 %v3013_v54, %v3971_v11  ;;  %2833 = vmatmul.mubr.msk.bf16.vlgmr.msra.gmra.mrb[56].mxu1 %vm645_vm2, %v1584_v53  ;;  %v1522_v9 = vpop.xlane.xlu1 %1521 }
 0x49b   :  { %v1553_v1 = vmul.f32 %v3015_v33, %v3967_v8  ;;  %2843 = vmatpush3.bf16.msra.mxu1 %v2147_v63  ;;  %3018 = vrcp.f32 %v1522_v9  ;;  %2844 = vmatprep.mubr.msk.bf16.mxu1 %vm3363_vm1, %v3362_v12  ;;  %v623_v8 = vpop.permute.xlu0 %622 }
 0x49c   :  { %1570 = vst.msk [vmem:[#allocation23 + $0x60] sm:$0xff] %vm645_vm2, %v1554_v5  ;;  %2854 = vmatprep.subr.bf16.mxu1 %v3362_v12  ;;  %v1586_v57 = vpack.c.bf16 %v1554_v5, %v1554_v5  ;;  %v643_v35 = vpack.c.bf16 %v623_v8, %v623_v8 }
 0x49d   :  { %1569 = vst.msk [vmem:[#allocation23 + $0x58] sm:$0xff] %vm645_vm2, %v1553_v1  ;;  %v1585_v40 = vpack.c.bf16 %v1553_v1, %v1553_v1 }
 0x49e   :  { %v1525_v11 = vpop.xlane.xlu1 %1524  ;;  %v2285_v2 = vsel %vm1593_vm3, %v643_v35, 0 }
 0x49f   :  { %2839 = vmatmul.mubr.msk.bf16.vlgmr.msra.gmra.mrb[60].mxu0 %vm645_vm2, %v1585_v40  ;;  %3020 = vrcp.f32 %v1525_v11 }
 0x4a0   :  { %2849 = vmatpush3.bf16.msra.mxu0 %v2193_v38  ;;  %2850 = vmatprep.mubr.msk.bf16.mxu0 %vm3363_vm1, %v3362_v12 }
 0x4a1   :  { %v3017_v42 = vpop.eup %3016  ;;  %2860 = vmatprep.subr.bf16.mxu0 %v3362_v12 }
 0x4a2   :  { %v1555_v60 = vmul.f32 %v3017_v42, %v3983_v18  ;;  %2845 = vmatmul.mubr.msk.bf16.vlgmr.msra.gmra.mrb[60].mxu1 %vm645_vm2, %v1586_v57  ;;  %v611_v61 = vpop.permute.xlu1 %610  ;;  %v2956_v42 = vld [vmem:[#allocation17] sm:$0xff]  }
 0x4a3   :  { %v642_v7 = vpack.c.bf16 %v611_v61, %v611_v61  ;;  %2856 = vmatprep.mubr.msk.bf16.mxu1 %vm3363_vm1, %v3362_v12 }
 0x4a4   :  { %1571 = vst.msk [vmem:[#allocation23 + $0x68] sm:$0xff] %vm645_vm2, %v1555_v60  ;;  %v1587_v14 = vpack.c.bf16 %v1555_v60, %v1555_v60 }
 0x4a5   :  { %v3019_v62 = vpop.eup %3018  ;;  %v2239_v0 = vsel %vm1593_vm3, %v642_v7, 0 }
 0x4a6   :  { %v1556_v43 = vmul.f32 %v3019_v62, %v3988_v29  ;;  %2855 = vmatpush3.bf16.msra.mxu1 %v2239_v0  ;;  %v2957_v62 = vld [vmem:[#allocation17 + $0x8] sm:$0xff]  }
 0x4a7   :  { %2851 = vmatmul.mubr.msk.bf16.vlgmr.msra.gmra.mrb[64].mxu0 %vm645_vm2, %v1587_v14  ;;  %2866 = vmatprep.subr.bf16.mxu1 %v2956_v42 }
 0x4a8   :  { %1572 = vst.msk [vmem:[#allocation23 + $0x70] sm:$0xff] %vm645_vm2, %v1556_v43  ;;  %2861 = vmatpush3.bf16.msra.mxu0 %v2285_v2  ;;  %v1588_v18 = vpack.c.bf16 %v1556_v43, %v1556_v43  ;;  %2862 = vmatprep.mubr.msk.bf16.mxu0 %vm3363_vm1, %v3362_v12 }
 0x4a9   :  { %v3021_v3 = vpop.eup %3020 }
 0x4aa   :  { %v1557_v32 = vmul.f32 %v3021_v3, %v3992_v21  ;;  %2857 = vmatmul.mubr.msk.bf16.vlgmr.msra.gmra.mrb[64].mxu1 %vm645_vm2, %v1588_v18 }
 0x4ab   :  { %2867 = vmatpush3.bf16.msra.mxu1 %v2956_v42 }
 0x4ac   :  { %1573 = vst.msk [vmem:[#allocation23 + $0x78] sm:$0xff] %vm645_vm2, %v1557_v32  ;;  %v1589_v29 = vpack.c.bf16 %v1557_v32, %v1557_v32  ;;  %2868 = vmatprep.subr.bf16.mxu1 %v2957_v62 }
 0x4af   :  { %2863 = vmatmul.mubr.msk.bf16.vlgmr.msra.gmra.mrb[68].mxu0 %vm645_vm2, %v1589_v29  ;;  %2869 = vmatpush3.bf16.msra.mxu1 %v2957_v62 }
 0x4d8   :  { %v4109_v19 = vpop.f32.mrb[36].mxu1 }
 0x4d9   :  { %v2774_v6 = vpop.f32.mrb[37].mxu1 }
 0x4da   :  { %v1634_v44 = vpop.f32.mrb[38].mxu1 }
 0x4db   :  { %v2775_v4 = vpop.f32.mrb[39].mxu1 }
 0x51c   :  { %v1677_v10 = vpop.f32.mrb[40].mxu0 }
 0x51d   :  { %v2780_v39 = vpop.f32.mrb[41].mxu0 }
 0x51e   :  { %v1680_v58 = vpop.f32.mrb[42].mxu0 }
 0x51f   :  { %v2781_v49 = vpop.f32.mrb[43].mxu0 }
 0x520   :  { %v1723_v12 = vpop.f32.mrb[40].mxu1 }
 0x521   :  { %v2786_v17 = vpop.f32.mrb[41].mxu1 }
 0x522   :  { %v1726_v26 = vpop.f32.mrb[42].mxu1 }
 0x523   :  { %v2787_v21 = vpop.f32.mrb[43].mxu1 }
 0x524   :  { %v1769_v13 = vpop.f32.mrb[44].mxu0 }
 0x525   :  { %v2792_v36 = vpop.f32.mrb[45].mxu0 }
 0x526   :  { %v1772_v23 = vpop.f32.mrb[46].mxu0 }
 0x527   :  { %v2793_v15 = vpop.f32.mrb[47].mxu0 }
 0x528   :  { %v4111_v56 = vpop.f32.mrb[44].mxu1 }
 0x529   :  { %v2798_v28 = vpop.f32.mrb[45].mxu1 }
 0x52a   :  { %v1818_v51 = vpop.f32.mrb[46].mxu1 }
 0x52b   :  { %v2799_v16 = vpop.f32.mrb[47].mxu1 }
 0x52c   :  { %v1861_v48 = vpop.f32.mrb[48].mxu0 }
 0x52d   :  { %v2914_v20 = vpack.i.bf16 %v1861_v48, %v1677_v10  ;;  %v2804_v22 = vpop.f32.mrb[49].mxu0 }
 0x52e   :  { %v1864_v24 = vpop.f32.mrb[50].mxu0 }
 0x52f   :  { %v2805_v25 = vpop.f32.mrb[51].mxu0  ;;  %2915 = vrot.lane.b32.xlu1 %v2914_v20, %s3367_s16 }
 0x530   :  { %v1907_v47 = vpop.f32.mrb[48].mxu1 }
 0x531   :  { %v2919_v31 = vpack.i.bf16 %v1907_v47, %v1723_v12  ;;  %v2810_v27 = vpop.f32.mrb[49].mxu1 }
 0x532   :  { %v1910_v30 = vpop.f32.mrb[50].mxu1 }
 0x533   :  { %2920 = vrot.lane.b32.xlu1 %v2919_v31, %s3368_s1  ;;  %v2811_v59 = vpop.f32.mrb[51].mxu1 }
 0x534   :  { %v1953_v34 = vpop.f32.mrb[52].mxu0 }
 0x535   :  { %v2934_v37 = vpack.i.bf16 %v1953_v34, %v1769_v13  ;;  %v2816_v46 = vpop.f32.mrb[53].mxu0 }
 0x536   :  { %v1956_v41 = vpop.f32.mrb[54].mxu0 }
 0x537   :  { %v2817_v45 = vpop.f32.mrb[55].mxu0  ;;  %2935 = vrot.lane.b32.xlu1 %v2934_v37, %s3369_s17 }
 0x53c   :  { %v2045_v50 = vpop.f32.mrb[56].mxu0 }
 0x53d   :  { %v2828_v52 = vpop.f32.mrb[57].mxu0 }
 0x53e   :  { %v2048_v53 = vpop.f32.mrb[58].mxu0 }
 0x53f   :  { %v2829_v54 = vpop.f32.mrb[59].mxu0 }
 0x55d   :  { %v4116_v33 = vpop.f32.mrb[52].mxu1 }
 0x55e   :  { %v2822_v5 = vpop.f32.mrb[53].mxu1 }
 0x55f   :  { %v2002_v63 = vpop.f32.mrb[54].mxu1 }
 0x560   :  { %v2823_v9 = vpop.f32.mrb[55].mxu1 }
 0x56d   :  { %v2091_v1 = vpop.f32.mrb[56].mxu1 }
 0x56e   :  { %v2834_v55 = vpop.f32.mrb[57].mxu1 }
 0x56f   :  { %v2094_v40 = vpop.f32.mrb[58].mxu1 }
 0x570   :  { %v2835_v11 = vpop.f32.mrb[59].mxu1 }
 0x572   :  { %v2137_v38 = vpop.f32.mrb[60].mxu0 }
 0x573   :  { %v2840_v8 = vpop.f32.mrb[61].mxu0 }
 0x574   :  { %v2140_v57 = vpop.f32.mrb[62].mxu0 }
 0x575   :  { %v2841_v60 = vpop.f32.mrb[63].mxu0  ;;  %v2183_v61 = vpop.f32.mrb[60].mxu1 }
 0x576   :  { %v2846_v35 = vpop.f32.mrb[61].mxu1 }
 0x577   :  { %v2186_v7 = vpop.f32.mrb[62].mxu1 }
 0x578   :  { %v2847_v14 = vpop.f32.mrb[63].mxu1 }
 0x57a   :  { %v2229_v0 = vpop.f32.mrb[64].mxu0 }
 0x57b   :  { %v2924_v43 = vpack.i.bf16 %v2229_v0, %v2045_v50  ;;  %v2852_v2 = vpop.f32.mrb[65].mxu0 }
 0x57c   :  { %v2232_v18 = vpop.f32.mrb[66].mxu0 }
 0x57d   :  { %2925 = vrot.lane.b32.xlu0 %v2924_v43, %s3367_s16  ;;  %v2853_v3 = vpop.f32.mrb[67].mxu0  ;;  %v2275_v32 = vpop.f32.mrb[64].mxu1 }
 0x57e   :  { %v2929_v29 = vpack.i.bf16 %v2275_v32, %v2091_v1  ;;  %v2858_v6 = vpop.f32.mrb[65].mxu1 }
 0x57f   :  { %v2278_v44 = vpop.f32.mrb[66].mxu1 }
 0x580   :  { %v2859_v4 = vpop.f32.mrb[67].mxu1 }
 0x581   :  { %2930 = vrot.lane.b32.xlu0 %v2929_v29, %s3368_s1 }
 0x582   :  { %v2321_v10 = vpop.f32.mrb[68].mxu0 }
 0x583   :  { %v2939_v39 = vpack.i.bf16 %v2321_v10, %v2137_v38  ;;  %v2864_v58 = vpop.f32.mrb[69].mxu0 }
 0x584   :  { %v2324_v49 = vpop.f32.mrb[70].mxu0 }
 0x585   :  { %v2865_v12 = vpop.f32.mrb[71].mxu0  ;;  %2940 = vrot.lane.b32.xlu0 %v2939_v39, %s3369_s17 }
 0x5a1   :  { %v2916_v17 = vpop.permute.xlu1 %2915 }
 0x5a2   :  { %v2918_v21 = vunpack.i.h.bf16 %v2916_v17  ;;  %v2917_v13 = vunpack.i.l.bf16 %v2916_v17 }
 0x5a4   :  { %v2375_v28 = vsel %vm645_vm2, %v4109_v19, %v2917_v13  ;;  %v2376_v51 = vsel %vm645_vm2, %v4111_v56, %v2918_v21 }
 0x5a5   :  { %v2921_v26 = vpop.permute.xlu1 %2920 }
 0x5a6   :  { %v2923_v36 = vunpack.i.h.bf16 %v2921_v26  ;;  %v2922_v23 = vunpack.i.l.bf16 %v2921_v26 }
 0x5a8   :  { %v2381_v20 = vsel %vm2379_vm4, %v2376_v51, %v2923_v36  ;;  %v2380_v22 = vsel %vm2379_vm4, %v2375_v28, %v2922_v23 }
 0x5a9   :  { %v2936_v15 = vpop.permute.xlu1 %2935 }
 0x5aa   :  { %v2938_v16 = vunpack.i.h.bf16 %v2936_v15  ;;  %v2937_v48 = vunpack.i.l.bf16 %v2936_v15 }
 0x5ac   :  { %v2385_v24 = vsel %vm2384_vm5, %v2380_v22, %v2937_v48  ;;  %v2386_v25 = vsel %vm2384_vm5, %v2381_v20, %v2938_v16 }
 0x5ad   :  { %v2389_v47 = vpack.c.bf16 %v2386_v25, %v2385_v24 }
 0x5af   :  { %2870 = vmatprep.mubr.msk.bf16.mxu1 %vm236_vm0, %v2389_v47 }
 0x5ef   :  { %v2926_v31 = vpop.permute.xlu0 %2925 }
 0x5f0   :  { %v2928_v30 = vunpack.i.h.bf16 %v2926_v31  ;;  %v2927_v19 = vunpack.i.l.bf16 %v2926_v31 }
 0x5f2   :  { %v2377_v37 = vsel %vm645_vm2, %v4116_v33, %v2927_v19  ;;  %v2378_v46 = vsel %vm645_vm2, %v2183_v61, %v2928_v30 }
 0x5f3   :  { %v2931_v27 = vpop.permute.xlu0 %2930 }
 0x5f4   :  { %v2933_v59 = vunpack.i.h.bf16 %v2931_v27  ;;  %v2932_v34 = vunpack.i.l.bf16 %v2931_v27 }
 0x5f6   :  { %v2383_v50 = vsel %vm2379_vm4, %v2378_v46, %v2933_v59  ;;  %v2382_v52 = vsel %vm2379_vm4, %v2377_v37, %v2932_v34 }
 0x5f7   :  { %v2941_v56 = vpop.permute.xlu0 %2940 }
 0x5f8   :  { %v2943_v41 = vunpack.i.h.bf16 %v2941_v56  ;;  %v2942_v45 = vunpack.i.l.bf16 %v2941_v56 }
 0x5fa   :  { %v2387_v53 = vsel %vm2384_vm5, %v2382_v52, %v2942_v45  ;;  %v2388_v54 = vsel %vm2384_vm5, %v2383_v50, %v2943_v41 }
 0x5fb   :  { %v2390_v5 = vpack.c.bf16 %v2388_v54, %v2387_v53 }
 0x5fd   :  { %2871 = vmatmul.mubr.msk.bf16.vlgmr.msra.gmra.mrb[68].mxu1 %vm236_vm0, %v2390_v5 }
 0x5fe   :  { %3297 = shalt.err (!%p3294_p2)
}
 0x5ff   :  { %s3298_s0 = scalar_lea.hbm %s4185_s13, 2048 }
 0x600   :  { %p3299_p3 = scmp.ne.s32.totalorder %s4185_s13, %s3298_s0  ;;  %p3302_p4 = scmp.lt.u32.totalorder %s3298_s0, %s4185_s13 }
 0x602   :  { %p3304_p5 = pnand %p3302_p4, %p3299_p3 }
 0x604   :  { %3307 = shalt.err (!%p3304_p5)
}
 0x605   :  { %s3371_s7 = smov 128   ;;  %v2565_v33 = vld [vmem:[#allocation19] ss:$0 sm:$0xff]  ;;  %s3372_s26 = smov [#allocation22]  }
 0x606   :  { %2496 = dma.vmem_to_hbm [thread:$0]  %s2491_s22, 2048, %s4185_s13, [#allocation24], %s3371_s7, %s3371_s7, %s3367_s16  }
 0x607   :  { %s2478_s5 = sshll.u32 %s3372_s26, 4  ;;  %s2479_s5 = int_to_ptr.vmem [resolvable:$true] %s2478_s5 }
 0x608   :  { %s3308_s13 = scalar_lea.vmem %s2479_s5, 512  ;;  %p3313_p7 = scmp.lt.s32.totalorder %s2479_s5, %s2479_s5 }
 0x609   :  { %p3309_p6 = scmp.ne.s32.totalorder %s2479_s5, %s3308_s13  ;;  %p3314_p8 = scmp.lt.s32.totalorder %s3308_s13, %s3308_s13 }
 0x60b   :  { %p3315_p9 = por %p3314_p8, %p3313_p7 }
 0x60d   :  { %p3316_p10 = pnand %p3315_p9, %p3309_p6 }
 0x6d0   :  { %v2872_v63 = vpop.f32.mrb[68].mxu1 }
 0x6d1   :  { %v2463_v9 = vadd.f32 %v2872_v63, %v2565_v33  ;;  %v2454_v1 = vpop.f32.mrb[69].mxu1 }
 0x6d2   :  { %v2455_v55 = vadd.f32 %v2565_v33, %v2454_v1  ;;  %v2873_v40 = vpop.f32.mrb[70].mxu1 }
 0x6d3   :  { %2471 = vst.msk [vmem:[#allocation22 + $0x10] sm:$0xff] %vm236_vm0, %v2463_v9  ;;  %v2466_v11 = vadd.f32 %v2873_v40, %v2565_v33  ;;  %v2457_v38 = vpop.f32.mrb[71].mxu1 }
 0x6d4   :  { %2469 = vst.msk [vmem:[#allocation22] sm:$0xff] %vm236_vm0, %v2455_v55  ;;  %v2458_v8 = vadd.f32 %v2565_v33, %v2457_v38 }
 0x6d5   :  { %2472 = vst.msk [vmem:[#allocation22 + $0x18] sm:$0xff] %vm236_vm0, %v2466_v11 }
 0x6d6   :  { %2470 = vst.msk [vmem:[#allocation22 + $0x8] sm:$0xff] %vm236_vm0, %v2458_v8 }
 0x6d7   :  { %3319 = shalt.err (!%p3316_p10)
}
 0x6d8   :  { %s3320_s14 = scalar_lea.hbm %s4184_s12, 512 }
 0x6d9   :  { %p3321_p11 = scmp.ne.s32.totalorder %s4184_s12, %s3320_s14  ;;  %p3324_p12 = scmp.lt.u32.totalorder %s3320_s14, %s4184_s12 }
 0x6db   :  { %p3326_p13 = pnand %p3324_p12, %p3321_p11 }
 0x6dd   :  { %3329 = shalt.err (!%p3326_p13)
}
 0x6de   :  { %2484 = dma.vmem_to_hbm [thread:$0]  %s2479_s5, 512, %s4184_s12, [#allocation4], %s3371_s7, %s3371_s7, %s3367_s16  }
 0x6df   :  { %3344 = dma.done.wait [#allocation4], 512  }
 0x6e0   :  { %3345 = vsyncadd [#allocation4], 4294966784 }
 0x6e1   :  { %3346 = dma.done.wait [#allocation24], 2048  }
 0x6e2   :  { %3347 = vsyncadd [#allocation24], 4294965248 }
 0x6e3   :  { %2503 = vsyncpa [#allocation3], 1 }
 0x6e4   :  { %2504 = vsyncpa [#allocation6], 1 }
 0x6e5   :  { %2505 = vsyncpa [#allocation9], 1 }
 0x6e6   :  { %2506 = vsyncpa [#allocation12], 1 }
 0x6e7   :  { %2507 = vsyncpa [#allocation15], 1 }
 0x6e8   :  { %2508 = vsyncpa [#allocation18], 1 }
 0x6e9   :  { %2509 = vsyncpa [#allocation21], 1 }
 0x6ea   :  { %2510 = vsyncpa [#allocation4], 1 }
 0x6eb   :  { %2511 = vsyncpa [#allocation24], 1 }

// kernel: tpu_custom_call.1
= control target key start
LH: loop header
LB: loop body
LE: loop exit
PB: predicated region body
PF: predicated region fallthrough
CT: control target
= control target key end

     0   :  { %19 = vsyncpa [#allocation3], 0  ;;  %s4172_s0 = inlined_call_operand.hbm [shape: bf16[32,32], index: 0, kind: input, shape index: {}]   ;;  %s4173_s1 = inlined_call_operand.hbm [shape: bf16[32,32], index: 1, kind: input, shape index: {}]   ;;  %s4174_s2 = inlined_call_operand.hbm [shape: bf16[32,32], index: 2, kind: input, shape index: {}]   ;;  %s4175_s3 = inlined_call_operand.hbm [shape: bf16[32,32], index: 3, kind: input, shape index: {}]   ;;  %s4176_s4 = inlined_call_operand.hbm [shape: bf16[32,32], index: 4, kind: input, shape index: {}]   ;;  %s4177_s5 = inlined_call_operand.hbm [shape: bf16[32,32], index: 5, kind: input, shape index: {}]   ;;  %s4178_s6 = inlined_call_operand.hbm [shape: f32[1,32], index: 6, kind: input, shape index: {}]   ;;  %s4179_s7 = inlined_call_operand.hbm [shape: f32[1,32], index: 7, kind: input, shape index: {}]   ;;  %s4180_s8 = inlined_call_operand.hbm [shape: f32[1,32], index: 8, kind: input, shape index: {}]   ;;  %s4181_s9 = inlined_call_operand.hbm [shape: bf16[32,32], index: 9, kind: input, shape index: {}]   ;;  %s4182_s10 = inlined_call_operand.hbm [shape: f32[1,32], index: 10, kind: input, shape index: {}]   ;;  %s4183_s11 = inlined_call_operand.hbm [shape: f32[8,8], index: 11, kind: input, shape index: {}]   ;;  %s4184_s12 = inlined_call_operand.hbm [shape: f32[32,32], index: 12, kind: output, shape index: {0}]   ;;  %s4185_s13 = inlined_call_operand.hbm [shape: f32[4,4,8,8], index: 13, kind: output, shape index: {1}]  }
   0x1   :  { %20 = vsyncpa [#allocation6], 0 }
   0x2   :  { %21 = vsyncpa [#allocation9], 0 }
   0x3   :  { %22 = vsyncpa [#allocation12], 0 }
   0x4   :  { %23 = vsyncpa [#allocation15], 0 }
   0x5   :  { %24 = vsyncpa [#allocation18], 0 }
   0x6   :  { %25 = vsyncpa [#allocation21], 0 }
   0x7   :  { %26 = vsyncpa [#allocation4], 0 }
   0x8   :  { %27 = vsyncpa [#allocation24], 0  ;;  %s3348_s25 = smov [#allocation5]   ;;  %s3349_s27 = smov [#allocation8]  }
   0x9   :  { %s45_s26 = sshll.u32 %s3348_s25, 4  ;;  %s69_s28 = sshll.u32 %s3349_s27, 4  ;;  %s46_s26 = int_to_ptr.vmem [resolvable:$true] %s45_s26  ;;  %s3443_s28 = int_to_ptr.vmem [resolvable:$true] %s69_s28 }
   0xa   :  { %s3022_s14 = scalar_lea.hbm %s4173_s1, 256 }
   0xb   :  { %p3023_p0 = scmp.ne.s32.totalorder %s4173_s1, %s3022_s14  ;;  %p3026_p1 = scmp.lt.u32.totalorder %s3022_s14, %s4173_s1 }
   0xd   :  { %p3028_p2 = pnand %p3026_p1, %p3023_p0 }
   0xf   :  { %3031 = shalt.err (!%p3028_p2)
}
  0x10   :  { %s3032_s19 = scalar_lea.vmem %s46_s26, 256  ;;  %p3037_p4 = scmp.lt.s32.totalorder %s46_s26, %s46_s26 }
  0x11   :  { %p3033_p3 = scmp.ne.s32.totalorder %s46_s26, %s3032_s19  ;;  %p3038_p5 = scmp.lt.s32.totalorder %s3032_s19, %s3032_s19 }
  0x13   :  { %p3039_p6 = por %p3038_p5, %p3037_p4 }
  0x15   :  { %p3040_p7 = pnand %p3039_p6, %p3033_p3 }
  0x17   :  { %3043 = shalt.err (!%p3040_p7)
}
  0x18   :  { %s3350_s20 = smov 64   ;;  %s3351_s21 = smov 4  }
  0x19   :  { %51 = dma.hbm_to_vmem [thread:$0]  %s4173_s1, 256, %s46_s26, [#allocation6], %s3350_s20, %s3350_s20, %s3351_s21  }
  0x1a   :  { %s3044_s27 = scalar_lea.hbm %s4175_s3, 256 }
  0x1b   :  { %p3045_p8 = scmp.ne.s32.totalorder %s4175_s3, %s3044_s27  ;;  %p3048_p9 = scmp.lt.u32.totalorder %s3044_s27, %s4175_s3 }
  0x1d   :  { %p3050_p10 = pnand %p3048_p9, %p3045_p8 }
  0x1f   :  { %3053 = shalt.err (!%p3050_p10)
}
  0x20   :  { %s3054_s16 = scalar_lea.vmem %s3443_s28, 256  ;;  %p3059_p12 = scmp.lt.s32.totalorder %s3443_s28, %s3443_s28 }
  0x21   :  { %p3055_p11 = scmp.ne.s32.totalorder %s3443_s28, %s3054_s16  ;;  %p3060_p13 = scmp.lt.s32.totalorder %s3054_s16, %s3054_s16 }
  0x23   :  { %p3061_p0 = por %p3060_p13, %p3059_p12 }
  0x25   :  { %p3062_p1 = pnand %p3061_p0, %p3055_p11 }
  0x27   :  { %3065 = shalt.err (!%p3062_p1)
}
  0x28   :  { %75 = dma.hbm_to_vmem [thread:$0]  %s4175_s3, 256, %s3443_s28, [#allocation9], %s3350_s20, %s3350_s20, %s3351_s21  }
  0x29   :  { %s3352_s17 = smov [#allocation11]   ;;  %s3353_s19 = smov [#allocation14]  }
  0x2a   :  { %s93_s18 = sshll.u32 %s3352_s17, 4  ;;  %s116_s22 = sshll.u32 %s3353_s19, 4  ;;  %s94_s18 = int_to_ptr.vmem [resolvable:$true] %s93_s18  ;;  %s117_s22 = int_to_ptr.vmem [resolvable:$true] %s116_s22 }
  0x2b   :  { %s3066_s25 = scalar_lea.hbm %s4177_s5, 256 }
  0x2c   :  { %p3067_p2 = scmp.ne.s32.totalorder %s4177_s5, %s3066_s25  ;;  %p3070_p3 = scmp.lt.u32.totalorder %s3066_s25, %s4177_s5 }
  0x2e   :  { %p3072_p4 = pnand %p3070_p3, %p3067_p2 }
  0x30   :  { %3075 = shalt.err (!%p3072_p4)
}
  0x31   :  { %s3076_s3 = scalar_lea.vmem %s94_s18, 256  ;;  %p3081_p6 = scmp.lt.s32.totalorder %s94_s18, %s94_s18 }
  0x32   :  { %p3077_p5 = scmp.ne.s32.totalorder %s94_s18, %s3076_s3  ;;  %p3082_p7 = scmp.lt.s32.totalorder %s3076_s3, %s3076_s3 }
  0x34   :  { %p3083_p8 = por %p3082_p7, %p3081_p6 }
  0x36   :  { %p3084_p9 = pnand %p3083_p8, %p3077_p5 }
  0x38   :  { %3087 = shalt.err (!%p3084_p9)
}
  0x39   :  { %99 = dma.hbm_to_vmem [thread:$0]  %s4177_s5, 256, %s94_s18, [#allocation12], %s3350_s20, %s3350_s20, %s3351_s21  }
  0x3a   :  { %s3088_s26 = scalar_lea.hbm %s4179_s7, 16 }
  0x3b   :  { %p3089_p10 = scmp.ne.s32.totalorder %s4179_s7, %s3088_s26  ;;  %p3092_p11 = scmp.lt.u32.totalorder %s3088_s26, %s4179_s7 }
  0x3d   :  { %p3094_p12 = pnand %p3092_p11, %p3089_p10 }
  0x3f   :  { %3097 = shalt.err (!%p3094_p12)
}
  0x40   :  { %s3098_s25 = scalar_lea.vmem %s117_s22, 16  ;;  %s3102_s27 = scalar_lea.vmem %s117_s22, 32 }
  0x41   :  { %p3099_p13 = scmp.ne.s32.totalorder %s117_s22, %s3098_s25  ;;  %p3103_p0 = scmp.lt.s32.totalorder %s117_s22, %s117_s22 }
  0x42   :  { %p3104_p1 = scmp.lt.s32.totalorder %s3102_s27, %s3098_s25 }
  0x44   :  { %p3105_p2 = por %p3104_p1, %p3103_p0 }
  0x46   :  { %p3106_p3 = pnand %p3105_p2, %p3099_p13 }
  0x48   :  { %3109 = shalt.err (!%p3106_p3)
}
  0x49   :  { %119 = dma.hbm_to_vmem [thread:$0]  %s4179_s7, 16, %s117_s22, [#allocation15]  }
  0x4a   :  { %s3354_s29 = smov [#allocation17]   ;;  %s3355_s14 = smov [#allocation2]  }
  0x4b   :  { %s135_s30 = sshll.u32 %s3354_s29, 4  ;;  %s33_s3 = sshll.u32 %s3355_s14, 4  ;;  %s136_s30 = int_to_ptr.vmem [resolvable:$true] %s135_s30  ;;  %s3507_s3 = int_to_ptr.vmem [resolvable:$true] %s33_s3 }
  0x4c   :  { %s3110_s16 = scalar_lea.hbm %s4181_s9, 256 }
  0x4d   :  { %p3111_p4 = scmp.ne.s32.totalorder %s4181_s9, %s3110_s16  ;;  %p3114_p5 = scmp.lt.u32.totalorder %s3110_s16, %s4181_s9 }
  0x4f   :  { %p3116_p6 = pnand %p3114_p5, %p3111_p4 }
  0x51   :  { %3119 = shalt.err (!%p3116_p6)
}
  0x52   :  { %s3120_s7 = scalar_lea.vmem %s136_s30, 256  ;;  %p3125_p8 = scmp.lt.s32.totalorder %s136_s30, %s136_s30 }
  0x53   :  { %p3121_p7 = scmp.ne.s32.totalorder %s136_s30, %s3120_s7  ;;  %p3126_p9 = scmp.lt.s32.totalorder %s3120_s7, %s3120_s7 }
  0x55   :  { %p3127_p10 = por %p3126_p9, %p3125_p8 }
  0x57   :  { %p3128_p11 = pnand %p3127_p10, %p3121_p7 }
  0x59   :  { %3131 = shalt.err (!%p3128_p11)
}
  0x5a   :  { %141 = dma.hbm_to_vmem [thread:$0]  %s4181_s9, 256, %s136_s30, [#allocation18], %s3350_s20, %s3350_s20, %s3351_s21  }
  0x5b   :  { %s3132_s27 = scalar_lea.hbm %s4172_s0, 256 }
  0x5c   :  { %p3133_p12 = scmp.ne.s32.totalorder %s4172_s0, %s3132_s27  ;;  %p3136_p13 = scmp.lt.u32.totalorder %s3132_s27, %s4172_s0 }
  0x5e   :  { %p3138_p0 = pnand %p3136_p13, %p3133_p12 }
  0x60   :  { %3141 = shalt.err (!%p3138_p0)
}
  0x61   :  { %s3142_s28 = scalar_lea.vmem %s3507_s3, 256  ;;  %p3147_p2 = scmp.lt.s32.totalorder %s3507_s3, %s3507_s3 }
  0x62   :  { %p3143_p1 = scmp.ne.s32.totalorder %s3507_s3, %s3142_s28  ;;  %p3148_p3 = scmp.lt.s32.totalorder %s3142_s28, %s3142_s28 }
  0x64   :  { %p3149_p4 = por %p3148_p3, %p3147_p2 }
  0x66   :  { %p3150_p5 = pnand %p3149_p4, %p3143_p1 }
  0x68   :  { %3153 = shalt.err (!%p3150_p5)
}
  0x69   :  { %39 = dma.hbm_to_vmem [thread:$0]  %s4172_s0, 256, %s3507_s3, [#allocation3], %s3350_s20, %s3350_s20, %s3351_s21  }
  0x6a   :  { %s3356_s15 = smov [#allocation7]   ;;  %s3357_s1 = smov [#allocation10]  }
  0x6b   :  { %s57_s16 = sshll.u32 %s3356_s15, 4  ;;  %s81_s26 = sshll.u32 %s3357_s1, 4  ;;  %s58_s16 = int_to_ptr.vmem [resolvable:$true] %s57_s16  ;;  %s3544_s26 = int_to_ptr.vmem [resolvable:$true] %s81_s26 }
  0x6c   :  { %s3154_s7 = scalar_lea.hbm %s4174_s2, 256 }
  0x6d   :  { %p3155_p6 = scmp.ne.s32.totalorder %s4174_s2, %s3154_s7  ;;  %p3158_p7 = scmp.lt.u32.totalorder %s3154_s7, %s4174_s2 }
  0x6f   :  { %p3160_p8 = pnand %p3158_p7, %p3155_p6 }
  0x71   :  { %3163 = shalt.err (!%p3160_p8)
}
  0x72   :  { %s3164_s0 = scalar_lea.vmem %s58_s16, 256  ;;  %p3169_p10 = scmp.lt.s32.totalorder %s58_s16, %s58_s16 }
  0x73   :  { %p3165_p9 = scmp.ne.s32.totalorder %s58_s16, %s3164_s0  ;;  %p3170_p11 = scmp.lt.s32.totalorder %s3164_s0, %s3164_s0 }
  0x75   :  { %p3171_p12 = por %p3170_p11, %p3169_p10 }
  0x77   :  { %p3172_p13 = pnand %p3171_p12, %p3165_p9 }
  0x79   :  { %3175 = shalt.err (!%p3172_p13)
}
  0x7a   :  { %63 = dma.hbm_to_vmem [thread:$0]  %s4174_s2, 256, %s58_s16, [#allocation6], %s3350_s20, %s3350_s20, %s3351_s21  }
  0x7b   :  { %s3176_s29 = scalar_lea.hbm %s4176_s4, 256 }
  0x7c   :  { %p3177_p0 = scmp.ne.s32.totalorder %s4176_s4, %s3176_s29  ;;  %p3180_p1 = scmp.lt.u32.totalorder %s3176_s29, %s4176_s4 }
  0x7e   :  { %p3182_p2 = pnand %p3180_p1, %p3177_p0 }
  0x80   :  { %3185 = shalt.err (!%p3182_p2)
}
  0x81   :  { %s3186_s15 = scalar_lea.vmem %s3544_s26, 256  ;;  %p3191_p4 = scmp.lt.s32.totalorder %s3544_s26, %s3544_s26 }
  0x82   :  { %p3187_p3 = scmp.ne.s32.totalorder %s3544_s26, %s3186_s15  ;;  %p3192_p5 = scmp.lt.s32.totalorder %s3186_s15, %s3186_s15 }
  0x84   :  { %p3193_p6 = por %p3192_p5, %p3191_p4 }
  0x86   :  { %p3194_p7 = pnand %p3193_p6, %p3187_p3 }
  0x88   :  { %3197 = shalt.err (!%p3194_p7)
}
  0x89   :  { %87 = dma.hbm_to_vmem [thread:$0]  %s4176_s4, 256, %s3544_s26, [#allocation9], %s3350_s20, %s3350_s20, %s3351_s21  }
  0x8a   :  { %s3358_s1 = smov [#allocation13]   ;;  %s3359_s19 = smov [#allocation16]  }
  0x8b   :  { %s106_s17 = sshll.u32 %s3358_s1, 4  ;;  %s126_s7 = sshll.u32 %s3359_s19, 4  ;;  %s107_s17 = int_to_ptr.vmem [resolvable:$true] %s106_s17  ;;  %s127_s7 = int_to_ptr.vmem [resolvable:$true] %s126_s7 }
  0x8c   :  { %s3198_s24 = scalar_lea.hbm %s4178_s6, 16 }
  0x8d   :  { %p3199_p8 = scmp.ne.s32.totalorder %s4178_s6, %s3198_s24  ;;  %p3202_p9 = scmp.lt.u32.totalorder %s3198_s24, %s4178_s6 }
  0x8f   :  { %p3204_p10 = pnand %p3202_p9, %p3199_p8 }
  0x91   :  { %3207 = shalt.err (!%p3204_p10)
}
  0x92   :  { %s3208_s4 = scalar_lea.vmem %s107_s17, 16  ;;  %s3212_s20 = scalar_lea.vmem %s107_s17, 32 }
  0x93   :  { %p3209_p11 = scmp.ne.s32.totalorder %s107_s17, %s3208_s4  ;;  %p3213_p12 = scmp.lt.s32.totalorder %s107_s17, %s107_s17 }
  0x94   :  { %p3214_p13 = scmp.lt.s32.totalorder %s3212_s20, %s3208_s4 }
  0x96   :  { %p3215_p0 = por %p3214_p13, %p3213_p12 }
  0x98   :  { %p3216_p1 = pnand %p3215_p0, %p3209_p11 }
  0x9a   :  { %3219 = shalt.err (!%p3216_p1)
}
  0x9b   :  { %109 = dma.hbm_to_vmem [thread:$0]  %s4178_s6, 16, %s107_s17, [#allocation12]  }
  0x9c   :  { %s3220_s29 = scalar_lea.hbm %s4180_s8, 16 }
  0x9d   :  { %p3221_p2 = scmp.ne.s32.totalorder %s4180_s8, %s3220_s29  ;;  %p3224_p3 = scmp.lt.u32.totalorder %s3220_s29, %s4180_s8 }
  0x9f   :  { %p3226_p4 = pnand %p3224_p3, %p3221_p2 }
  0xa1   :  { %3229 = shalt.err (!%p3226_p4)
}
  0xa2   :  { %s3230_s15 = scalar_lea.vmem %s127_s7, 16  ;;  %s3234_s2 = scalar_lea.vmem %s127_s7, 32 }
  0xa3   :  { %p3231_p5 = scmp.ne.s32.totalorder %s127_s7, %s3230_s15  ;;  %p3235_p6 = scmp.lt.s32.totalorder %s127_s7, %s127_s7 }
  0xa4   :  { %p3236_p7 = scmp.lt.s32.totalorder %s3234_s2, %s3230_s15 }
  0xa6   :  { %p3237_p8 = por %p3236_p7, %p3235_p6 }
  0xa8   :  { %p3238_p9 = pnand %p3237_p8, %p3231_p5 }
  0xaa   :  { %3241 = shalt.err (!%p3238_p9)
}
  0xab   :  { %129 = dma.hbm_to_vmem [thread:$0]  %s4180_s8, 16, %s127_s7, [#allocation15]  }
  0xac   :  { %s3360_s1 = smov [#allocation19]   ;;  %s3361_s19 = smov [#allocation20]  }
  0xad   :  { %s148_s17 = sshll.u32 %s3360_s1, 4  ;;  %s158_s22 = sshll.u32 %s3361_s19, 4  ;;  %s149_s17 = int_to_ptr.vmem [resolvable:$true] %s148_s17  ;;  %s159_s22 = int_to_ptr.vmem [resolvable:$true] %s158_s22 }
  0xae   :  { %s3242_s25 = scalar_lea.hbm %s4182_s10, 16 }
  0xaf   :  { %p3243_p10 = scmp.ne.s32.totalorder %s4182_s10, %s3242_s25  ;;  %p3246_p11 = scmp.lt.u32.totalorder %s3242_s25, %s4182_s10 }
  0xb1   :  { %p3248_p12 = pnand %p3246_p11, %p3243_p10 }
  0xb3   :  { %3251 = shalt.err (!%p3248_p12)
}
  0xb4   :  { %s3252_s8 = scalar_lea.vmem %s149_s17, 16  ;;  %s3256_s7 = scalar_lea.vmem %s149_s17, 32 }
  0xb5   :  { %p3253_p13 = scmp.ne.s32.totalorder %s149_s17, %s3252_s8  ;;  %p3257_p0 = scmp.lt.s32.totalorder %s149_s17, %s149_s17 }
  0xb6   :  { %p3258_p1 = scmp.lt.s32.totalorder %s3256_s7, %s3252_s8 }
  0xb8   :  { %p3259_p2 = por %p3258_p1, %p3257_p0 }
  0xba   :  { %p3260_p3 = pnand %p3259_p2, %p3253_p13 }
  0xbc   :  { %3263 = shalt.err (!%p3260_p3)
}
  0xbd   :  { %151 = dma.hbm_to_vmem [thread:$0]  %s4182_s10, 16, %s149_s17, [#allocation18]  }
  0xbe   :  { %s3264_s18 = scalar_lea.hbm %s4183_s11, 128 }
  0xbf   :  { %p3265_p4 = scmp.ne.s32.totalorder %s4183_s11, %s3264_s18  ;;  %p3268_p5 = scmp.lt.u32.totalorder %s3264_s18, %s4183_s11 }
  0xc1   :  { %p3270_p6 = pnand %p3268_p5, %p3265_p4 }
  0xc3   :  { %3273 = shalt.err (!%p3270_p6)
}
  0xc4   :  { %s3274_s30 = scalar_lea.vmem %s159_s22, 128  ;;  %p3279_p8 = scmp.lt.s32.totalorder %s159_s22, %s159_s22 }
  0xc5   :  { %p3275_p7 = scmp.ne.s32.totalorder %s159_s22, %s3274_s30  ;;  %p3280_p9 = scmp.lt.s32.totalorder %s3274_s30, %s3274_s30 }
  0xc7   :  { %p3281_p10 = por %p3280_p9, %p3279_p8 }
  0xc9   :  { %p3282_p11 = pnand %p3281_p10, %p3275_p7 }
  0xcb   :  { %3285 = shalt.err (!%p3282_p11)
}
  0xcc   :  { %161 = dma.hbm_to_vmem [thread:$0]  %s4183_s11, 128, %s159_s22, [#allocation21]  }
  0xcd   :  { %3330 = dma.done.wait [#allocation3], 256  }
  0xce   :  { %3331 = vsyncadd [#allocation3], 4294967040 }
  0xcf   :  { %3332 = dma.done.wait [#allocation6], 512  }
  0xd0   :  { %3333 = vsyncadd [#allocation6], 4294966784 }
  0xd1   :  { %3334 = dma.done.wait [#allocation9], 512  }
  0xd2   :  { %3335 = vsyncadd [#allocation9], 4294966784 }
  0xd3   :  { %3336 = dma.done.wait [#allocation12], 272  }
  0xd4   :  { %3337 = vsyncadd [#allocation12], 4294967024 }
  0xd5   :  { %3338 = dma.done.wait [#allocation15], 32  }
  0xd6   :  { %3339 = vsyncadd [#allocation15], 4294967264 }
  0xd7   :  { %3340 = dma.done.wait [#allocation18], 272  }
  0xd8   :  { %3341 = vsyncadd [#allocation18], 4294967024 }
  0xd9   :  { %3342 = dma.done.wait [#allocation21], 128  }
  0xda   :  { %3343 = vsyncadd [#allocation21], 4294967168  ;;  %v2944_v0 = vld [vmem:[#allocation8] sm:$0xff]   ;;  %v2945_v1 = vld [vmem:[#allocation10] sm:$0xff]   ;;  %vm236_vm0 = vcmask 261120   ;;  %v3362_v12 = vmov 0.0  }
  0xdb   :  { %2650 = vmatprep.subr.bf16.mxu0 %v2944_v0  ;;  %v2946_v2 = vld [vmem:[#allocation8 + $0x8] sm:$0xff]   ;;  %2658 = vmatprep.subr.bf16.mxu1 %v2945_v1  ;;  %v2947_v3 = vld [vmem:[#allocation10 + $0x8] sm:$0xff]   ;;  %v2948_v4 = vld [vmem:[#allocation2] sm:$0xff]   ;;  %vm3363_vm1 = vmmov 0   ;;  %s3364_s11 = smov 120   ;;  %vm645_vm2 = vcmask 64512  }
  0xdc   :  { %2651 = vmatpush3.bf16.msra.mxu0 %v2944_v0  ;;  %2659 = vmatpush3.bf16.msra.mxu1 %v2945_v1  ;;  %v2949_v5 = vld [vmem:[#allocation5] sm:$0xff]   ;;  %v2950_v6 = vld [vmem:[#allocation2 + $0x8] sm:$0xff]   ;;  %v2951_v7 = vld [vmem:[#allocation5 + $0x8] sm:$0xff]   ;;  %s3365_s2 = smov 104   ;;  %s3366_s6 = smov 112   ;;  %vm1593_vm3 = vcmask 1043456  }
  0xdd   :  { %2652 = vmatprep.subr.bf16.mxu0 %v2946_v2  ;;  %2660 = vmatprep.subr.bf16.mxu1 %v2947_v3  ;;  %v2952_v8 = vld [vmem:[#allocation11] sm:$0xff]   ;;  %v2953_v9 = vld [vmem:[#allocation11 + $0x8] sm:$0xff]   ;;  %v2954_v10 = vld [vmem:[#allocation7] sm:$0xff]   ;;  %s3367_s16 = smov 8   ;;  %s3368_s1 = smov 16   ;;  %vm2379_vm4 = vcmask 130048  }
  0xde   :  { %2654 = vmatprep.mubr.msk.bf16.mxu0 %vm236_vm0, %v2948_v4  ;;  %2662 = vmatprep.mubr.msk.bf16.mxu1 %vm236_vm0, %v2949_v5  ;;  %v2955_v11 = vld [vmem:[#allocation7 + $0x8] sm:$0xff]   ;;  %v2512_v13 = vld [vmem:[#allocation13] ss:$0 sm:$0xff]  ;;  %v2519_v15 = vld [vmem:[#allocation14] ss:$0 sm:$0xff]  ;;  %s3369_s17 = smov 24  }
  0xdf   :  { %v2526_v35 = vld [vmem:[#allocation16] ss:$0 sm:$0xff]  ;;  %vm2384_vm5 = vcmask 195584   ;;  %s3370_s19 = smov [#allocation23]  }
  0xe0   :  { %2653 = vmatpush3.bf16.msra.mxu0 %v2946_v2  ;;  %2661 = vmatpush3.bf16.msra.mxu1 %v2947_v3  ;;  %s2490_s22 = sshll.u32 %s3370_s19, 4  ;;  %s2491_s22 = int_to_ptr.vmem [resolvable:$true] %s2490_s22 }
  0xe1   :  { %2666 = vmatprep.subr.bf16.mxu0 %v2952_v8  ;;  %2674 = vmatprep.subr.bf16.mxu1 %v3362_v12  ;;  %s3286_s23 = scalar_lea.vmem %s2491_s22, 2048  ;;  %p3291_p13 = scmp.lt.s32.totalorder %s2491_s22, %s2491_s22 }
  0xe2   :  { %p3287_p12 = scmp.ne.s32.totalorder %s2491_s22, %s3286_s23  ;;  %p3292_p0 = scmp.lt.s32.totalorder %s3286_s23, %s3286_s23 }
  0xe3   :  { %2655 = vmatmul.mubr.msk.bf16.vlgmr.msra.gmra.mrb[0].mxu0 %vm236_vm0, %v2950_v6  ;;  %2663 = vmatmul.mubr.msk.bf16.vlgmr.msra.gmra.mrb[0].mxu1 %vm236_vm0, %v2951_v7 }
  0xe4   :  { %2667 = vmatpush3.bf16.msra.mxu0 %v2952_v8  ;;  %2670 = vmatprep.mubr.msk.bf16.mxu0 %vm236_vm0, %v2954_v10  ;;  %p3293_p1 = por %p3292_p0, %p3291_p13 }
  0xe5   :  { %2668 = vmatprep.subr.bf16.mxu0 %v2953_v9  ;;  %2676 = vmatprep.mubr.msk.bf16.mxu1 %vm3363_vm1, %v3362_v12 }
  0xe6   :  { %p3294_p2 = pnand %p3293_p1, %p3287_p12 }
  0xe8   :  { %2669 = vmatpush3.bf16.msra.mxu0 %v2953_v9 }
  0xe9   :  { %2680 = vmatprep.subr.bf16.mxu0 %v3362_v12 }
  0xeb   :  { %2671 = vmatmul.mubr.msk.bf16.vlgmr.msra.gmra.mrb[4].mxu0 %vm236_vm0, %v2955_v11 }
  0xec   :  { %2682 = vmatprep.mubr.msk.bf16.mxu0 %vm3363_vm1, %v3362_v12 }
 0x1b6   :  { %v2656_v14 = vpop.f32.mrb[0].mxu0  ;;  %v2664_v16 = vpop.f32.mrb[0].mxu1 }
 0x1b7   :  { %v277_v17 = vpop.f32.mrb[1].mxu0  ;;  %v369_v19 = vpop.f32.mrb[1].mxu1  ;;  %v3668_v30 = vadd.f32 %v2664_v16, %v2519_v15  ;;  %v3674_v31 = vadd.f32 %v2656_v14, %v2512_v13 }
 0x1b8   :  { %v278_v18 = vadd.f32 %v2512_v13, %v277_v17  ;;  %v2657_v20 = vpop.f32.mrb[2].mxu0  ;;  %v370_v21 = vadd.f32 %v2519_v15, %v369_v19  ;;  %v2665_v22 = vpop.f32.mrb[2].mxu1 }
 0x1b9   :  { %v280_v23 = vpop.f32.mrb[3].mxu0  ;;  %v372_v24 = vpop.f32.mrb[3].mxu1  ;;  %v3684_v32 = vadd.f32 %v2665_v22, %v2519_v15  ;;  %v3690_v33 = vadd.f32 %v2657_v20, %v2512_v13 }
 0x1ba   :  { %480 = vrot.lane.b32.xlu1 %v278_v18, %s3364_s11  ;;  %536 = vrot.lane.b32.xlu0 %v370_v21, %s3364_s11  ;;  %v572_v25 = vpack.c.bf16 %v370_v21, %v370_v21  ;;  %v516_v27 = vpack.c.bf16 %v278_v18, %v278_v18  ;;  %v3649_v28 = vadd.f32 %v2519_v15, %v372_v24 }
 0x1bb   :  { %v3658_v29 = vadd.f32 %v2512_v13, %v280_v23  ;;  %v580_v13 = vpack.c.bf16 %v3668_v30, %v3668_v30  ;;  %v524_v23 = vpack.c.bf16 %v3674_v31, %v3674_v31 }
 0x1bc   :  { %v650_v26 = vsel %vm645_vm2, %v572_v25, 0  ;;  %v576_v58 = vpack.c.bf16 %v3649_v28, %v3649_v28 }
 0x1bd   :  { %2675 = vmatpush3.bf16.xpose.msra.mxu1 %v650_v26  ;;  %v520_v5 = vpack.c.bf16 %v3658_v29, %v3658_v29  ;;  %v1018_v17 = vsel %vm645_vm2, %v580_v13, 0 }
 0x1be   :  { %560 = vrot.lane.b32.xlu1 %v370_v21, %s3365_s2  ;;  %548 = vrot.lane.b32.xlu0 %v370_v21, %s3366_s6  ;;  %v2672_v34 = vpop.f32.mrb[4].mxu0  ;;  %v834_v62 = vsel %vm645_vm2, %v576_v58, 0 }
 0x1bf   :  { %2686 = vmatprep.subr.bf16.mxu1 %v3362_v12  ;;  %v3700_v36 = vadd.f32 %v2672_v34, %v2526_v35  ;;  %v461_v37 = vpop.f32.mrb[5].mxu0 }
 0x1c0   :  { %v3702_v38 = vadd.f32 %v2526_v35, %v461_v37  ;;  %v2673_v39 = vpop.f32.mrb[6].mxu0 }
 0x1c1   :  { %v3704_v40 = vadd.f32 %v2673_v39, %v2526_v35  ;;  %v464_v41 = vpop.f32.mrb[7].mxu0 }
 0x1c2   :  { %504 = vrot.lane.b32.xlu1 %v278_v18, %s3365_s2  ;;  %492 = vrot.lane.b32.xlu0 %v278_v18, %s3366_s6  ;;  %v3706_v42 = vadd.f32 %v2526_v35, %v464_v41 }
 0x1c4   :  { %2677 = vmatmul.mubr.msk.bf16.vlgmr.msra.gmra.mrb[4].mxu1 %vm645_vm2, %v516_v27  ;;  %v3710_v43 = vpack.i.bf16 %v3706_v42, %v3702_v38 }
 0x1c5   :  { %2688 = vmatprep.mubr.msk.bf16.mxu1 %vm3363_vm1, %v3362_v12 }
 0x1c6   :  { %550 = vrot.lane.b32.xlu1 %v3649_v28, %s3366_s6  ;;  %538 = vrot.lane.b32.xlu0 %v3649_v28, %s3364_s11 }
 0x1ca   :  { %562 = vrot.lane.b32.xlu1 %v3649_v28, %s3365_s2  ;;  %482 = vrot.lane.b32.xlu0 %v3658_v29, %s3364_s11 }
 0x1ce   :  { %506 = vrot.lane.b32.xlu1 %v3658_v29, %s3365_s2  ;;  %494 = vrot.lane.b32.xlu0 %v3658_v29, %s3366_s6 }
 0x1d2   :  { %552 = vrot.lane.b32.xlu1 %v3668_v30, %s3366_s6  ;;  %540 = vrot.lane.b32.xlu0 %v3668_v30, %s3364_s11 }
 0x1d6   :  { %564 = vrot.lane.b32.xlu1 %v3668_v30, %s3365_s2  ;;  %484 = vrot.lane.b32.xlu0 %v3674_v31, %s3364_s11  ;;  %v584_v30 = vpack.c.bf16 %v3684_v32, %v3684_v32 }
 0x1d8   :  { %v1202_v39 = vsel %vm645_vm2, %v584_v30, 0 }
 0x1da   :  { %508 = vrot.lane.b32.xlu1 %v3674_v31, %s3365_s2  ;;  %496 = vrot.lane.b32.xlu0 %v3674_v31, %s3366_s6 }
 0x1de   :  { %554 = vrot.lane.b32.xlu1 %v3684_v32, %s3366_s6  ;;  %542 = vrot.lane.b32.xlu0 %v3684_v32, %s3364_s11 }
 0x1e2   :  { %566 = vrot.lane.b32.xlu1 %v3684_v32, %s3365_s2  ;;  %486 = vrot.lane.b32.xlu0 %v3690_v33, %s3364_s11 }
 0x1e6   :  { %510 = vrot.lane.b32.xlu1 %v3690_v33, %s3365_s2  ;;  %498 = vrot.lane.b32.xlu0 %v3690_v33, %s3366_s6 }
 0x1ea   :  { %2905 = vrot.lane.b32.xlu0 %v3710_v43, %s3366_s6  ;;  %2900 = vrot.lane.b32.xlu1 %v3710_v43, %s3364_s11 }
 0x22c   :  { %v481_v44 = vpop.permute.xlu1 %480  ;;  %v537_v45 = vpop.permute.xlu0 %536 }
 0x22d   :  { %v573_v46 = vpack.c.bf16 %v537_v45, %v537_v45  ;;  %v517_v55 = vpack.c.bf16 %v481_v44, %v481_v44 }
 0x22f   :  { %v696_v47 = vsel %vm645_vm2, %v573_v46, 0 }
 0x230   :  { %v561_v48 = vpop.permute.xlu1 %560  ;;  %v549_v49 = vpop.permute.xlu0 %548  ;;  %2681 = vmatpush3.bf16.xpose.msra.mxu0 %v696_v47  ;;  %v528_v47 = vpack.c.bf16 %v3690_v33, %v3690_v33 }
 0x231   :  { %v574_v50 = vpack.c.bf16 %v549_v49, %v549_v49  ;;  %2692 = vmatprep.subr.bf16.mxu0 %v3362_v12  ;;  %v575_v52 = vpack.c.bf16 %v561_v48, %v561_v48 }
 0x233   :  { %v742_v51 = vsel %vm645_vm2, %v574_v50, 0  ;;  %v788_v56 = vsel %vm645_vm2, %v575_v52, 0 }
 0x234   :  { %v505_v53 = vpop.permute.xlu1 %504  ;;  %v493_v54 = vpop.permute.xlu0 %492  ;;  %2687 = vmatpush3.bf16.xpose.msra.mxu1 %v742_v51  ;;  %v628_v51 = vpack.c.bf16 %v3702_v38, %v3702_v38 }
 0x235   :  { %2698 = vmatprep.subr.bf16.mxu1 %v3362_v12  ;;  %v518_v60 = vpack.c.bf16 %v493_v54, %v493_v54  ;;  %v519_v1 = vpack.c.bf16 %v505_v53, %v505_v53 }
 0x236   :  { %v1595_v54 = vsel %vm1593_vm3, %v628_v51, 0 }
 0x237   :  { %2683 = vmatmul.mubr.msk.bf16.vlgmr.msra.gmra.mrb[8].mxu0 %vm645_vm2, %v517_v55 }
 0x238   :  { %v551_v57 = vpop.permute.xlu1 %550  ;;  %v539_v59 = vpop.permute.xlu0 %538  ;;  %2693 = vmatpush3.bf16.xpose.msra.mxu0 %v788_v56  ;;  %2694 = vmatprep.mubr.msk.bf16.mxu0 %vm3363_vm1, %v3362_v12  ;;  %v3807_v56 = vld [vmem:[#allocation20] sm:$0xff] }
 0x239   :  { %2704 = vmatprep.subr.bf16.mxu0 %v3362_v12  ;;  %v577_v61 = vpack.c.bf16 %v539_v59, %v539_v59  ;;  %v578_v3 = vpack.c.bf16 %v551_v57, %v551_v57 }
 0x23b   :  { %2689 = vmatmul.mubr.msk.bf16.vlgmr.msra.gmra.mrb[8].mxu1 %vm645_vm2, %v518_v60  ;;  %v880_v2 = vsel %vm645_vm2, %v577_v61, 0  ;;  %v926_v7 = vsel %vm645_vm2, %v578_v3, 0 }
 0x23c   :  { %v483_v63 = vpop.permute.xlu0 %482  ;;  %v563_v0 = vpop.permute.xlu1 %562  ;;  %2699 = vmatpush3.bf16.xpose.msra.mxu1 %v834_v62  ;;  %2700 = vmatprep.mubr.msk.bf16.mxu1 %vm3363_vm1, %v3362_v12 }
 0x23d   :  { %2710 = vmatprep.subr.bf16.mxu1 %v3362_v12  ;;  %v579_v8 = vpack.c.bf16 %v563_v0, %v563_v0  ;;  %v521_v9 = vpack.c.bf16 %v483_v63, %v483_v63 }
 0x23f   :  { %2695 = vmatmul.mubr.msk.bf16.vlgmr.msra.gmra.mrb[12].mxu0 %vm645_vm2, %v519_v1  ;;  %v972_v11 = vsel %vm645_vm2, %v579_v8, 0 }
 0x240   :  { %v495_v4 = vpop.permute.xlu0 %494  ;;  %2705 = vmatpush3.bf16.xpose.msra.mxu0 %v880_v2  ;;  %2706 = vmatprep.mubr.msk.bf16.mxu0 %vm3363_vm1, %v3362_v12  ;;  %v507_v6 = vpop.permute.xlu1 %506 }
 0x241   :  { %2716 = vmatprep.subr.bf16.mxu0 %v3362_v12  ;;  %v522_v15 = vpack.c.bf16 %v495_v4, %v495_v4  ;;  %v523_v19 = vpack.c.bf16 %v507_v6, %v507_v6 }
 0x243   :  { %2701 = vmatmul.mubr.msk.bf16.vlgmr.msra.gmra.mrb[12].mxu1 %vm645_vm2, %v520_v5 }
 0x244   :  { %2711 = vmatpush3.bf16.xpose.msra.mxu1 %v926_v7  ;;  %2712 = vmatprep.mubr.msk.bf16.mxu1 %vm3363_vm1, %v3362_v12  ;;  %v541_v10 = vpop.permute.xlu0 %540  ;;  %v553_v14 = vpop.permute.xlu1 %552 }
 0x245   :  { %2722 = vmatprep.subr.bf16.mxu1 %v3362_v12  ;;  %v581_v16 = vpack.c.bf16 %v541_v10, %v541_v10  ;;  %v582_v22 = vpack.c.bf16 %v553_v14, %v553_v14 }
 0x247   :  { %2707 = vmatmul.mubr.msk.bf16.vlgmr.msra.gmra.mrb[16].mxu0 %vm645_vm2, %v521_v9  ;;  %v1064_v21 = vsel %vm645_vm2, %v581_v16, 0  ;;  %v1110_v25 = vsel %vm645_vm2, %v582_v22, 0 }
 0x248   :  { %2717 = vmatpush3.bf16.xpose.msra.mxu0 %v972_v11  ;;  %2718 = vmatprep.mubr.msk.bf16.mxu0 %vm3363_vm1, %v3362_v12  ;;  %v485_v18 = vpop.permute.xlu0 %484  ;;  %v565_v20 = vpop.permute.xlu1 %564 }
 0x249   :  { %2728 = vmatprep.subr.bf16.mxu0 %v3362_v12  ;;  %v583_v26 = vpack.c.bf16 %v565_v20, %v565_v20  ;;  %v525_v28 = vpack.c.bf16 %v485_v18, %v485_v18 }
 0x24b   :  { %2713 = vmatmul.mubr.msk.bf16.vlgmr.msra.gmra.mrb[16].mxu1 %vm645_vm2, %v522_v15  ;;  %v1156_v29 = vsel %vm645_vm2, %v583_v26, 0 }
 0x24c   :  { %2723 = vmatpush3.bf16.xpose.msra.mxu1 %v1018_v17  ;;  %2724 = vmatprep.mubr.msk.bf16.mxu1 %vm3363_vm1, %v3362_v12  ;;  %v497_v24 = vpop.permute.xlu0 %496  ;;  %v509_v27 = vpop.permute.xlu1 %508 }
 0x24d   :  { %2734 = vmatprep.subr.bf16.mxu1 %v3362_v12  ;;  %v526_v34 = vpack.c.bf16 %v497_v24, %v497_v24  ;;  %v527_v41 = vpack.c.bf16 %v509_v27, %v509_v27 }
 0x24f   :  { %2719 = vmatmul.mubr.msk.bf16.vlgmr.msra.gmra.mrb[20].mxu0 %vm645_vm2, %v523_v19 }
 0x250   :  { %2729 = vmatpush3.bf16.xpose.msra.mxu0 %v1064_v21  ;;  %2730 = vmatprep.mubr.msk.bf16.mxu0 %vm3363_vm1, %v3362_v12  ;;  %v543_v31 = vpop.permute.xlu0 %542  ;;  %v555_v35 = vpop.permute.xlu1 %554 }
 0x251   :  { %2740 = vmatprep.subr.bf16.mxu0 %v3362_v12  ;;  %v585_v37 = vpack.c.bf16 %v543_v31, %v543_v31  ;;  %v586_v44 = vpack.c.bf16 %v555_v35, %v555_v35 }
 0x253   :  { %2725 = vmatmul.mubr.msk.bf16.vlgmr.msra.gmra.mrb[20].mxu1 %vm645_vm2, %v524_v23  ;;  %v1248_v32 = vsel %vm645_vm2, %v585_v37, 0  ;;  %v1294_v48 = vsel %vm645_vm2, %v586_v44, 0 }
 0x254   :  { %2735 = vmatpush3.bf16.xpose.msra.mxu1 %v1110_v25  ;;  %2736 = vmatprep.mubr.msk.bf16.mxu1 %vm3363_vm1, %v3362_v12  ;;  %v487_v45 = vpop.permute.xlu0 %486  ;;  %v567_v46 = vpop.permute.xlu1 %566 }
 0x255   :  { %2746 = vmatprep.subr.bf16.mxu1 %v3362_v12  ;;  %v587_v49 = vpack.c.bf16 %v567_v46, %v567_v46  ;;  %v529_v50 = vpack.c.bf16 %v487_v45, %v487_v45 }
 0x257   :  { %2731 = vmatmul.mubr.msk.bf16.vlgmr.msra.gmra.mrb[24].mxu0 %vm645_vm2, %v525_v28  ;;  %v1340_v33 = vsel %vm645_vm2, %v587_v49, 0 }
 0x258   :  { %2741 = vmatpush3.bf16.xpose.msra.mxu0 %v1156_v29  ;;  %2742 = vmatprep.mubr.msk.bf16.mxu0 %vm3363_vm1, %v3362_v12  ;;  %v499_v52 = vpop.permute.xlu0 %498  ;;  %v511_v55 = vpop.permute.xlu1 %510 }
 0x259   :  { %2752 = vmatprep.subr.bf16.mxu0 %v3362_v12  ;;  %v530_v53 = vpack.c.bf16 %v499_v52, %v499_v52  ;;  %v531_v38 = vpack.c.bf16 %v511_v55, %v511_v55 }
 0x25b   :  { %2737 = vmatmul.mubr.msk.bf16.vlgmr.msra.gmra.mrb[24].mxu1 %vm645_vm2, %v526_v34 }
 0x25c   :  { %2747 = vmatpush3.bf16.xpose.msra.mxu1 %v1202_v39  ;;  %2748 = vmatprep.mubr.msk.bf16.mxu1 %vm3363_vm1, %v3362_v12  ;;  %v3814_v63 = vpop.permute.xlu1 %2900 }
 0x25d   :  { %2758 = vmatprep.subr.bf16.mxu1 %v3362_v12  ;;  %v2902_v0 = vunpack.i.l.bf16 %v3814_v63 }
 0x25f   :  { %2743 = vmatmul.mubr.msk.bf16.vlgmr.msra.gmra.mrb[28].mxu0 %vm645_vm2, %v527_v41  ;;  %v629_v1 = vpack.c.bf16 %v2902_v0, %v2902_v0 }
 0x260   :  { %2753 = vmatpush3.bf16.xpose.msra.mxu0 %v1248_v32  ;;  %2754 = vmatprep.mubr.msk.bf16.mxu0 %vm3363_vm1, %v3362_v12 }
 0x261   :  { %2764 = vmatprep.subr.bf16.mxu0 %v3362_v12  ;;  %v1641_v2 = vsel %vm1593_vm3, %v629_v1, 0 }
 0x263   :  { %2749 = vmatmul.mubr.msk.bf16.vlgmr.msra.gmra.mrb[28].mxu1 %vm645_vm2, %v528_v47 }
 0x264   :  { %2759 = vmatpush3.bf16.xpose.msra.mxu1 %v1294_v48  ;;  %2760 = vmatprep.mubr.msk.bf16.mxu1 %vm3363_vm1, %v3362_v12 }
 0x265   :  { %2770 = vmatprep.subr.bf16.mxu1 %v3362_v12 }
 0x267   :  { %2755 = vmatmul.mubr.msk.bf16.vlgmr.msra.gmra.mrb[32].mxu0 %vm645_vm2, %v529_v50 }
 0x268   :  { %2765 = vmatpush3.bf16.xpose.msra.mxu0 %v1340_v33  ;;  %2766 = vmatprep.mubr.msk.bf16.mxu0 %vm3363_vm1, %v3362_v12 }
 0x269   :  { %2776 = vmatprep.subr.bf16.mxu0 %v3362_v12 }
 0x26b   :  { %2761 = vmatmul.mubr.msk.bf16.vlgmr.msra.gmra.mrb[32].mxu1 %vm645_vm2, %v530_v53 }
 0x26c   :  { %2771 = vmatpush3.bf16.msra.mxu1 %v1595_v54  ;;  %2772 = vmatprep.mubr.msk.bf16.mxu1 %vm3363_vm1, %v3362_v12 }
 0x26d   :  { %2782 = vmatprep.subr.bf16.mxu1 %v3362_v12 }
 0x26f   :  { %2767 = vmatmul.mubr.msk.bf16.vlgmr.msra.gmra.mrb[36].mxu0 %vm645_vm2, %v531_v38 }
 0x270   :  { %2778 = vmatprep.mubr.msk.bf16.mxu0 %vm3363_vm1, %v3362_v12  ;;  %2777 = vmatpush3.bf16.msra.mxu0 %v1641_v2 }
 0x271   :  { %2788 = vmatprep.subr.bf16.mxu0 %v3362_v12 }
 0x297   :  { %v686_v57 = vpop.f32.mrb[4].mxu1 }
 0x298   :  { %v3810_v58 = vadd.f32 %v686_v57, %v3807_v56  ;;  %v2678_v59 = vpop.f32.mrb[5].mxu1 }
 0x299   :  { %v689_v60 = vpop.f32.mrb[6].mxu1 }
 0x29a   :  { %v2679_v61 = vpop.f32.mrb[7].mxu1  ;;  %v1382_v62 = vsel %vm645_vm2, %v3810_v58, -inf }
 0x29b   :  { %1383 = vmax.xlane.f32.xlu0 %v1382_v62 }
 0x30a   :  { %v732_v3 = vpop.f32.mrb[8].mxu0 }
 0x30b   :  { %v3820_v4 = vadd.f32 %v732_v3, %v3807_v56  ;;  %v2684_v5 = vpop.f32.mrb[9].mxu0 }
 0x30c   :  { %v735_v6 = vpop.f32.mrb[10].mxu0 }
 0x30d   :  { %v2685_v7 = vpop.f32.mrb[11].mxu0  ;;  %v1385_v8 = vsel %vm645_vm2, %v3820_v4, -inf }
 0x30e   :  { %1386 = vmax.xlane.f32.xlu1 %v1385_v8  ;;  %v778_v9 = vpop.f32.mrb[8].mxu1 }
 0x30f   :  { %v3825_v10 = vadd.f32 %v778_v9, %v3807_v56  ;;  %v2690_v11 = vpop.f32.mrb[9].mxu1 }
 0x310   :  { %v781_v13 = vpop.f32.mrb[10].mxu1 }
 0x311   :  { %v2691_v14 = vpop.f32.mrb[11].mxu1  ;;  %v1388_v15 = vsel %vm645_vm2, %v3825_v10, -inf }
 0x312   :  { %v824_v16 = vpop.f32.mrb[12].mxu0  ;;  %1389 = vmax.xlane.f32.xlu0 %v1388_v15 }
 0x313   :  { %v3830_v17 = vadd.f32 %v824_v16, %v3807_v56  ;;  %v2696_v18 = vpop.f32.mrb[13].mxu0 }
 0x314   :  { %v827_v19 = vpop.f32.mrb[14].mxu0 }
 0x315   :  { %v2697_v20 = vpop.f32.mrb[15].mxu0  ;;  %v1391_v21 = vsel %vm645_vm2, %v3830_v17, -inf }
 0x316   :  { %1392 = vmax.xlane.f32.xlu0 %v1391_v21  ;;  %v870_v22 = vpop.f32.mrb[12].mxu1 }
 0x317   :  { %v3835_v23 = vadd.f32 %v870_v22, %v3807_v56  ;;  %v2702_v24 = vpop.f32.mrb[13].mxu1 }
 0x318   :  { %v873_v25 = vpop.f32.mrb[14].mxu1 }
 0x319   :  { %v2703_v26 = vpop.f32.mrb[15].mxu1  ;;  %v1394_v27 = vsel %vm645_vm2, %v3835_v23, -inf }
 0x31a   :  { %v916_v28 = vpop.f32.mrb[16].mxu0  ;;  %1395 = vmax.xlane.f32.xlu1 %v1394_v27 }
 0x31b   :  { %v3840_v29 = vadd.f32 %v916_v28, %v3807_v56  ;;  %v2708_v30 = vpop.f32.mrb[17].mxu0 }
 0x31c   :  { %v919_v31 = vpop.f32.mrb[18].mxu0 }
 0x31d   :  { %v2709_v34 = vpop.f32.mrb[19].mxu0  ;;  %v1397_v35 = vsel %vm645_vm2, %v3840_v29, -inf }
 0x31e   :  { %1398 = vmax.xlane.f32.xlu0 %v1397_v35  ;;  %v962_v37 = vpop.f32.mrb[16].mxu1  ;;  %v3871_v35 = vpop.permute.xlu0 %2905 }
 0x31f   :  { %v3845_v39 = vadd.f32 %v962_v37, %v3807_v56  ;;  %v2714_v41 = vpop.f32.mrb[17].mxu1 }
 0x320   :  { %v965_v32 = vpop.f32.mrb[18].mxu1 }
 0x321   :  { %v2715_v44 = vpop.f32.mrb[19].mxu1  ;;  %v1400_v45 = vsel %vm645_vm2, %v3845_v39, -inf }
 0x322   :  { %v1008_v46 = vpop.f32.mrb[20].mxu0  ;;  %1401 = vmax.xlane.f32.xlu1 %v1400_v45 }
 0x323   :  { %v3850_v47 = vadd.f32 %v1008_v46, %v3807_v56  ;;  %v2720_v48 = vpop.f32.mrb[21].mxu0 }
 0x324   :  { %v1011_v49 = vpop.f32.mrb[22].mxu0 }
 0x325   :  { %v2721_v50 = vpop.f32.mrb[23].mxu0  ;;  %v1403_v51 = vsel %vm645_vm2, %v3850_v47, -inf }
 0x326   :  { %1404 = vmax.xlane.f32.xlu0 %v1403_v51  ;;  %v1054_v52 = vpop.f32.mrb[20].mxu1 }
 0x327   :  { %v3855_v33 = vadd.f32 %v1054_v52, %v3807_v56  ;;  %v2726_v53 = vpop.f32.mrb[21].mxu1 }
 0x328   :  { %v1057_v54 = vpop.f32.mrb[22].mxu1  ;;  %v1384_v37 = vpop.xlane.xlu0 %1383 }
 0x329   :  { %v2727_v55 = vpop.f32.mrb[23].mxu1  ;;  %v1406_v38 = vsel %vm645_vm2, %v3855_v33, -inf  ;;  %v1430_v41 = vsub.f32 %v3810_v58, %v1384_v37 }
 0x32a   :  { %v1100_v57 = vpop.f32.mrb[24].mxu0  ;;  %1407 = vmax.xlane.f32.xlu1 %v1406_v38 }
 0x32b   :  { %v3860_v59 = vadd.f32 %v1100_v57, %v3807_v56  ;;  %v2732_v60 = vpop.f32.mrb[25].mxu0  ;;  %v1446_v32 = vmul.f32 1.442695, %v1430_v41 }
 0x32c   :  { %v1103_v61 = vpop.f32.mrb[26].mxu0 }
 0x32d   :  { %v2733_v62 = vpop.f32.mrb[27].mxu0  ;;  %v1409_v0 = vsel %vm645_vm2, %v3860_v59, -inf  ;;  %2958 = vpow2.f32 %v1446_v32 }
 0x32e   :  { %1410 = vmax.xlane.f32.xlu0 %v1409_v0  ;;  %v1146_v1 = vpop.f32.mrb[24].mxu1 }
 0x32f   :  { %v2738_v2 = vpop.f32.mrb[25].mxu1 }
 0x330   :  { %v1149_v3 = vpop.f32.mrb[26].mxu1 }
 0x331   :  { %v2739_v5 = vpop.f32.mrb[27].mxu1 }
 0x332   :  { %v1192_v6 = vpop.f32.mrb[28].mxu0 }
 0x333   :  { %v3865_v7 = vadd.f32 %v1192_v6, %v3807_v56  ;;  %v2744_v8 = vpop.f32.mrb[29].mxu0 }
 0x334   :  { %v1195_v9 = vpop.f32.mrb[30].mxu0 }
 0x335   :  { %v2745_v11 = vpop.f32.mrb[31].mxu0  ;;  %v1415_v13 = vsel %vm645_vm2, %v3865_v7, -inf }
 0x336   :  { %1416 = vmax.xlane.f32.xlu0 %v1415_v13  ;;  %v1238_v14 = vpop.f32.mrb[28].mxu1 }
 0x337   :  { %v2750_v15 = vpop.f32.mrb[29].mxu1  ;;  %v3880_v44 = vadd.f32 %v1238_v14, %v3807_v56  ;;  %v3886_v48 = vpop.eup %2958 }
 0x338   :  { %v1241_v16 = vpop.f32.mrb[30].mxu1  ;;  %v1478_v50 = vsel %vm645_vm2, %v3886_v48, 0.0 }
 0x339   :  { %v2751_v18 = vpop.f32.mrb[31].mxu1  ;;  %v1418_v46 = vsel %vm645_vm2, %v3880_v44, -inf }
 0x33a   :  { %v1284_v19 = vpop.f32.mrb[32].mxu0 }
 0x33b   :  { %v2756_v20 = vpop.f32.mrb[33].mxu0  ;;  %2910 = vrot.lane.b32.xlu1 %v3710_v43, %s3365_s2  ;;  %v3877_v43 = vadd.f32 %v1146_v1, %v3807_v56  ;;  %v3889_v58 = vadd.f32 %v1284_v19, %v3807_v56 }
 0x33c   :  { %v1287_v21 = vpop.f32.mrb[34].mxu0 }
 0x33d   :  { %v2757_v22 = vpop.f32.mrb[35].mxu0  ;;  %v1412_v45 = vsel %vm645_vm2, %v3877_v43, -inf  ;;  %v1421_v52 = vsel %vm645_vm2, %v3889_v58, -inf }
 0x33e   :  { %v1330_v24 = vpop.f32.mrb[32].mxu1 }
 0x33f   :  { %v2762_v25 = vpop.f32.mrb[33].mxu1  ;;  %v3892_v49 = vadd.f32 %v1330_v24, %v3807_v56 }
 0x340   :  { %v1333_v26 = vpop.f32.mrb[34].mxu1 }
 0x341   :  { %v2763_v27 = vpop.f32.mrb[35].mxu1  ;;  %v1424_v53 = vsel %vm645_vm2, %v3892_v49, -inf }
 0x342   :  { %v1376_v28 = vpop.f32.mrb[36].mxu0 }
 0x343   :  { %v2768_v30 = vpop.f32.mrb[37].mxu0  ;;  %v3897_v51 = vadd.f32 %v1376_v28, %v3807_v56 }
 0x344   :  { %v1379_v31 = vpop.f32.mrb[38].mxu0 }
 0x345   :  { %v2769_v34 = vpop.f32.mrb[39].mxu0  ;;  %v1427_v54 = vsel %vm645_vm2, %v3897_v51, -inf }
 0x34c   :  { %596 = vrot.lane.b32.xlu0 %v3700_v36, %s3364_s11 }
 0x35f   :  { %1413 = vmax.xlane.f32.xlu1 %v1412_v45 }
 0x363   :  { %1419 = vmax.xlane.f32.xlu1 %v1418_v46 }
 0x367   :  { %1479 = vadd.xlane.f32.xlu1 %v1478_v50 }
 0x36b   :  { %1422 = vmax.xlane.f32.xlu0 %v1421_v52  ;;  %1425 = vmax.xlane.f32.xlu1 %v1424_v53 }
 0x36f   :  { %1428 = vmax.xlane.f32.xlu0 %v1427_v54 }
 0x39b   :  { %v1387_v55 = vpop.xlane.xlu1 %1386 }
 0x39c   :  { %v1431_v38 = vsub.f32 %v3820_v4, %v1387_v55 }
 0x39e   :  { %v1448_v57 = vmul.f32 1.442695, %v1431_v38 }
 0x39f   :  { %v1390_v60 = vpop.xlane.xlu0 %1389 }
 0x3a0   :  { %2960 = vpow2.f32 %v1448_v57  ;;  %v1432_v56 = vsub.f32 %v3825_v10, %v1390_v60 }
 0x3a2   :  { %v1450_v61 = vmul.f32 1.442695, %v1432_v56 }
 0x3a3   :  { %v1393_v62 = vpop.xlane.xlu0 %1392 }
 0x3a4   :  { %2962 = vpow2.f32 %v1450_v61  ;;  %v1433_v0 = vsub.f32 %v3830_v17, %v1393_v62 }
 0x3a6   :  { %v1452_v1 = vmul.f32 1.442695, %v1433_v0 }
 0x3a7   :  { %v1396_v2 = vpop.xlane.xlu1 %1395 }
 0x3a8   :  { %2964 = vpow2.f32 %v1452_v1  ;;  %v1434_v3 = vsub.f32 %v3835_v23, %v1396_v2 }
 0x3aa   :  { %v3909_v5 = vpop.eup %2960  ;;  %v1454_v6 = vmul.f32 1.442695, %v1434_v3 }
 0x3ab   :  { %v1399_v8 = vpop.xlane.xlu0 %1398  ;;  %v1481_v4 = vsel %vm645_vm2, %v3909_v5, 0.0 }
 0x3ac   :  { %2966 = vpow2.f32 %v1454_v6  ;;  %v1435_v10 = vsub.f32 %v3840_v29, %v1399_v8  ;;  %1482 = vadd.xlane.f32.xlu0 %v1481_v4  ;;  %v2907_v4 = vunpack.i.l.bf16 %v3871_v35 }
 0x3ae   :  { %v3914_v9 = vpop.eup %2962  ;;  %v1456_v11 = vmul.f32 1.442695, %v1435_v10 }
 0x3af   :  { %v1402_v17 = vpop.xlane.xlu1 %1401  ;;  %v1484_v13 = vsel %vm645_vm2, %v3914_v9, 0.0 }
 0x3b0   :  { %2968 = vpow2.f32 %v1456_v11  ;;  %v1436_v23 = vsub.f32 %v3845_v39, %v1402_v17  ;;  %1485 = vadd.xlane.f32.xlu1 %v1484_v13 }
 0x3b2   :  { %v3919_v14 = vpop.eup %2964  ;;  %v1458_v15 = vmul.f32 1.442695, %v1436_v23  ;;  %v630_v23 = vpack.c.bf16 %v2907_v4, %v2907_v4 }
 0x3b3   :  { %v1405_v16 = vpop.xlane.xlu0 %1404  ;;  %v1487_v18 = vsel %vm645_vm2, %v3919_v14, 0.0 }
 0x3b4   :  { %2970 = vpow2.f32 %v1458_v15  ;;  %v1437_v29 = vsub.f32 %v3850_v47, %v1405_v16  ;;  %1488 = vadd.xlane.f32.xlu0 %v1487_v18  ;;  %v1687_v16 = vsel %vm1593_vm3, %v630_v23, 0 }
 0x3b6   :  { %v3924_v19 = vpop.eup %2966  ;;  %v1460_v20 = vmul.f32 1.442695, %v1437_v29 }
 0x3b7   :  { %v1490_v21 = vsel %vm645_vm2, %v3924_v19, 0.0  ;;  %v1408_v34 = vpop.xlane.xlu1 %1407 }
 0x3b8   :  { %2972 = vpow2.f32 %v1460_v20  ;;  %1491 = vadd.xlane.f32.xlu1 %v1490_v21  ;;  %v1438_v37 = vsub.f32 %v3855_v33, %v1408_v34 }
 0x3ba   :  { %v3928_v39 = vpop.eup %2968  ;;  %v1462_v41 = vmul.f32 1.442695, %v1438_v37 }
 0x3bb   :  { %v1411_v22 = vpop.xlane.xlu0 %1410  ;;  %v1493_v24 = vsel %vm645_vm2, %v3928_v39, 0.0  ;;  %v3950_v32 = vpop.permute.xlu1 %2910 }
 0x3bc   :  { %v1439_v25 = vsub.f32 %v3860_v59, %v1411_v22  ;;  %1494 = vadd.xlane.f32.xlu0 %v1493_v24 }
 0x3be   :  { %v3933_v26 = vpop.eup %2970  ;;  %v1464_v47 = vmul.f32 1.442695, %v1439_v25 }
 0x3bf   :  { %v1496_v27 = vsel %vm645_vm2, %v3933_v26, 0.0 }
 0x3c0   :  { %2974 = vpow2.f32 %v1464_v47  ;;  %1497 = vadd.xlane.f32.xlu0 %v1496_v27  ;;  %v2912_v47 = vunpack.i.l.bf16 %v3950_v32 }
 0x3c1   :  { %2976 = vpow2.f32 %v1462_v41 }
 0x3c2   :  { %v3937_v28 = vpop.eup %2972 }
 0x3c3   :  { %v1499_v30 = vsel %vm645_vm2, %v3937_v28, 0.0  ;;  %v1417_v45 = vpop.xlane.xlu0 %1416 }
 0x3c4   :  { %1500 = vadd.xlane.f32.xlu0 %v1499_v30  ;;  %v1441_v50 = vsub.f32 %v3865_v7, %v1417_v45 }
 0x3c6   :  { %v1468_v33 = vmul.f32 1.442695, %v1441_v50  ;;  %v2903_v50 = vunpack.i.h.bf16 %v3814_v63 }
 0x3c7   :  { %v3959_v56 = vpop.permute.xlu0 %596 }
 0x3c9   :  { %608 = vrot.lane.b32.xlu1 %v3700_v36, %s3366_s6 }
 0x3ca   :  { %v3943_v31 = vpop.eup %2974 }
 0x3cb   :  { %v1505_v59 = vsel %vm645_vm2, %v3943_v31, 0.0  ;;  %v3952_v46 = vpop.eup %2976 }
 0x3cc   :  { %1506 = vadd.xlane.f32.xlu0 %v1505_v59  ;;  %v1502_v53 = vsel %vm645_vm2, %v3952_v46, 0.0  ;;  %v631_v59 = vpack.c.bf16 %v2912_v47, %v2912_v47 }
 0x3e2   :  { %620 = vrot.lane.b32.xlu0 %v3700_v36, %s3365_s2 }
 0x3ec   :  { %v1414_v52 = vpop.xlane.xlu1 %1413 }
 0x3ed   :  { %v1440_v54 = vsub.f32 %v3877_v43, %v1414_v52  ;;  %1503 = vadd.xlane.f32.xlu1 %v1502_v53 }
 0x3ef   :  { %v1466_v55 = vmul.f32 1.442695, %v1440_v54  ;;  %v1733_v54 = vsel %vm1593_vm3, %v631_v59, 0 }
 0x3f0   :  { %v1420_v38 = vpop.xlane.xlu1 %1419 }
 0x3f1   :  { %2978 = vpow2.f32 %v1466_v55  ;;  %v1442_v57 = vsub.f32 %v3880_v44, %v1420_v38  ;;  %v633_v55 = vpack.c.bf16 %v2903_v50, %v2903_v50  ;;  %v640_v50 = vpack.c.bf16 %v3704_v40, %v3704_v40 }
 0x3f2   :  { %2980 = vpow2.f32 %v1468_v33  ;;  %v632_v33 = vpack.c.bf16 %v3706_v42, %v3706_v42 }
 0x3f3   :  { %v1470_v60 = vmul.f32 1.442695, %v1442_v57 }
 0x3f4   :  { %v1480_v61 = vpop.xlane.xlu1 %1479  ;;  %v1779_v42 = vsel %vm1593_vm3, %v632_v33, 0 }
 0x3f5   :  { %2982 = vpow2.f32 %v1470_v60 }
 0x3f6   :  { %2984 = vrcp.f32 %v1480_v61 }
 0x3f8   :  { %v1423_v7 = vpop.xlane.xlu0 %1422  ;;  %v1426_v62 = vpop.xlane.xlu1 %1425 }
 0x3f9   :  { %v1443_v0 = vsub.f32 %v3889_v58, %v1423_v7  ;;  %v1444_v43 = vsub.f32 %v3892_v49, %v1426_v62  ;;  %v2913_v7 = vunpack.i.h.bf16 %v3950_v32 }
 0x3fb   :  { %v3963_v1 = vpop.eup %2978  ;;  %v1472_v2 = vmul.f32 1.442695, %v1443_v0  ;;  %v1474_v3 = vmul.f32 1.442695, %v1444_v43  ;;  %v1825_v0 = vsel %vm1593_vm3, %v633_v55, 0 }
 0x3fc   :  { %v1429_v6 = vpop.xlane.xlu0 %1428  ;;  %v1508_v44 = vsel %vm645_vm2, %v3963_v1, 0.0  ;;  %v3967_v8 = vpop.eup %2980 }
 0x3fd   :  { %2986 = vpow2.f32 %v1472_v2  ;;  %v1445_v10 = vsub.f32 %v3897_v51, %v1429_v6  ;;  %1509 = vadd.xlane.f32.xlu1 %v1508_v44  ;;  %v1511_v13 = vsel %vm645_vm2, %v3967_v8, 0.0 }
 0x3fe   :  { %2988 = vpow2.f32 %v1474_v3  ;;  %v635_v3 = vpack.c.bf16 %v2913_v7, %v2913_v7 }
 0x3ff   :  { %v3971_v11 = vpop.eup %2982  ;;  %v1476_v58 = vmul.f32 1.442695, %v1445_v10 }
 0x400   :  { %v2985_v49 = vpop.eup %2984  ;;  %v1514_v17 = vsel %vm645_vm2, %v3971_v11, 0.0 }
 0x401   :  { %v1542_v15 = vmul.f32 %v2985_v49, %v3886_v48  ;;  %1515 = vadd.xlane.f32.xlu0 %v1514_v17  ;;  %1512 = vadd.xlane.f32.xlu1 %v1511_v13  ;;  %2990 = vpow2.f32 %v1476_v58  ;;  %v636_v58 = vpack.c.bf16 %v3700_v36, %v3700_v36 }
 0x403   :  { %1558 = vst.msk [vmem:[#allocation23] sm:$0xff] %vm645_vm2, %v1542_v15  ;;  %v1574_v51 = vpack.c.bf16 %v1542_v15, %v1542_v15  ;;  %v1963_v36 = vsel %vm1593_vm3, %v636_v58, 0 }
 0x405   :  { %2773 = vmatmul.mubr.msk.bf16.vlgmr.msra.gmra.mrb[36].mxu1 %vm645_vm2, %v1574_v51 }
 0x406   :  { %2783 = vmatpush3.bf16.msra.mxu1 %v1687_v16  ;;  %2784 = vmatprep.mubr.msk.bf16.mxu1 %vm3363_vm1, %v3362_v12 }
 0x407   :  { %v3983_v18 = vpop.eup %2986  ;;  %2794 = vmatprep.subr.bf16.mxu1 %v3362_v12 }
 0x408   :  { %v1517_v48 = vsel %vm645_vm2, %v3983_v18, 0.0  ;;  %v3988_v29 = vpop.eup %2988 }
 0x409   :  { %1518 = vadd.xlane.f32.xlu1 %v1517_v48  ;;  %v1520_v20 = vsel %vm645_vm2, %v3988_v29, 0.0 }
 0x40b   :  { %v3992_v21 = vpop.eup %2990 }
 0x40c   :  { %v1523_v22 = vsel %vm645_vm2, %v3992_v21, 0.0 }
 0x40d   :  { %1521 = vadd.xlane.f32.xlu1 %v1520_v20 }
 0x411   :  { %1524 = vadd.xlane.f32.xlu1 %v1523_v22 }
 0x417   :  { %598 = vrot.lane.b32.xlu0 %v3704_v40, %s3364_s11 }
 0x41b   :  { %622 = vrot.lane.b32.xlu0 %v3704_v40, %s3365_s2 }
 0x422   :  { %610 = vrot.lane.b32.xlu1 %v3704_v40, %s3366_s6 }
 0x439   :  { %v1483_v24 = vpop.xlane.xlu0 %1482 }
 0x43a   :  { %2992 = vrcp.f32 %v1483_v24 }
 0x43d   :  { %v1486_v25 = vpop.xlane.xlu1 %1485 }
 0x43e   :  { %2994 = vrcp.f32 %v1486_v25 }
 0x441   :  { %v1489_v27 = vpop.xlane.xlu0 %1488 }
 0x442   :  { %2996 = vrcp.f32 %v1489_v27 }
 0x444   :  { %v2993_v30 = vpop.eup %2992 }
 0x445   :  { %v1543_v34 = vmul.f32 %v2993_v30, %v3909_v5  ;;  %v1492_v37 = vpop.xlane.xlu1 %1491 }
 0x446   :  { %2998 = vrcp.f32 %v1492_v37 }
 0x447   :  { %1559 = vst.msk [vmem:[#allocation23 + $0x8] sm:$0xff] %vm645_vm2, %v1543_v34  ;;  %v1575_v41 = vpack.c.bf16 %v1543_v34, %v1543_v34 }
 0x448   :  { %v2995_v45 = vpop.eup %2994 }
 0x449   :  { %v1544_v52 = vmul.f32 %v2995_v45, %v3914_v9  ;;  %2779 = vmatmul.mubr.msk.bf16.vlgmr.msra.gmra.mrb[40].mxu0 %vm645_vm2, %v1575_v41  ;;  %v1495_v53 = vpop.xlane.xlu0 %1494  ;;  %v2908_v9 = vunpack.i.h.bf16 %v3871_v35  ;;  %v609_v22 = vpop.permute.xlu1 %608 }
 0x44a   :  { %3000 = vrcp.f32 %v1495_v53  ;;  %2789 = vmatpush3.bf16.msra.mxu0 %v1733_v54  ;;  %2790 = vmatprep.mubr.msk.bf16.mxu0 %vm3363_vm1, %v3362_v12  ;;  %v638_v47 = vpack.c.bf16 %v609_v22, %v609_v22 }
 0x44b   :  { %1560 = vst.msk [vmem:[#allocation23 + $0x10] sm:$0xff] %vm645_vm2, %v1544_v52  ;;  %v1576_v5 = vpack.c.bf16 %v1544_v52, %v1544_v52  ;;  %2800 = vmatprep.subr.bf16.mxu0 %v3362_v12  ;;  %v634_v35 = vpack.c.bf16 %v2908_v9, %v2908_v9 }
 0x44c   :  { %v2997_v63 = vpop.eup %2996  ;;  %v2055_v30 = vsel %vm1593_vm3, %v638_v47, 0 }
 0x44d   :  { %v1545_v38 = vmul.f32 %v2997_v63, %v3919_v14  ;;  %v1498_v57 = vpop.xlane.xlu0 %1497  ;;  %2785 = vmatmul.mubr.msk.bf16.vlgmr.msra.gmra.mrb[40].mxu1 %vm645_vm2, %v1576_v5  ;;  %v2147_v63 = vsel %vm1593_vm3, %v640_v50, 0 }
 0x44e   :  { %3002 = vrcp.f32 %v1498_v57  ;;  %2795 = vmatpush3.bf16.msra.mxu1 %v1779_v42  ;;  %2796 = vmatprep.mubr.msk.bf16.mxu1 %vm3363_vm1, %v3362_v12 }
 0x44f   :  { %1561 = vst.msk [vmem:[#allocation23 + $0x18] sm:$0xff] %vm645_vm2, %v1545_v38  ;;  %v1577_v60 = vpack.c.bf16 %v1545_v38, %v1545_v38  ;;  %2806 = vmatprep.subr.bf16.mxu1 %v3362_v12 }
 0x450   :  { %v2999_v61 = vpop.eup %2998 }
 0x451   :  { %v1546_v14 = vmul.f32 %v2999_v61, %v3924_v19  ;;  %v1501_v62 = vpop.xlane.xlu0 %1500  ;;  %2791 = vmatmul.mubr.msk.bf16.vlgmr.msra.gmra.mrb[44].mxu0 %vm645_vm2, %v1577_v60  ;;  %v1871_v19 = vsel %vm1593_vm3, %v634_v35, 0 }
 0x452   :  { %3004 = vrcp.f32 %v1501_v62  ;;  %2801 = vmatpush3.bf16.msra.mxu0 %v1825_v0  ;;  %2802 = vmatprep.mubr.msk.bf16.mxu0 %vm3363_vm1, %v3362_v12 }
 0x453   :  { %1562 = vst.msk [vmem:[#allocation23 + $0x20] sm:$0xff] %vm645_vm2, %v1546_v14  ;;  %v1578_v43 = vpack.c.bf16 %v1546_v14, %v1546_v14  ;;  %2812 = vmatprep.subr.bf16.mxu0 %v3362_v12 }
 0x454   :  { %v3001_v2 = vpop.eup %3000 }
 0x455   :  { %v1547_v32 = vmul.f32 %v3001_v2, %v3928_v39  ;;  %2797 = vmatmul.mubr.msk.bf16.vlgmr.msra.gmra.mrb[44].mxu1 %vm645_vm2, %v1578_v43  ;;  %v1917_v39 = vsel %vm1593_vm3, %v635_v3, 0 }
 0x456   :  { %2807 = vmatpush3.bf16.msra.mxu1 %v1871_v19  ;;  %2808 = vmatprep.mubr.msk.bf16.mxu1 %vm3363_vm1, %v3362_v12 }
 0x457   :  { %1563 = vst.msk [vmem:[#allocation23 + $0x28] sm:$0xff] %vm645_vm2, %v1547_v32  ;;  %v1579_v6 = vpack.c.bf16 %v1547_v32, %v1547_v32  ;;  %2818 = vmatprep.subr.bf16.mxu1 %v3362_v12 }
 0x458   :  { %v3003_v44 = vpop.eup %3002 }
 0x459   :  { %v1548_v4 = vmul.f32 %v3003_v44, %v3933_v26  ;;  %v1507_v10 = vpop.xlane.xlu0 %1506  ;;  %2803 = vmatmul.mubr.msk.bf16.vlgmr.msra.gmra.mrb[48].mxu0 %vm645_vm2, %v1579_v6  ;;  %v637_v26 = vpack.c.bf16 %v3959_v56, %v3959_v56 }
 0x45a   :  { %3006 = vrcp.f32 %v1507_v10  ;;  %2813 = vmatpush3.bf16.msra.mxu0 %v1917_v39  ;;  %2814 = vmatprep.mubr.msk.bf16.mxu0 %vm3363_vm1, %v3362_v12 }
 0x45b   :  { %1564 = vst.msk [vmem:[#allocation23 + $0x30] sm:$0xff] %vm645_vm2, %v1548_v4  ;;  %v1580_v49 = vpack.c.bf16 %v1548_v4, %v1548_v4  ;;  %2824 = vmatprep.subr.bf16.mxu0 %v3362_v12  ;;  %v2009_v15 = vsel %vm1593_vm3, %v637_v26, 0 }
 0x45c   :  { %v3005_v17 = vpop.eup %3004 }
 0x45d   :  { %v1549_v13 = vmul.f32 %v3005_v17, %v3937_v28  ;;  %2809 = vmatmul.mubr.msk.bf16.vlgmr.msra.gmra.mrb[48].mxu1 %vm645_vm2, %v1580_v49  ;;  %v621_v56 = vpop.permute.xlu0 %620 }
 0x45e   :  { %2819 = vmatpush3.bf16.msra.mxu1 %v1963_v36  ;;  %2820 = vmatprep.mubr.msk.bf16.mxu1 %vm3363_vm1, %v3362_v12  ;;  %v639_v16 = vpack.c.bf16 %v621_v56, %v621_v56 }
 0x45f   :  { %1565 = vst.msk [vmem:[#allocation23 + $0x38] sm:$0xff] %vm645_vm2, %v1549_v13  ;;  %v1581_v23 = vpack.c.bf16 %v1549_v13, %v1549_v13  ;;  %2830 = vmatprep.subr.bf16.mxu1 %v3362_v12 }
 0x460   :  { %v2101_v20 = vsel %vm1593_vm3, %v639_v16, 0 }
 0x461   :  { %2815 = vmatmul.mubr.msk.bf16.vlgmr.msra.gmra.mrb[52].mxu0 %vm645_vm2, %v1581_v23 }
 0x462   :  { %2825 = vmatpush3.bf16.msra.mxu0 %v2009_v15  ;;  %2826 = vmatprep.mubr.msk.bf16.mxu0 %vm3363_vm1, %v3362_v12 }
 0x463   :  { %2836 = vmatprep.subr.bf16.mxu0 %v3362_v12 }
 0x464   :  { %v3007_v28 = vpop.eup %3006 }
 0x465   :  { %v1551_v51 = vmul.f32 %v3007_v28, %v3943_v31 }
 0x467   :  { %1567 = vst.msk [vmem:[#allocation23 + $0x48] sm:$0xff] %vm645_vm2, %v1551_v51  ;;  %v1583_v48 = vpack.c.bf16 %v1551_v51, %v1551_v51 }
 0x469   :  { %2827 = vmatmul.mubr.msk.bf16.vlgmr.msra.gmra.mrb[56].mxu0 %vm645_vm2, %v1583_v48 }
 0x46a   :  { %2837 = vmatpush3.bf16.msra.mxu0 %v2101_v20  ;;  %2838 = vmatprep.mubr.msk.bf16.mxu0 %vm3363_vm1, %v3362_v12 }
 0x46b   :  { %2848 = vmatprep.subr.bf16.mxu0 %v3362_v12 }
 0x47a   :  { %v1504_v24 = vpop.xlane.xlu1 %1503 }
 0x47b   :  { %3008 = vrcp.f32 %v1504_v24 }
 0x485   :  { %v3009_v25 = vpop.eup %3008 }
 0x486   :  { %v1550_v31 = vmul.f32 %v3009_v25, %v3952_v46 }
 0x488   :  { %1566 = vst.msk [vmem:[#allocation23 + $0x40] sm:$0xff] %vm645_vm2, %v1550_v31  ;;  %v1582_v27 = vpack.c.bf16 %v1550_v31, %v1550_v31 }
 0x48a   :  { %2821 = vmatmul.mubr.msk.bf16.vlgmr.msra.gmra.mrb[52].mxu1 %vm645_vm2, %v1582_v27  ;;  %v1510_v59 = vpop.xlane.xlu1 %1509 }
 0x48b   :  { %2831 = vmatpush3.bf16.msra.mxu1 %v2055_v30  ;;  %3010 = vrcp.f32 %v1510_v59  ;;  %2832 = vmatprep.mubr.msk.bf16.mxu1 %vm3363_vm1, %v3362_v12 }
 0x48c   :  { %2842 = vmatprep.subr.bf16.mxu1 %v3362_v12 }
 0x48e   :  { %v1516_v34 = vpop.xlane.xlu0 %1515  ;;  %v1513_v37 = vpop.xlane.xlu1 %1512 }
 0x48f   :  { %3012 = vrcp.f32 %v1516_v34 }
 0x490   :  { %3014 = vrcp.f32 %v1513_v37 }
 0x492   :  { %v599_v52 = vpop.permute.xlu0 %598 }
 0x493   :  { %v641_v55 = vpack.c.bf16 %v599_v52, %v599_v52 }
 0x495   :  { %v3011_v46 = vpop.eup %3010  ;;  %v2193_v38 = vsel %vm1593_vm3, %v641_v55, 0 }
 0x496   :  { %v1552_v41 = vmul.f32 %v3011_v46, %v3963_v1  ;;  %v1519_v45 = vpop.xlane.xlu1 %1518 }
 0x497   :  { %3016 = vrcp.f32 %v1519_v45 }
 0x498   :  { %1568 = vst.msk [vmem:[#allocation23 + $0x50] sm:$0xff] %vm645_vm2, %v1552_v41  ;;  %v1584_v53 = vpack.c.bf16 %v1552_v41, %v1552_v41 }
 0x499   :  { %v3013_v54 = vpop.eup %3012 }
 0x49a   :  { %v3015_v33 = vpop.eup %3014  ;;  %v1554_v5 = vmul.f32 %v3013_v54, %v3971_v11  ;;  %2833 = vmatmul.mubr.msk.bf16.vlgmr.msra.gmra.mrb[56].mxu1 %vm645_vm2, %v1584_v53  ;;  %v1522_v9 = vpop.xlane.xlu1 %1521 }
 0x49b   :  { %v1553_v1 = vmul.f32 %v3015_v33, %v3967_v8  ;;  %2843 = vmatpush3.bf16.msra.mxu1 %v2147_v63  ;;  %3018 = vrcp.f32 %v1522_v9  ;;  %2844 = vmatprep.mubr.msk.bf16.mxu1 %vm3363_vm1, %v3362_v12  ;;  %v623_v8 = vpop.permute.xlu0 %622 }
 0x49c   :  { %1570 = vst.msk [vmem:[#allocation23 + $0x60] sm:$0xff] %vm645_vm2, %v1554_v5  ;;  %2854 = vmatprep.subr.bf16.mxu1 %v3362_v12  ;;  %v1586_v57 = vpack.c.bf16 %v1554_v5, %v1554_v5  ;;  %v643_v35 = vpack.c.bf16 %v623_v8, %v623_v8 }
 0x49d   :  { %1569 = vst.msk [vmem:[#allocation23 + $0x58] sm:$0xff] %vm645_vm2, %v1553_v1  ;;  %v1585_v40 = vpack.c.bf16 %v1553_v1, %v1553_v1 }
 0x49e   :  { %v1525_v11 = vpop.xlane.xlu1 %1524  ;;  %v2285_v2 = vsel %vm1593_vm3, %v643_v35, 0 }
 0x49f   :  { %2839 = vmatmul.mubr.msk.bf16.vlgmr.msra.gmra.mrb[60].mxu0 %vm645_vm2, %v1585_v40  ;;  %3020 = vrcp.f32 %v1525_v11 }
 0x4a0   :  { %2849 = vmatpush3.bf16.msra.mxu0 %v2193_v38  ;;  %2850 = vmatprep.mubr.msk.bf16.mxu0 %vm3363_vm1, %v3362_v12 }
 0x4a1   :  { %v3017_v42 = vpop.eup %3016  ;;  %2860 = vmatprep.subr.bf16.mxu0 %v3362_v12 }
 0x4a2   :  { %v1555_v60 = vmul.f32 %v3017_v42, %v3983_v18  ;;  %2845 = vmatmul.mubr.msk.bf16.vlgmr.msra.gmra.mrb[60].mxu1 %vm645_vm2, %v1586_v57  ;;  %v611_v61 = vpop.permute.xlu1 %610  ;;  %v2956_v42 = vld [vmem:[#allocation17] sm:$0xff]  }
 0x4a3   :  { %v642_v7 = vpack.c.bf16 %v611_v61, %v611_v61  ;;  %2856 = vmatprep.mubr.msk.bf16.mxu1 %vm3363_vm1, %v3362_v12 }
 0x4a4   :  { %1571 = vst.msk [vmem:[#allocation23 + $0x68] sm:$0xff] %vm645_vm2, %v1555_v60  ;;  %v1587_v14 = vpack.c.bf16 %v1555_v60, %v1555_v60 }
 0x4a5   :  { %v3019_v62 = vpop.eup %3018  ;;  %v2239_v0 = vsel %vm1593_vm3, %v642_v7, 0 }
 0x4a6   :  { %v1556_v43 = vmul.f32 %v3019_v62, %v3988_v29  ;;  %2855 = vmatpush3.bf16.msra.mxu1 %v2239_v0  ;;  %v2957_v62 = vld [vmem:[#allocation17 + $0x8] sm:$0xff]  }
 0x4a7   :  { %2851 = vmatmul.mubr.msk.bf16.vlgmr.msra.gmra.mrb[64].mxu0 %vm645_vm2, %v1587_v14  ;;  %2866 = vmatprep.subr.bf16.mxu1 %v2956_v42 }
 0x4a8   :  { %1572 = vst.msk [vmem:[#allocation23 + $0x70] sm:$0xff] %vm645_vm2, %v1556_v43  ;;  %2861 = vmatpush3.bf16.msra.mxu0 %v2285_v2  ;;  %v1588_v18 = vpack.c.bf16 %v1556_v43, %v1556_v43  ;;  %2862 = vmatprep.mubr.msk.bf16.mxu0 %vm3363_vm1, %v3362_v12 }
 0x4a9   :  { %v3021_v3 = vpop.eup %3020 }
 0x4aa   :  { %v1557_v32 = vmul.f32 %v3021_v3, %v3992_v21  ;;  %2857 = vmatmul.mubr.msk.bf16.vlgmr.msra.gmra.mrb[64].mxu1 %vm645_vm2, %v1588_v18 }
 0x4ab   :  { %2867 = vmatpush3.bf16.msra.mxu1 %v2956_v42 }
 0x4ac   :  { %1573 = vst.msk [vmem:[#allocation23 + $0x78] sm:$0xff] %vm645_vm2, %v1557_v32  ;;  %v1589_v29 = vpack.c.bf16 %v1557_v32, %v1557_v32  ;;  %2868 = vmatprep.subr.bf16.mxu1 %v2957_v62 }
 0x4af   :  { %2863 = vmatmul.mubr.msk.bf16.vlgmr.msra.gmra.mrb[68].mxu0 %vm645_vm2, %v1589_v29  ;;  %2869 = vmatpush3.bf16.msra.mxu1 %v2957_v62 }
 0x4d8   :  { %v4109_v19 = vpop.f32.mrb[36].mxu1 }
 0x4d9   :  { %v2774_v6 = vpop.f32.mrb[37].mxu1 }
 0x4da   :  { %v1634_v44 = vpop.f32.mrb[38].mxu1 }
 0x4db   :  { %v2775_v4 = vpop.f32.mrb[39].mxu1 }
 0x51c   :  { %v1677_v10 = vpop.f32.mrb[40].mxu0 }
 0x51d   :  { %v2780_v39 = vpop.f32.mrb[41].mxu0 }
 0x51e   :  { %v1680_v58 = vpop.f32.mrb[42].mxu0 }
 0x51f   :  { %v2781_v49 = vpop.f32.mrb[43].mxu0 }
 0x520   :  { %v1723_v12 = vpop.f32.mrb[40].mxu1 }
 0x521   :  { %v2786_v17 = vpop.f32.mrb[41].mxu1 }
 0x522   :  { %v1726_v26 = vpop.f32.mrb[42].mxu1 }
 0x523   :  { %v2787_v21 = vpop.f32.mrb[43].mxu1 }
 0x524   :  { %v1769_v13 = vpop.f32.mrb[44].mxu0 }
 0x525   :  { %v2792_v36 = vpop.f32.mrb[45].mxu0 }
 0x526   :  { %v1772_v23 = vpop.f32.mrb[46].mxu0 }
 0x527   :  { %v2793_v15 = vpop.f32.mrb[47].mxu0 }
 0x528   :  { %v4111_v56 = vpop.f32.mrb[44].mxu1 }
 0x529   :  { %v2798_v28 = vpop.f32.mrb[45].mxu1 }
 0x52a   :  { %v1818_v51 = vpop.f32.mrb[46].mxu1 }
 0x52b   :  { %v2799_v16 = vpop.f32.mrb[47].mxu1 }
 0x52c   :  { %v1861_v48 = vpop.f32.mrb[48].mxu0 }
 0x52d   :  { %v2914_v20 = vpack.i.bf16 %v1861_v48, %v1677_v10  ;;  %v2804_v22 = vpop.f32.mrb[49].mxu0 }
 0x52e   :  { %v1864_v24 = vpop.f32.mrb[50].mxu0 }
 0x52f   :  { %v2805_v25 = vpop.f32.mrb[51].mxu0  ;;  %2915 = vrot.lane.b32.xlu1 %v2914_v20, %s3367_s16 }
 0x530   :  { %v1907_v47 = vpop.f32.mrb[48].mxu1 }
 0x531   :  { %v2919_v31 = vpack.i.bf16 %v1907_v47, %v1723_v12  ;;  %v2810_v27 = vpop.f32.mrb[49].mxu1 }
 0x532   :  { %v1910_v30 = vpop.f32.mrb[50].mxu1 }
 0x533   :  { %2920 = vrot.lane.b32.xlu1 %v2919_v31, %s3368_s1  ;;  %v2811_v59 = vpop.f32.mrb[51].mxu1 }
 0x534   :  { %v1953_v34 = vpop.f32.mrb[52].mxu0 }
 0x535   :  { %v2934_v37 = vpack.i.bf16 %v1953_v34, %v1769_v13  ;;  %v2816_v46 = vpop.f32.mrb[53].mxu0 }
 0x536   :  { %v1956_v41 = vpop.f32.mrb[54].mxu0 }
 0x537   :  { %v2817_v45 = vpop.f32.mrb[55].mxu0  ;;  %2935 = vrot.lane.b32.xlu1 %v2934_v37, %s3369_s17 }
 0x53c   :  { %v2045_v50 = vpop.f32.mrb[56].mxu0 }
 0x53d   :  { %v2828_v52 = vpop.f32.mrb[57].mxu0 }
 0x53e   :  { %v2048_v53 = vpop.f32.mrb[58].mxu0 }
 0x53f   :  { %v2829_v54 = vpop.f32.mrb[59].mxu0 }
 0x55d   :  { %v4116_v33 = vpop.f32.mrb[52].mxu1 }
 0x55e   :  { %v2822_v5 = vpop.f32.mrb[53].mxu1 }
 0x55f   :  { %v2002_v63 = vpop.f32.mrb[54].mxu1 }
 0x560   :  { %v2823_v9 = vpop.f32.mrb[55].mxu1 }
 0x56d   :  { %v2091_v1 = vpop.f32.mrb[56].mxu1 }
 0x56e   :  { %v2834_v55 = vpop.f32.mrb[57].mxu1 }
 0x56f   :  { %v2094_v40 = vpop.f32.mrb[58].mxu1 }
 0x570   :  { %v2835_v11 = vpop.f32.mrb[59].mxu1 }
 0x572   :  { %v2137_v38 = vpop.f32.mrb[60].mxu0 }
 0x573   :  { %v2840_v8 = vpop.f32.mrb[61].mxu0 }
 0x574   :  { %v2140_v57 = vpop.f32.mrb[62].mxu0 }
 0x575   :  { %v2841_v60 = vpop.f32.mrb[63].mxu0  ;;  %v2183_v61 = vpop.f32.mrb[60].mxu1 }
 0x576   :  { %v2846_v35 = vpop.f32.mrb[61].mxu1 }
 0x577   :  { %v2186_v7 = vpop.f32.mrb[62].mxu1 }
 0x578   :  { %v2847_v14 = vpop.f32.mrb[63].mxu1 }
 0x57a   :  { %v2229_v0 = vpop.f32.mrb[64].mxu0 }
 0x57b   :  { %v2924_v43 = vpack.i.bf16 %v2229_v0, %v2045_v50  ;;  %v2852_v2 = vpop.f32.mrb[65].mxu0 }
 0x57c   :  { %v2232_v18 = vpop.f32.mrb[66].mxu0 }
 0x57d   :  { %2925 = vrot.lane.b32.xlu0 %v2924_v43, %s3367_s16  ;;  %v2853_v3 = vpop.f32.mrb[67].mxu0  ;;  %v2275_v32 = vpop.f32.mrb[64].mxu1 }
 0x57e   :  { %v2929_v29 = vpack.i.bf16 %v2275_v32, %v2091_v1  ;;  %v2858_v6 = vpop.f32.mrb[65].mxu1 }
 0x57f   :  { %v2278_v44 = vpop.f32.mrb[66].mxu1 }
 0x580   :  { %v2859_v4 = vpop.f32.mrb[67].mxu1 }
 0x581   :  { %2930 = vrot.lane.b32.xlu0 %v2929_v29, %s3368_s1 }
 0x582   :  { %v2321_v10 = vpop.f32.mrb[68].mxu0 }
 0x583   :  { %v2939_v39 = vpack.i.bf16 %v2321_v10, %v2137_v38  ;;  %v2864_v58 = vpop.f32.mrb[69].mxu0 }
 0x584   :  { %v2324_v49 = vpop.f32.mrb[70].mxu0 }
 0x585   :  { %v2865_v12 = vpop.f32.mrb[71].mxu0  ;;  %2940 = vrot.lane.b32.xlu0 %v2939_v39, %s3369_s17 }
 0x5a1   :  { %v2916_v17 = vpop.permute.xlu1 %2915 }
 0x5a2   :  { %v2918_v21 = vunpack.i.h.bf16 %v2916_v17  ;;  %v2917_v13 = vunpack.i.l.bf16 %v2916_v17 }
 0x5a4   :  { %v2375_v28 = vsel %vm645_vm2, %v4109_v19, %v2917_v13  ;;  %v2376_v51 = vsel %vm645_vm2, %v4111_v56, %v2918_v21 }
 0x5a5   :  { %v2921_v26 = vpop.permute.xlu1 %2920 }
 0x5a6   :  { %v2923_v36 = vunpack.i.h.bf16 %v2921_v26  ;;  %v2922_v23 = vunpack.i.l.bf16 %v2921_v26 }
 0x5a8   :  { %v2381_v20 = vsel %vm2379_vm4, %v2376_v51, %v2923_v36  ;;  %v2380_v22 = vsel %vm2379_vm4, %v2375_v28, %v2922_v23 }
 0x5a9   :  { %v2936_v15 = vpop.permute.xlu1 %2935 }
 0x5aa   :  { %v2938_v16 = vunpack.i.h.bf16 %v2936_v15  ;;  %v2937_v48 = vunpack.i.l.bf16 %v2936_v15 }
 0x5ac   :  { %v2385_v24 = vsel %vm2384_vm5, %v2380_v22, %v2937_v48  ;;  %v2386_v25 = vsel %vm2384_vm5, %v2381_v20, %v2938_v16 }
 0x5ad   :  { %v2389_v47 = vpack.c.bf16 %v2386_v25, %v2385_v24 }
 0x5af   :  { %2870 = vmatprep.mubr.msk.bf16.mxu1 %vm236_vm0, %v2389_v47 }
 0x5ef   :  { %v2926_v31 = vpop.permute.xlu0 %2925 }
 0x5f0   :  { %v2928_v30 = vunpack.i.h.bf16 %v2926_v31  ;;  %v2927_v19 = vunpack.i.l.bf16 %v2926_v31 }
 0x5f2   :  { %v2377_v37 = vsel %vm645_vm2, %v4116_v33, %v2927_v19  ;;  %v2378_v46 = vsel %vm645_vm2, %v2183_v61, %v2928_v30 }
 0x5f3   :  { %v2931_v27 = vpop.permute.xlu0 %2930 }
 0x5f4   :  { %v2933_v59 = vunpack.i.h.bf16 %v2931_v27  ;;  %v2932_v34 = vunpack.i.l.bf16 %v2931_v27 }
 0x5f6   :  { %v2383_v50 = vsel %vm2379_vm4, %v2378_v46, %v2933_v59  ;;  %v2382_v52 = vsel %vm2379_vm4, %v2377_v37, %v2932_v34 }
 0x5f7   :  { %v2941_v56 = vpop.permute.xlu0 %2940 }
 0x5f8   :  { %v2943_v41 = vunpack.i.h.bf16 %v2941_v56  ;;  %v2942_v45 = vunpack.i.l.bf16 %v2941_v56 }
 0x5fa   :  { %v2387_v53 = vsel %vm2384_vm5, %v2382_v52, %v2942_v45  ;;  %v2388_v54 = vsel %vm2384_vm5, %v2383_v50, %v2943_v41 }
 0x5fb   :  { %v2390_v5 = vpack.c.bf16 %v2388_v54, %v2387_v53 }
 0x5fd   :  { %2871 = vmatmul.mubr.msk.bf16.vlgmr.msra.gmra.mrb[68].mxu1 %vm236_vm0, %v2390_v5 }
 0x5fe   :  { %3297 = shalt.err (!%p3294_p2)
}
 0x5ff   :  { %s3298_s0 = scalar_lea.hbm %s4185_s13, 2048 }
 0x600   :  { %p3299_p3 = scmp.ne.s32.totalorder %s4185_s13, %s3298_s0  ;;  %p3302_p4 = scmp.lt.u32.totalorder %s3298_s0, %s4185_s13 }
 0x602   :  { %p3304_p5 = pnand %p3302_p4, %p3299_p3 }
 0x604   :  { %3307 = shalt.err (!%p3304_p5)
}
 0x605   :  { %s3371_s7 = smov 128   ;;  %v2565_v33 = vld [vmem:[#allocation19] ss:$0 sm:$0xff]  ;;  %s3372_s26 = smov [#allocation22]  }
 0x606   :  { %2496 = dma.vmem_to_hbm [thread:$0]  %s2491_s22, 2048, %s4185_s13, [#allocation24], %s3371_s7, %s3371_s7, %s3367_s16  }
 0x607   :  { %s2478_s5 = sshll.u32 %s3372_s26, 4  ;;  %s2479_s5 = int_to_ptr.vmem [resolvable:$true] %s2478_s5 }
 0x608   :  { %s3308_s13 = scalar_lea.vmem %s2479_s5, 512  ;;  %p3313_p7 = scmp.lt.s32.totalorder %s2479_s5, %s2479_s5 }
 0x609   :  { %p3309_p6 = scmp.ne.s32.totalorder %s2479_s5, %s3308_s13  ;;  %p3314_p8 = scmp.lt.s32.totalorder %s3308_s13, %s3308_s13 }
 0x60b   :  { %p3315_p9 = por %p3314_p8, %p3313_p7 }
 0x60d   :  { %p3316_p10 = pnand %p3315_p9, %p3309_p6 }
 0x6d0   :  { %v2872_v63 = vpop.f32.mrb[68].mxu1 }
 0x6d1   :  { %v2463_v9 = vadd.f32 %v2872_v63, %v2565_v33  ;;  %v2454_v1 = vpop.f32.mrb[69].mxu1 }
 0x6d2   :  { %v2455_v55 = vadd.f32 %v2565_v33, %v2454_v1  ;;  %v2873_v40 = vpop.f32.mrb[70].mxu1 }
 0x6d3   :  { %2471 = vst.msk [vmem:[#allocation22 + $0x10] sm:$0xff] %vm236_vm0, %v2463_v9  ;;  %v2466_v11 = vadd.f32 %v2873_v40, %v2565_v33  ;;  %v2457_v38 = vpop.f32.mrb[71].mxu1 }
 0x6d4   :  { %2469 = vst.msk [vmem:[#allocation22] sm:$0xff] %vm236_vm0, %v2455_v55  ;;  %v2458_v8 = vadd.f32 %v2565_v33, %v2457_v38 }
 0x6d5   :  { %2472 = vst.msk [vmem:[#allocation22 + $0x18] sm:$0xff] %vm236_vm0, %v2466_v11 }
 0x6d6   :  { %2470 = vst.msk [vmem:[#allocation22 + $0x8] sm:$0xff] %vm236_vm0, %v2458_v8 }
 0x6d7   :  { %3319 = shalt.err (!%p3316_p10)
}
 0x6d8   :  { %s3320_s14 = scalar_lea.hbm %s4184_s12, 512 }
 0x6d9   :  { %p3321_p11 = scmp.ne.s32.totalorder %s4184_s12, %s3320_s14  ;;  %p3324_p12 = scmp.lt.u32.totalorder %s3320_s14, %s4184_s12 }
 0x6db   :  { %p3326_p13 = pnand %p3324_p12, %p3321_p11 }
 0x6dd   :  { %3329 = shalt.err (!%p3326_p13)
}
 0x6de   :  { %2484 = dma.vmem_to_hbm [thread:$0]  %s2479_s5, 512, %s4184_s12, [#allocation4], %s3371_s7, %s3371_s7, %s3367_s16  }
 0x6df   :  { %3344 = dma.done.wait [#allocation4], 512  }
 0x6e0   :  { %3345 = vsyncadd [#allocation4], 4294966784 }
 0x6e1   :  { %3346 = dma.done.wait [#allocation24], 2048  }
 0x6e2   :  { %3347 = vsyncadd [#allocation24], 4294965248 }
 0x6e3   :  { %2503 = vsyncpa [#allocation3], 1 }
 0x6e4   :  { %2504 = vsyncpa [#allocation6], 1 }
 0x6e5   :  { %2505 = vsyncpa [#allocation9], 1 }
 0x6e6   :  { %2506 = vsyncpa [#allocation12], 1 }
 0x6e7   :  { %2507 = vsyncpa [#allocation15], 1 }
 0x6e8   :  { %2508 = vsyncpa [#allocation18], 1 }
 0x6e9   :  { %2509 = vsyncpa [#allocation21], 1 }
 0x6ea   :  { %2510 = vsyncpa [#allocation4], 1 }
 0x6eb   :  { %2511 = vsyncpa [#allocation24], 1 }

</bundles_post_ra>
